<compile_context>
chip_gen: v5e
topology: v5e:2x2
jax: 0.10.0
libtpu: 0.0.40
codegen_flags: <defaults>
</compile_context>

<pallas_src>
import jax
import jax.numpy as jnp
from jax.experimental import pallas as pl
from jax.experimental.pallas import tpu as pltpu

# ----- model hyperparameters (small, consistent with SGODEModel kwargs) -----
NUM_NODES = 8
RNN_UNITS = 32
INPUT_DIM = 1
OUTPUT_DIM = 1
SEQ_LEN = 8
HORIZON = 4
NUM_RNN_LAYERS = 1
MAX_DIFFUSION_STEP = 2
EMBED_DIM = 10
BATCH = 2
ONLY_POS = 1

_NUM_MATRICES = MAX_DIFFUSION_STEP + 1  # identity + K diffusion hops


# ---------------------------- fused forward kernel ---------------------------

def _fused_forward_kernel(
    x_ref,                   # (N*B, S)  encoder inputs, node-major rows, time on lanes
    a_e_ref, a2_e_ref,       # (N*B, N*B) kron(A_enc, I_B) and its square
    wxg_e_ref, wxc_e_ref,    # (3, 2U) / (3, U)  per-hop input weights (din == 1)
    whg_e_ref, whc_e_ref,    # (3U, 2U) / (3U, U)  hidden weights packed on contraction
    bg_e_ref, bc_e_ref,      # (1, 2U) / (1, U)
    a_d_ref, a2_d_ref,       # decoder kron adjacency + square
    whg_d_ref, whc_d_ref,    # (3U, 2U) / (3U, U)
    wxg_fd_ref, wxc_fd_ref,  # (3U, 2U) / (3U, U)  proj_w folded into decoder x-weights
    bgt_d_ref, bct_d_ref,    # (N*B, 2U) / (N*B, U)  decoder bias + folded proj_b extras
    bg_d_ref, bc_d_ref,      # plain decoder biases (t == 0, go-symbol == 0)
    projw_ref, projb_ref,    # (1, U), (1, 1)
    out_ref,                 # (N*B, HORIZON)
):
    U = RNN_UNITS

    X = x_ref[...].astype(jnp.float32)
    A_e, A2_e = a_e_ref[...], a2_e_ref[...]
    Wxg_e, Wxc_e = wxg_e_ref[...], wxc_e_ref[...]
    Whg_e, Whc_e = whg_e_ref[...], whc_e_ref[...]
    bg_e, bc_e = bg_e_ref[...], bc_e_ref[...]
    A_d, A2_d = a_d_ref[...], a2_d_ref[...]
    Whg_d, Whc_d = whg_d_ref[...], whc_d_ref[...]
    Wxg_fd, Wxc_fd = wxg_fd_ref[...], wxc_fd_ref[...]
    bgt_d, bct_d = bgt_d_ref[...], bct_d_ref[...]
    bg_d, bc_d = bg_d_ref[...], bc_d_ref[...]
    proj_w = projw_ref[...]                      # (1, U)
    proj_b = projb_ref[...]                      # (1, 1)

    nb = X.shape[0]
    seq_len = X.shape[1]
    horizon = out_ref.shape[1]

    def diffuse_pack(v, A1, A2):
        # [v | A v | A^2 v] on lanes.  A^2 is precomputed, so both matmuls are
        # independent and their MXU pushes can overlap.
        Av = jnp.dot(A1, v, preferred_element_type=jnp.float32)
        A2v = jnp.dot(A2, v, preferred_element_type=jnp.float32)
        return jnp.concatenate([v, Av, A2v], axis=1)

    # ---------------- encoder: x-side work hoisted out of the recurrence -----
    AX = jnp.dot(A_e, X, preferred_element_type=jnp.float32)    # (NB, S)
    A2X = jnp.dot(A2_e, X, preferred_element_type=jnp.float32)  # (NB, S)

    h = jnp.zeros((nb, U), jnp.float32)
    for t in range(seq_len):
        # din == 1 -> the Wx "matmuls" are broadcast outer products on the VPU,
        # off the h-dependency chain.
        x0 = X[:, t:t + 1]
        x1 = AX[:, t:t + 1]
        x2 = A2X[:, t:t + 1]
        xg = x0 * Wxg_e[0:1, :] + x1 * Wxg_e[1:2, :] + x2 * Wxg_e[2:3, :]
        xc = x0 * Wxc_e[0:1, :] + x1 * Wxc_e[1:2, :] + x2 * Wxc_e[2:3, :]

        Hs = diffuse_pack(h, A_e, A2_e)                          # (NB, 3U)
        gates = jax.nn.sigmoid(
            jnp.dot(Hs, Whg_e, preferred_element_type=jnp.float32) + xg + bg_e)
        r = gates[:, :U]
        u = gates[:, U:]
        RHs = diffuse_pack(r * h, A_e, A2_e)
        c = jnp.tanh(
            jnp.dot(RHs, Whc_e, preferred_element_type=jnp.float32) + xc + bc_e)
        h = u * h + (1.0 - u) * c

    # ---------------- decoder: feedback folded into the weights --------------
    Whg_d_tot = Whg_d + Wxg_fd     # one-time value add, off the critical path

    dh = h
    projs = []
    for t in range(horizon):
        Hs = diffuse_pack(dh, A_d, A2_d)
        if t == 0:
            # go-symbol input is zero -> no x contribution.
            pre_g = jnp.dot(Hs, Whg_d, preferred_element_type=jnp.float32) + bg_d
            extra_c = bc_d
        else:
            # x_t = proj_{t-1} = dh @ proj_w + proj_b is folded:
            # its graph-conv contribution = Hs @ Wx_fused + precomputed extras.
            pre_g = (jnp.dot(Hs, Whg_d_tot, preferred_element_type=jnp.float32)
                     + bgt_d)
            extra_c = (jnp.dot(Hs, Wxc_fd, preferred_element_type=jnp.float32)
                       + bct_d)
        gates = jax.nn.sigmoid(pre_g)
        r = gates[:, :U]
        u = gates[:, U:]
        RHs = diffuse_pack(r * dh, A_d, A2_d)
        c = jnp.tanh(
            jnp.dot(RHs, Whc_d, preferred_element_type=jnp.float32) + extra_c)
        dh = u * dh + (1.0 - u) * c

        # Output projection (OUTPUT_DIM == 1): VPU multiply + lane reduce,
        # off the feedback chain (the feedback uses the folded weights above).
        proj_t = jnp.sum(dh * proj_w, axis=1, keepdims=True) + proj_b
        projs.append(proj_t)

    # One lane-dense store for all horizon steps.
    out_ref[...] = jnp.concatenate(projs, axis=1).astype(out_ref.dtype)


# ---------------------------- wrapper -----------------------------------------

def _pack_hidden_weights(W):
    # (K+1, U, out) -> (3U, out); row blocks match the [h | A h | A^2 h] slab.
    return W.reshape(-1, W.shape[-1])


def sgode_forward(params, label, inputs):
    """inputs: (seq_len, batch, num_nodes * input_dim)
       returns (outputs (horizon, batch, num_nodes*output_dim), neg)"""
    seq_len, batch, _ = inputs.shape
    assert len(params['enc']) == 1 and len(params['dec']) == 1
    assert INPUT_DIM == 1 and OUTPUT_DIM == 1
    nb = NUM_NODES * batch
    U = RNN_UNITS

    enc = params['enc'][0]
    dec = params['dec'][0]

    # Node-major rows (node outer, batch inner), time stacked on lanes.
    x = inputs.reshape(seq_len, batch, NUM_NODES)          # INPUT_DIM == 1
    X = jnp.transpose(x, (2, 1, 0)).reshape(nb, seq_len)

    # Kronecker adjacencies (match node-major row order node*B + batch).
    eyeB = jnp.eye(batch, dtype=jnp.float32)
    A_e = jnp.kron(enc['A'], eyeB)
    A2_e = A_e @ A_e
    A_d = jnp.kron(dec['A'], eyeB)
    A2_d = A_d @ A_d

    # Encoder per-hop input weights (din == 1) and packed hidden weights.
    Wxg_e = enc['Wxg'].reshape(_NUM_MATRICES, 2 * U)
    Wxc_e = enc['Wxc'].reshape(_NUM_MATRICES, U)
    Whg_e = _pack_hidden_weights(enc['Whg'])
    Whc_e = _pack_hidden_weights(enc['Whc'])

    Whg_d = _pack_hidden_weights(dec['Whg'])
    Whc_d = _pack_hidden_weights(dec['Whc'])

    proj_w = params['proj_w']          # (U, 1)
    proj_b = params['proj_b']          # (1, 1)

    # Fold the decoder projection feedback into the layer-0 input weights:
    #   x_{t+1} = h_t @ proj_w + proj_b
    #   sum_k (A^k x) Wx[k] = [h|Ah|A^2h] @ concat_k(proj_w @ Wx[k]) + extras
    Wxg_d = dec['Wxg']                 # (3, 1, 2U)
    Wxc_d = dec['Wxc']                 # (3, 1, U)
    Wxg_fd = jnp.concatenate(
        [proj_w @ Wxg_d[k] for k in range(_NUM_MATRICES)], axis=0)   # (3U, 2U)
    Wxc_fd = jnp.concatenate(
        [proj_w @ Wxc_d[k] for k in range(_NUM_MATRICES)], axis=0)   # (3U, U)

    ones_col = jnp.ones((nb, 1), jnp.float32)
    cols = [ones_col, A_d @ ones_col, A2_d @ ones_col]
    pb = proj_b[0, 0]
    extra_g = pb * sum(cols[k] @ Wxg_d[k] for k in range(_NUM_MATRICES))
    extra_c = pb * sum(cols[k] @ Wxc_d[k] for k in range(_NUM_MATRICES))
    bgt_d = dec['bg'] + extra_g        # (NB, 2U)
    bct_d = dec['bc'] + extra_c        # (NB, U)

    flat_inputs = [
        X, A_e, A2_e, Wxg_e, Wxc_e, Whg_e, Whc_e, enc['bg'], enc['bc'],
        A_d, A2_d, Whg_d, Whc_d, Wxg_fd, Wxc_fd, bgt_d, bct_d,
        dec['bg'], dec['bc'], proj_w.reshape(1, U), proj_b,
    ]

    vmem = lambda: pl.BlockSpec(memory_space=pltpu.MemorySpace.VMEM)
    out = pl.pallas_call(
        _fused_forward_kernel,
        out_shape=jax.ShapeDtypeStruct((nb, HORIZON), jnp.float32),
        in_specs=[vmem() for _ in flat_inputs],
        out_specs=vmem(),
    )(*flat_inputs)

    # (NB, H) -> (horizon, batch, num_nodes * output_dim)
    out = out.T.reshape(HORIZON, NUM_NODES, batch)
    out = jnp.transpose(out, (0, 2, 1)).reshape(
        HORIZON, batch, NUM_NODES * OUTPUT_DIM)

    if ONLY_POS != 1 or label != 'without_regularization':
        # Pure function of the parameters (independent of the inputs): computed
        # outside the kernel; XLA overlaps it with the kernel.
        neg1 = jax.nn.relu(enc['e3'] @ enc['e4'].T)
        neg2 = jax.nn.relu(dec['e3'] @ dec['e4'].T)
        return out, jnp.concatenate([neg1, neg2], axis=0)
    return out, 0  # matches PyTorch's `neg = 0` branch


# ---------------------------- parameters --------------------------------------

def init_cell_params(key, din, units):
    k = jax.random.split(key, 8)
    Wxg = jax.random.normal(k[0], (_NUM_MATRICES, din, 2 * units),
                            jnp.float32) * 0.1
    Whg = jax.random.normal(k[1], (_NUM_MATRICES, units, 2 * units),
                            jnp.float32) * 0.1
    bg = jnp.full((1, 2 * units), 1.0, jnp.float32)   # DCRNN gate bias_start=1.0
    Wxc = jax.random.normal(k[2], (_NUM_MATRICES, din, units),
                            jnp.float32) * 0.1
    Whc = jax.random.normal(k[3], (_NUM_MATRICES, units, units),
                            jnp.float32) * 0.1
    bc = jnp.zeros((1, units), jnp.float32)
    e1 = jax.random.normal(k[4], (NUM_NODES, EMBED_DIM), jnp.float32)
    e2 = jax.random.normal(k[5], (NUM_NODES, EMBED_DIM), jnp.float32)
    e3 = jax.random.normal(k[6], (NUM_NODES, EMBED_DIM), jnp.float32)
    e4 = jax.random.normal(k[7], (NUM_NODES, EMBED_DIM), jnp.float32)
    # learned adjacency (parameter setup -- plain JAX glue, paid once)
    A = jax.nn.softmax(jax.nn.relu(e1 @ e2.T), axis=-1)
    return dict(A=A, Wxg=Wxg, Whg=Whg, bg=bg, Wxc=Wxc, Whc=Whc, bc=bc,
                e3=e3, e4=e4)


# ---------------------------- main ---------------------------------------------

if __name__ == "__main__":
    key = jax.random.PRNGKey(0)
    k_in, k_enc, k_dec, k_proj = jax.random.split(key, 4)

    keys_enc = jax.random.split(k_enc, NUM_RNN_LAYERS)
    keys_dec = jax.random.split(k_dec, NUM_RNN_LAYERS)
    enc_params, dec_params = [], []
    for l in range(NUM_RNN_LAYERS):
        din_e = INPUT_DIM if l == 0 else RNN_UNITS
        din_d = OUTPUT_DIM if l == 0 else RNN_UNITS
        enc_params.append(init_cell_params(keys_enc[l], din_e, RNN_UNITS))
        dec_params.append(init_cell_params(keys_dec[l], din_d, RNN_UNITS))

    kp1, _ = jax.random.split(k_proj)
    params = {
        'enc': enc_params,
        'dec': dec_params,
        'proj_w': jax.random.normal(kp1, (RNN_UNITS, OUTPUT_DIM),
                                    jnp.float32) * 0.1,
        'proj_b': jnp.zeros((1, OUTPUT_DIM), jnp.float32),
    }

    inputs = jax.random.normal(
        k_in, (SEQ_LEN, BATCH, NUM_NODES * INPUT_DIM), jnp.float32)

    outputs, neg = sgode_forward(params, 'with_regularization', inputs)
    outputs = jax.block_until_ready(outputs)
    neg = jax.block_until_ready(neg)

    assert outputs.shape == (HORIZON, BATCH, NUM_NODES * OUTPUT_DIM)
    assert neg.shape == (2 * NUM_NODES, NUM_NODES)
    assert bool(jnp.all(jnp.isfinite(outputs)))
    assert bool(jnp.all(jnp.isfinite(neg)))
    print("KERNEL_OK")
</pallas_src>

<mosaic_0001>
module attributes {stable_mosaic.version = 11 : i64} {
  func.func @_fused_forward_kernel(%arg0: memref<16x8xf32, #tpu.memory_space<vmem>>, %arg1: memref<16x16xf32, #tpu.memory_space<vmem>>, %arg2: memref<16x16xf32, #tpu.memory_space<vmem>>, %arg3: memref<3x64xf32, #tpu.memory_space<vmem>>, %arg4: memref<3x32xf32, #tpu.memory_space<vmem>>, %arg5: memref<96x64xf32, #tpu.memory_space<vmem>>, %arg6: memref<96x32xf32, #tpu.memory_space<vmem>>, %arg7: memref<1x64xf32, #tpu.memory_space<vmem>>, %arg8: memref<1x32xf32, #tpu.memory_space<vmem>>, %arg9: memref<16x16xf32, #tpu.memory_space<vmem>>, %arg10: memref<16x16xf32, #tpu.memory_space<vmem>>, %arg11: memref<96x64xf32, #tpu.memory_space<vmem>>, %arg12: memref<96x32xf32, #tpu.memory_space<vmem>>, %arg13: memref<96x64xf32, #tpu.memory_space<vmem>>, %arg14: memref<96x32xf32, #tpu.memory_space<vmem>>, %arg15: memref<16x64xf32, #tpu.memory_space<vmem>>, %arg16: memref<16x32xf32, #tpu.memory_space<vmem>>, %arg17: memref<1x64xf32, #tpu.memory_space<vmem>>, %arg18: memref<1x32xf32, #tpu.memory_space<vmem>>, %arg19: memref<1x32xf32, #tpu.memory_space<vmem>>, %arg20: memref<1x1xf32, #tpu.memory_space<vmem>>, %arg21: memref<16x4xf32, #tpu.memory_space<vmem>>) attributes {dimension_semantics = [], scalar_prefetch = 0 : i64, scratch_operands = 0 : i64, tpu.core_type = #tpu.core_type<tc>} {
    %c0 = arith.constant 0 : index
    %c0_0 = arith.constant 0 : index
    %0 = vector.load %arg0[%c0, %c0_0] : memref<16x8xf32, #tpu.memory_space<vmem>>, vector<16x8xf32>
    %c0_1 = arith.constant 0 : index
    %c0_2 = arith.constant 0 : index
    %1 = vector.load %arg1[%c0_1, %c0_2] : memref<16x16xf32, #tpu.memory_space<vmem>>, vector<16x16xf32>
    %c0_3 = arith.constant 0 : index
    %c0_4 = arith.constant 0 : index
    %2 = vector.load %arg2[%c0_3, %c0_4] : memref<16x16xf32, #tpu.memory_space<vmem>>, vector<16x16xf32>
    %c0_5 = arith.constant 0 : index
    %c0_6 = arith.constant 0 : index
    %3 = vector.load %arg3[%c0_5, %c0_6] : memref<3x64xf32, #tpu.memory_space<vmem>>, vector<3x64xf32>
    %c0_7 = arith.constant 0 : index
    %c0_8 = arith.constant 0 : index
    %4 = vector.load %arg4[%c0_7, %c0_8] : memref<3x32xf32, #tpu.memory_space<vmem>>, vector<3x32xf32>
    %c0_9 = arith.constant 0 : index
    %c0_10 = arith.constant 0 : index
    %5 = vector.load %arg5[%c0_9, %c0_10] : memref<96x64xf32, #tpu.memory_space<vmem>>, vector<96x64xf32>
    %c0_11 = arith.constant 0 : index
    %c0_12 = arith.constant 0 : index
    %6 = vector.load %arg6[%c0_11, %c0_12] : memref<96x32xf32, #tpu.memory_space<vmem>>, vector<96x32xf32>
    %c0_13 = arith.constant 0 : index
    %c0_14 = arith.constant 0 : index
    %7 = vector.load %arg7[%c0_13, %c0_14] : memref<1x64xf32, #tpu.memory_space<vmem>>, vector<1x64xf32>
    %c0_15 = arith.constant 0 : index
    %c0_16 = arith.constant 0 : index
    %8 = vector.load %arg8[%c0_15, %c0_16] : memref<1x32xf32, #tpu.memory_space<vmem>>, vector<1x32xf32>
    %c0_17 = arith.constant 0 : index
    %c0_18 = arith.constant 0 : index
    %9 = vector.load %arg9[%c0_17, %c0_18] : memref<16x16xf32, #tpu.memory_space<vmem>>, vector<16x16xf32>
    %c0_19 = arith.constant 0 : index
    %c0_20 = arith.constant 0 : index
    %10 = vector.load %arg10[%c0_19, %c0_20] : memref<16x16xf32, #tpu.memory_space<vmem>>, vector<16x16xf32>
    %c0_21 = arith.constant 0 : index
    %c0_22 = arith.constant 0 : index
    %11 = vector.load %arg11[%c0_21, %c0_22] : memref<96x64xf32, #tpu.memory_space<vmem>>, vector<96x64xf32>
    %c0_23 = arith.constant 0 : index
    %c0_24 = arith.constant 0 : index
    %12 = vector.load %arg12[%c0_23, %c0_24] : memref<96x32xf32, #tpu.memory_space<vmem>>, vector<96x32xf32>
    %c0_25 = arith.constant 0 : index
    %c0_26 = arith.constant 0 : index
    %13 = vector.load %arg13[%c0_25, %c0_26] : memref<96x64xf32, #tpu.memory_space<vmem>>, vector<96x64xf32>
    %c0_27 = arith.constant 0 : index
    %c0_28 = arith.constant 0 : index
    %14 = vector.load %arg14[%c0_27, %c0_28] : memref<96x32xf32, #tpu.memory_space<vmem>>, vector<96x32xf32>
    %c0_29 = arith.constant 0 : index
    %c0_30 = arith.constant 0 : index
    %15 = vector.load %arg15[%c0_29, %c0_30] : memref<16x64xf32, #tpu.memory_space<vmem>>, vector<16x64xf32>
    %c0_31 = arith.constant 0 : index
    %c0_32 = arith.constant 0 : index
    %16 = vector.load %arg16[%c0_31, %c0_32] : memref<16x32xf32, #tpu.memory_space<vmem>>, vector<16x32xf32>
    %c0_33 = arith.constant 0 : index
    %c0_34 = arith.constant 0 : index
    %17 = vector.load %arg17[%c0_33, %c0_34] : memref<1x64xf32, #tpu.memory_space<vmem>>, vector<1x64xf32>
    %c0_35 = arith.constant 0 : index
    %c0_36 = arith.constant 0 : index
    %18 = vector.load %arg18[%c0_35, %c0_36] : memref<1x32xf32, #tpu.memory_space<vmem>>, vector<1x32xf32>
    %c0_37 = arith.constant 0 : index
    %c0_38 = arith.constant 0 : index
    %19 = vector.load %arg19[%c0_37, %c0_38] : memref<1x32xf32, #tpu.memory_space<vmem>>, vector<1x32xf32>
    %c0_39 = arith.constant 0 : index
    %c0_40 = arith.constant 0 : index
    %20 = vector.load %arg20[%c0_39, %c0_40] : memref<1x1xf32, #tpu.memory_space<vmem>>, vector<1x1xf32>
    %cst = arith.constant dense<0.000000e+00> : vector<16x8xf32>
    %21 = tpu.matmul %1, %0, %cst {dimension_numbers = #tpu.dot_dimension_numbers<[1], [0], [0], [1], [0, 0, 1, 1], [], []>} : vector<16x16xf32>, vector<16x8xf32>, vector<16x8xf32> -> vector<16x8xf32>
    %cst_41 = arith.constant dense<0.000000e+00> : vector<16x8xf32>
    %22 = tpu.matmul %2, %0, %cst_41 {dimension_numbers = #tpu.dot_dimension_numbers<[1], [0], [0], [1], [0, 0, 1, 1], [], []>} : vector<16x16xf32>, vector<16x8xf32>, vector<16x8xf32> -> vector<16x8xf32>
    %cst_42 = arith.constant 0.000000e+00 : f32
    %23 = vector.broadcast %cst_42 : f32 to vector<16x32xf32>
    %24 = vector.extract_strided_slice %0 {offsets = [0, 0], sizes = [16, 1], strides = [1, 1]} : vector<16x8xf32> to vector<16x1xf32>
    %25 = vector.extract_strided_slice %21 {offsets = [0, 0], sizes = [16, 1], strides = [1, 1]} : vector<16x8xf32> to vector<16x1xf32>
    %26 = vector.extract_strided_slice %22 {offsets = [0, 0], sizes = [16, 1], strides = [1, 1]} : vector<16x8xf32> to vector<16x1xf32>
    %27 = vector.extract_strided_slice %3 {offsets = [0, 0], sizes = [1, 64], strides = [1, 1]} : vector<3x64xf32> to vector<1x64xf32>
    %28 = vector.broadcast %24 : vector<16x1xf32> to vector<16x64xf32>
    %29 = vector.broadcast %27 : vector<1x64xf32> to vector<16x64xf32>
    %30 = arith.mulf %28, %29 : vector<16x64xf32>
    %31 = vector.extract_strided_slice %3 {offsets = [1, 0], sizes = [1, 64], strides = [1, 1]} : vector<3x64xf32> to vector<1x64xf32>
    %32 = vector.broadcast %25 : vector<16x1xf32> to vector<16x64xf32>
    %33 = vector.broadcast %31 : vector<1x64xf32> to vector<16x64xf32>
    %34 = arith.mulf %32, %33 : vector<16x64xf32>
    %35 = arith.addf %30, %34 : vector<16x64xf32>
    %36 = vector.extract_strided_slice %3 {offsets = [2, 0], sizes = [1, 64], strides = [1, 1]} : vector<3x64xf32> to vector<1x64xf32>
    %37 = vector.broadcast %26 : vector<16x1xf32> to vector<16x64xf32>
    %38 = vector.broadcast %36 : vector<1x64xf32> to vector<16x64xf32>
    %39 = arith.mulf %37, %38 : vector<16x64xf32>
    %40 = arith.addf %35, %39 : vector<16x64xf32>
    %41 = vector.extract_strided_slice %4 {offsets = [0, 0], sizes = [1, 32], strides = [1, 1]} : vector<3x32xf32> to vector<1x32xf32>
    %42 = vector.broadcast %24 : vector<16x1xf32> to vector<16x32xf32>
    %43 = vector.broadcast %41 : vector<1x32xf32> to vector<16x32xf32>
    %44 = arith.mulf %42, %43 : vector<16x32xf32>
    %45 = vector.extract_strided_slice %4 {offsets = [1, 0], sizes = [1, 32], strides = [1, 1]} : vector<3x32xf32> to vector<1x32xf32>
    %46 = vector.broadcast %25 : vector<16x1xf32> to vector<16x32xf32>
    %47 = vector.broadcast %45 : vector<1x32xf32> to vector<16x32xf32>
    %48 = arith.mulf %46, %47 : vector<16x32xf32>
    %49 = arith.addf %44, %48 : vector<16x32xf32>
    %50 = vector.extract_strided_slice %4 {offsets = [2, 0], sizes = [1, 32], strides = [1, 1]} : vector<3x32xf32> to vector<1x32xf32>
    %51 = vector.broadcast %26 : vector<16x1xf32> to vector<16x32xf32>
    %52 = vector.broadcast %50 : vector<1x32xf32> to vector<16x32xf32>
    %53 = arith.mulf %51, %52 : vector<16x32xf32>
    %54 = arith.addf %49, %53 : vector<16x32xf32>
    %cst_43 = arith.constant dense<0.000000e+00> : vector<16x32xf32>
    %55 = tpu.matmul %1, %23, %cst_43 {dimension_numbers = #tpu.dot_dimension_numbers<[1], [0], [0], [1], [0, 0, 1, 1], [], []>} : vector<16x16xf32>, vector<16x32xf32>, vector<16x32xf32> -> vector<16x32xf32>
    %cst_44 = arith.constant dense<0.000000e+00> : vector<16x32xf32>
    %56 = tpu.matmul %2, %23, %cst_44 {dimension_numbers = #tpu.dot_dimension_numbers<[1], [0], [0], [1], [0, 0, 1, 1], [], []>} : vector<16x16xf32>, vector<16x32xf32>, vector<16x32xf32> -> vector<16x32xf32>
    %57 = tpu.concatenate %23, %55, %56 in 1 : vector<16x32xf32>, vector<16x32xf32>, vector<16x32xf32> -> vector<16x96xf32>
    %cst_45 = arith.constant dense<0.000000e+00> : vector<16x64xf32>
    %58 = tpu.matmul %57, %5, %cst_45 {dimension_numbers = #tpu.dot_dimension_numbers<[1], [0], [0], [1], [0, 0, 1, 1], [], []>} : vector<16x96xf32>, vector<96x64xf32>, vector<16x64xf32> -> vector<16x64xf32>
    %59 = arith.addf %58, %40 : vector<16x64xf32>
    %60 = vector.broadcast %7 : vector<1x64xf32> to vector<16x64xf32>
    %61 = arith.addf %59, %60 : vector<16x64xf32>
    %62 = arith.negf %61 : vector<16x64xf32>
    %63 = math.exp %62 : vector<16x64xf32>
    %cst_46 = arith.constant 1.000000e+00 : f32
    %64 = vector.broadcast %cst_46 : f32 to vector<16x64xf32>
    %65 = arith.addf %64, %63 : vector<16x64xf32>
    %66 = arith.divf %64, %65 : vector<16x64xf32>
    %67 = vector.extract_strided_slice %66 {offsets = [0, 0], sizes = [16, 32], strides = [1, 1]} : vector<16x64xf32> to vector<16x32xf32>
    %68 = vector.extract_strided_slice %66 {offsets = [0, 32], sizes = [16, 32], strides = [1, 1]} : vector<16x64xf32> to vector<16x32xf32>
    %69 = arith.mulf %67, %23 : vector<16x32xf32>
    %cst_47 = arith.constant dense<0.000000e+00> : vector<16x32xf32>
    %70 = tpu.matmul %1, %69, %cst_47 {dimension_numbers = #tpu.dot_dimension_numbers<[1], [0], [0], [1], [0, 0, 1, 1], [], []>} : vector<16x16xf32>, vector<16x32xf32>, vector<16x32xf32> -> vector<16x32xf32>
    %cst_48 = arith.constant dense<0.000000e+00> : vector<16x32xf32>
    %71 = tpu.matmul %2, %69, %cst_48 {dimension_numbers = #tpu.dot_dimension_numbers<[1], [0], [0], [1], [0, 0, 1, 1], [], []>} : vector<16x16xf32>, vector<16x32xf32>, vector<16x32xf32> -> vector<16x32xf32>
    %72 = tpu.concatenate %69, %70, %71 in 1 : vector<16x32xf32>, vector<16x32xf32>, vector<16x32xf32> -> vector<16x96xf32>
    %cst_49 = arith.constant dense<0.000000e+00> : vector<16x32xf32>
    %73 = tpu.matmul %72, %6, %cst_49 {dimension_numbers = #tpu.dot_dimension_numbers<[1], [0], [0], [1], [0, 0, 1, 1], [], []>} : vector<16x96xf32>, vector<96x32xf32>, vector<16x32xf32> -> vector<16x32xf32>
    %74 = arith.addf %73, %54 : vector<16x32xf32>
    %75 = vector.broadcast %8 : vector<1x32xf32> to vector<16x32xf32>
    %76 = arith.addf %74, %75 : vector<16x32xf32>
    %77 = math.tanh %76 : vector<16x32xf32>
    %78 = arith.mulf %68, %23 : vector<16x32xf32>
    %cst_50 = arith.constant 1.000000e+00 : f32
    %79 = vector.broadcast %cst_50 : f32 to vector<16x32xf32>
    %80 = arith.subf %79, %68 : vector<16x32xf32>
    %81 = arith.mulf %80, %77 : vector<16x32xf32>
    %82 = arith.addf %78, %81 : vector<16x32xf32>
    %83 = vector.extract_strided_slice %0 {offsets = [0, 1], sizes = [16, 1], strides = [1, 1]} : vector<16x8xf32> to vector<16x1xf32>
    %84 = vector.extract_strided_slice %21 {offsets = [0, 1], sizes = [16, 1], strides = [1, 1]} : vector<16x8xf32> to vector<16x1xf32>
    %85 = vector.extract_strided_slice %22 {offsets = [0, 1], sizes = [16, 1], strides = [1, 1]} : vector<16x8xf32> to vector<16x1xf32>
    %86 = vector.extract_strided_slice %3 {offsets = [0, 0], sizes = [1, 64], strides = [1, 1]} : vector<3x64xf32> to vector<1x64xf32>
    %87 = vector.broadcast %83 : vector<16x1xf32> to vector<16x64xf32>
    %88 = vector.broadcast %86 : vector<1x64xf32> to vector<16x64xf32>
    %89 = arith.mulf %87, %88 : vector<16x64xf32>
    %90 = vector.extract_strided_slice %3 {offsets = [1, 0], sizes = [1, 64], strides = [1, 1]} : vector<3x64xf32> to vector<1x64xf32>
    %91 = vector.broadcast %84 : vector<16x1xf32> to vector<16x64xf32>
    %92 = vector.broadcast %90 : vector<1x64xf32> to vector<16x64xf32>
    %93 = arith.mulf %91, %92 : vector<16x64xf32>
    %94 = arith.addf %89, %93 : vector<16x64xf32>
    %95 = vector.extract_strided_slice %3 {offsets = [2, 0], sizes = [1, 64], strides = [1, 1]} : vector<3x64xf32> to vector<1x64xf32>
    %96 = vector.broadcast %85 : vector<16x1xf32> to vector<16x64xf32>
    %97 = vector.broadcast %95 : vector<1x64xf32> to vector<16x64xf32>
    %98 = arith.mulf %96, %97 : vector<16x64xf32>
    %99 = arith.addf %94, %98 : vector<16x64xf32>
    %100 = vector.extract_strided_slice %4 {offsets = [0, 0], sizes = [1, 32], strides = [1, 1]} : vector<3x32xf32> to vector<1x32xf32>
    %101 = vector.broadcast %83 : vector<16x1xf32> to vector<16x32xf32>
    %102 = vector.broadcast %100 : vector<1x32xf32> to vector<16x32xf32>
    %103 = arith.mulf %101, %102 : vector<16x32xf32>
    %104 = vector.extract_strided_slice %4 {offsets = [1, 0], sizes = [1, 32], strides = [1, 1]} : vector<3x32xf32> to vector<1x32xf32>
    %105 = vector.broadcast %84 : vector<16x1xf32> to vector<16x32xf32>
    %106 = vector.broadcast %104 : vector<1x32xf32> to vector<16x32xf32>
    %107 = arith.mulf %105, %106 : vector<16x32xf32>
    %108 = arith.addf %103, %107 : vector<16x32xf32>
    %109 = vector.extract_strided_slice %4 {offsets = [2, 0], sizes = [1, 32], strides = [1, 1]} : vector<3x32xf32> to vector<1x32xf32>
    %110 = vector.broadcast %85 : vector<16x1xf32> to vector<16x32xf32>
    %111 = vector.broadcast %109 : vector<1x32xf32> to vector<16x32xf32>
    %112 = arith.mulf %110, %111 : vector<16x32xf32>
    %113 = arith.addf %108, %112 : vector<16x32xf32>
    %cst_51 = arith.constant dense<0.000000e+00> : vector<16x32xf32>
    %114 = tpu.matmul %1, %82, %cst_51 {dimension_numbers = #tpu.dot_dimension_numbers<[1], [0], [0], [1], [0, 0, 1, 1], [], []>} : vector<16x16xf32>, vector<16x32xf32>, vector<16x32xf32> -> vector<16x32xf32>
    %cst_52 = arith.constant dense<0.000000e+00> : vector<16x32xf32>
    %115 = tpu.matmul %2, %82, %cst_52 {dimension_numbers = #tpu.dot_dimension_numbers<[1], [0], [0], [1], [0, 0, 1, 1], [], []>} : vector<16x16xf32>, vector<16x32xf32>, vector<16x32xf32> -> vector<16x32xf32>
    %116 = tpu.concatenate %82, %114, %115 in 1 : vector<16x32xf32>, vector<16x32xf32>, vector<16x32xf32> -> vector<16x96xf32>
    %cst_53 = arith.constant dense<0.000000e+00> : vector<16x64xf32>
    %117 = tpu.matmul %116, %5, %cst_53 {dimension_numbers = #tpu.dot_dimension_numbers<[1], [0], [0], [1], [0, 0, 1, 1], [], []>} : vector<16x96xf32>, vector<96x64xf32>, vector<16x64xf32> -> vector<16x64xf32>
    %118 = arith.addf %117, %99 : vector<16x64xf32>
    %119 = vector.broadcast %7 : vector<1x64xf32> to vector<16x64xf32>
    %120 = arith.addf %118, %119 : vector<16x64xf32>
    %121 = arith.negf %120 : vector<16x64xf32>
    %122 = math.exp %121 : vector<16x64xf32>
    %cst_54 = arith.constant 1.000000e+00 : f32
    %123 = vector.broadcast %cst_54 : f32 to vector<16x64xf32>
    %124 = arith.addf %123, %122 : vector<16x64xf32>
    %125 = arith.divf %123, %124 : vector<16x64xf32>
    %126 = vector.extract_strided_slice %125 {offsets = [0, 0], sizes = [16, 32], strides = [1, 1]} : vector<16x64xf32> to vector<16x32xf32>
    %127 = vector.extract_strided_slice %125 {offsets = [0, 32], sizes = [16, 32], strides = [1, 1]} : vector<16x64xf32> to vector<16x32xf32>
    %128 = arith.mulf %126, %82 : vector<16x32xf32>
    %cst_55 = arith.constant dense<0.000000e+00> : vector<16x32xf32>
    %129 = tpu.matmul %1, %128, %cst_55 {dimension_numbers = #tpu.dot_dimension_numbers<[1], [0], [0], [1], [0, 0, 1, 1], [], []>} : vector<16x16xf32>, vector<16x32xf32>, vector<16x32xf32> -> vector<16x32xf32>
    %cst_56 = arith.constant dense<0.000000e+00> : vector<16x32xf32>
    %130 = tpu.matmul %2, %128, %cst_56 {dimension_numbers = #tpu.dot_dimension_numbers<[1], [0], [0], [1], [0, 0, 1, 1], [], []>} : vector<16x16xf32>, vector<16x32xf32>, vector<16x32xf32> -> vector<16x32xf32>
    %131 = tpu.concatenate %128, %129, %130 in 1 : vector<16x32xf32>, vector<16x32xf32>, vector<16x32xf32> -> vector<16x96xf32>
    %cst_57 = arith.constant dense<0.000000e+00> : vector<16x32xf32>
    %132 = tpu.matmul %131, %6, %cst_57 {dimension_numbers = #tpu.dot_dimension_numbers<[1], [0], [0], [1], [0, 0, 1, 1], [], []>} : vector<16x96xf32>, vector<96x32xf32>, vector<16x32xf32> -> vector<16x32xf32>
    %133 = arith.addf %132, %113 : vector<16x32xf32>
    %134 = vector.broadcast %8 : vector<1x32xf32> to vector<16x32xf32>
    %135 = arith.addf %133, %134 : vector<16x32xf32>
    %136 = math.tanh %135 : vector<16x32xf32>
    %137 = arith.mulf %127, %82 : vector<16x32xf32>
    %cst_58 = arith.constant 1.000000e+00 : f32
    %138 = vector.broadcast %cst_58 : f32 to vector<16x32xf32>
    %139 = arith.subf %138, %127 : vector<16x32xf32>
    %140 = arith.mulf %139, %136 : vector<16x32xf32>
    %141 = arith.addf %137, %140 : vector<16x32xf32>
    %142 = vector.extract_strided_slice %0 {offsets = [0, 2], sizes = [16, 1], strides = [1, 1]} : vector<16x8xf32> to vector<16x1xf32>
    %143 = vector.extract_strided_slice %21 {offsets = [0, 2], sizes = [16, 1], strides = [1, 1]} : vector<16x8xf32> to vector<16x1xf32>
    %144 = vector.extract_strided_slice %22 {offsets = [0, 2], sizes = [16, 1], strides = [1, 1]} : vector<16x8xf32> to vector<16x1xf32>
    %145 = vector.extract_strided_slice %3 {offsets = [0, 0], sizes = [1, 64], strides = [1, 1]} : vector<3x64xf32> to vector<1x64xf32>
    %146 = vector.broadcast %142 : vector<16x1xf32> to vector<16x64xf32>
    %147 = vector.broadcast %145 : vector<1x64xf32> to vector<16x64xf32>
    %148 = arith.mulf %146, %147 : vector<16x64xf32>
    %149 = vector.extract_strided_slice %3 {offsets = [1, 0], sizes = [1, 64], strides = [1, 1]} : vector<3x64xf32> to vector<1x64xf32>
    %150 = vector.broadcast %143 : vector<16x1xf32> to vector<16x64xf32>
    %151 = vector.broadcast %149 : vector<1x64xf32> to vector<16x64xf32>
    %152 = arith.mulf %150, %151 : vector<16x64xf32>
    %153 = arith.addf %148, %152 : vector<16x64xf32>
    %154 = vector.extract_strided_slice %3 {offsets = [2, 0], sizes = [1, 64], strides = [1, 1]} : vector<3x64xf32> to vector<1x64xf32>
    %155 = vector.broadcast %144 : vector<16x1xf32> to vector<16x64xf32>
    %156 = vector.broadcast %154 : vector<1x64xf32> to vector<16x64xf32>
    %157 = arith.mulf %155, %156 : vector<16x64xf32>
    %158 = arith.addf %153, %157 : vector<16x64xf32>
    %159 = vector.extract_strided_slice %4 {offsets = [0, 0], sizes = [1, 32], strides = [1, 1]} : vector<3x32xf32> to vector<1x32xf32>
    %160 = vector.broadcast %142 : vector<16x1xf32> to vector<16x32xf32>
    %161 = vector.broadcast %159 : vector<1x32xf32> to vector<16x32xf32>
    %162 = arith.mulf %160, %161 : vector<16x32xf32>
    %163 = vector.extract_strided_slice %4 {offsets = [1, 0], sizes = [1, 32], strides = [1, 1]} : vector<3x32xf32> to vector<1x32xf32>
    %164 = vector.broadcast %143 : vector<16x1xf32> to vector<16x32xf32>
    %165 = vector.broadcast %163 : vector<1x32xf32> to vector<16x32xf32>
    %166 = arith.mulf %164, %165 : vector<16x32xf32>
    %167 = arith.addf %162, %166 : vector<16x32xf32>
    %168 = vector.extract_strided_slice %4 {offsets = [2, 0], sizes = [1, 32], strides = [1, 1]} : vector<3x32xf32> to vector<1x32xf32>
    %169 = vector.broadcast %144 : vector<16x1xf32> to vector<16x32xf32>
    %170 = vector.broadcast %168 : vector<1x32xf32> to vector<16x32xf32>
    %171 = arith.mulf %169, %170 : vector<16x32xf32>
    %172 = arith.addf %167, %171 : vector<16x32xf32>
    %cst_59 = arith.constant dense<0.000000e+00> : vector<16x32xf32>
    %173 = tpu.matmul %1, %141, %cst_59 {dimension_numbers = #tpu.dot_dimension_numbers<[1], [0], [0], [1], [0, 0, 1, 1], [], []>} : vector<16x16xf32>, vector<16x32xf32>, vector<16x32xf32> -> vector<16x32xf32>
    %cst_60 = arith.constant dense<0.000000e+00> : vector<16x32xf32>
    %174 = tpu.matmul %2, %141, %cst_60 {dimension_numbers = #tpu.dot_dimension_numbers<[1], [0], [0], [1], [0, 0, 1, 1], [], []>} : vector<16x16xf32>, vector<16x32xf32>, vector<16x32xf32> -> vector<16x32xf32>
    %175 = tpu.concatenate %141, %173, %174 in 1 : vector<16x32xf32>, vector<16x32xf32>, vector<16x32xf32> -> vector<16x96xf32>
    %cst_61 = arith.constant dense<0.000000e+00> : vector<16x64xf32>
    %176 = tpu.matmul %175, %5, %cst_61 {dimension_numbers = #tpu.dot_dimension_numbers<[1], [0], [0], [1], [0, 0, 1, 1], [], []>} : vector<16x96xf32>, vector<96x64xf32>, vector<16x64xf32> -> vector<16x64xf32>
    %177 = arith.addf %176, %158 : vector<16x64xf32>
    %178 = vector.broadcast %7 : vector<1x64xf32> to vector<16x64xf32>
    %179 = arith.addf %177, %178 : vector<16x64xf32>
    %180 = arith.negf %179 : vector<16x64xf32>
    %181 = math.exp %180 : vector<16x64xf32>
    %cst_62 = arith.constant 1.000000e+00 : f32
    %182 = vector.broadcast %cst_62 : f32 to vector<16x64xf32>
    %183 = arith.addf %182, %181 : vector<16x64xf32>
    %184 = arith.divf %182, %183 : vector<16x64xf32>
    %185 = vector.extract_strided_slice %184 {offsets = [0, 0], sizes = [16, 32], strides = [1, 1]} : vector<16x64xf32> to vector<16x32xf32>
    %186 = vector.extract_strided_slice %184 {offsets = [0, 32], sizes = [16, 32], strides = [1, 1]} : vector<16x64xf32> to vector<16x32xf32>
    %187 = arith.mulf %185, %141 : vector<16x32xf32>
    %cst_63 = arith.constant dense<0.000000e+00> : vector<16x32xf32>
    %188 = tpu.matmul %1, %187, %cst_63 {dimension_numbers = #tpu.dot_dimension_numbers<[1], [0], [0], [1], [0, 0, 1, 1], [], []>} : vector<16x16xf32>, vector<16x32xf32>, vector<16x32xf32> -> vector<16x32xf32>
    %cst_64 = arith.constant dense<0.000000e+00> : vector<16x32xf32>
    %189 = tpu.matmul %2, %187, %cst_64 {dimension_numbers = #tpu.dot_dimension_numbers<[1], [0], [0], [1], [0, 0, 1, 1], [], []>} : vector<16x16xf32>, vector<16x32xf32>, vector<16x32xf32> -> vector<16x32xf32>
    %190 = tpu.concatenate %187, %188, %189 in 1 : vector<16x32xf32>, vector<16x32xf32>, vector<16x32xf32> -> vector<16x96xf32>
    %cst_65 = arith.constant dense<0.000000e+00> : vector<16x32xf32>
    %191 = tpu.matmul %190, %6, %cst_65 {dimension_numbers = #tpu.dot_dimension_numbers<[1], [0], [0], [1], [0, 0, 1, 1], [], []>} : vector<16x96xf32>, vector<96x32xf32>, vector<16x32xf32> -> vector<16x32xf32>
    %192 = arith.addf %191, %172 : vector<16x32xf32>
    %193 = vector.broadcast %8 : vector<1x32xf32> to vector<16x32xf32>
    %194 = arith.addf %192, %193 : vector<16x32xf32>
    %195 = math.tanh %194 : vector<16x32xf32>
    %196 = arith.mulf %186, %141 : vector<16x32xf32>
    %cst_66 = arith.constant 1.000000e+00 : f32
    %197 = vector.broadcast %cst_66 : f32 to vector<16x32xf32>
    %198 = arith.subf %197, %186 : vector<16x32xf32>
    %199 = arith.mulf %198, %195 : vector<16x32xf32>
    %200 = arith.addf %196, %199 : vector<16x32xf32>
    %201 = vector.extract_strided_slice %0 {offsets = [0, 3], sizes = [16, 1], strides = [1, 1]} : vector<16x8xf32> to vector<16x1xf32>
    %202 = vector.extract_strided_slice %21 {offsets = [0, 3], sizes = [16, 1], strides = [1, 1]} : vector<16x8xf32> to vector<16x1xf32>
    %203 = vector.extract_strided_slice %22 {offsets = [0, 3], sizes = [16, 1], strides = [1, 1]} : vector<16x8xf32> to vector<16x1xf32>
    %204 = vector.extract_strided_slice %3 {offsets = [0, 0], sizes = [1, 64], strides = [1, 1]} : vector<3x64xf32> to vector<1x64xf32>
    %205 = vector.broadcast %201 : vector<16x1xf32> to vector<16x64xf32>
    %206 = vector.broadcast %204 : vector<1x64xf32> to vector<16x64xf32>
    %207 = arith.mulf %205, %206 : vector<16x64xf32>
    %208 = vector.extract_strided_slice %3 {offsets = [1, 0], sizes = [1, 64], strides = [1, 1]} : vector<3x64xf32> to vector<1x64xf32>
    %209 = vector.broadcast %202 : vector<16x1xf32> to vector<16x64xf32>
    %210 = vector.broadcast %208 : vector<1x64xf32> to vector<16x64xf32>
    %211 = arith.mulf %209, %210 : vector<16x64xf32>
    %212 = arith.addf %207, %211 : vector<16x64xf32>
    %213 = vector.extract_strided_slice %3 {offsets = [2, 0], sizes = [1, 64], strides = [1, 1]} : vector<3x64xf32> to vector<1x64xf32>
    %214 = vector.broadcast %203 : vector<16x1xf32> to vector<16x64xf32>
    %215 = vector.broadcast %213 : vector<1x64xf32> to vector<16x64xf32>
    %216 = arith.mulf %214, %215 : vector<16x64xf32>
    %217 = arith.addf %212, %216 : vector<16x64xf32>
    %218 = vector.extract_strided_slice %4 {offsets = [0, 0], sizes = [1, 32], strides = [1, 1]} : vector<3x32xf32> to vector<1x32xf32>
    %219 = vector.broadcast %201 : vector<16x1xf32> to vector<16x32xf32>
    %220 = vector.broadcast %218 : vector<1x32xf32> to vector<16x32xf32>
    %221 = arith.mulf %219, %220 : vector<16x32xf32>
    %222 = vector.extract_strided_slice %4 {offsets = [1, 0], sizes = [1, 32], strides = [1, 1]} : vector<3x32xf32> to vector<1x32xf32>
    %223 = vector.broadcast %202 : vector<16x1xf32> to vector<16x32xf32>
    %224 = vector.broadcast %222 : vector<1x32xf32> to vector<16x32xf32>
    %225 = arith.mulf %223, %224 : vector<16x32xf32>
    %226 = arith.addf %221, %225 : vector<16x32xf32>
    %227 = vector.extract_strided_slice %4 {offsets = [2, 0], sizes = [1, 32], strides = [1, 1]} : vector<3x32xf32> to vector<1x32xf32>
    %228 = vector.broadcast %203 : vector<16x1xf32> to vector<16x32xf32>
    %229 = vector.broadcast %227 : vector<1x32xf32> to vector<16x32xf32>
    %230 = arith.mulf %228, %229 : vector<16x32xf32>
    %231 = arith.addf %226, %230 : vector<16x32xf32>
    %cst_67 = arith.constant dense<0.000000e+00> : vector<16x32xf32>
    %232 = tpu.matmul %1, %200, %cst_67 {dimension_numbers = #tpu.dot_dimension_numbers<[1], [0], [0], [1], [0, 0, 1, 1], [], []>} : vector<16x16xf32>, vector<16x32xf32>, vector<16x32xf32> -> vector<16x32xf32>
    %cst_68 = arith.constant dense<0.000000e+00> : vector<16x32xf32>
    %233 = tpu.matmul %2, %200, %cst_68 {dimension_numbers = #tpu.dot_dimension_numbers<[1], [0], [0], [1], [0, 0, 1, 1], [], []>} : vector<16x16xf32>, vector<16x32xf32>, vector<16x32xf32> -> vector<16x32xf32>
    %234 = tpu.concatenate %200, %232, %233 in 1 : vector<16x32xf32>, vector<16x32xf32>, vector<16x32xf32> -> vector<16x96xf32>
    %cst_69 = arith.constant dense<0.000000e+00> : vector<16x64xf32>
    %235 = tpu.matmul %234, %5, %cst_69 {dimension_numbers = #tpu.dot_dimension_numbers<[1], [0], [0], [1], [0, 0, 1, 1], [], []>} : vector<16x96xf32>, vector<96x64xf32>, vector<16x64xf32> -> vector<16x64xf32>
    %236 = arith.addf %235, %217 : vector<16x64xf32>
    %237 = vector.broadcast %7 : vector<1x64xf32> to vector<16x64xf32>
    %238 = arith.addf %236, %237 : vector<16x64xf32>
    %239 = arith.negf %238 : vector<16x64xf32>
    %240 = math.exp %239 : vector<16x64xf32>
    %cst_70 = arith.constant 1.000000e+00 : f32
    %241 = vector.broadcast %cst_70 : f32 to vector<16x64xf32>
    %242 = arith.addf %241, %240 : vector<16x64xf32>
    %243 = arith.divf %241, %242 : vector<16x64xf32>
    %244 = vector.extract_strided_slice %243 {offsets = [0, 0], sizes = [16, 32], strides = [1, 1]} : vector<16x64xf32> to vector<16x32xf32>
    %245 = vector.extract_strided_slice %243 {offsets = [0, 32], sizes = [16, 32], strides = [1, 1]} : vector<16x64xf32> to vector<16x32xf32>
    %246 = arith.mulf %244, %200 : vector<16x32xf32>
    %cst_71 = arith.constant dense<0.000000e+00> : vector<16x32xf32>
    %247 = tpu.matmul %1, %246, %cst_71 {dimension_numbers = #tpu.dot_dimension_numbers<[1], [0], [0], [1], [0, 0, 1, 1], [], []>} : vector<16x16xf32>, vector<16x32xf32>, vector<16x32xf32> -> vector<16x32xf32>
    %cst_72 = arith.constant dense<0.000000e+00> : vector<16x32xf32>
    %248 = tpu.matmul %2, %246, %cst_72 {dimension_numbers = #tpu.dot_dimension_numbers<[1], [0], [0], [1], [0, 0, 1, 1], [], []>} : vector<16x16xf32>, vector<16x32xf32>, vector<16x32xf32> -> vector<16x32xf32>
    %249 = tpu.concatenate %246, %247, %248 in 1 : vector<16x32xf32>, vector<16x32xf32>, vector<16x32xf32> -> vector<16x96xf32>
    %cst_73 = arith.constant dense<0.000000e+00> : vector<16x32xf32>
    %250 = tpu.matmul %249, %6, %cst_73 {dimension_numbers = #tpu.dot_dimension_numbers<[1], [0], [0], [1], [0, 0, 1, 1], [], []>} : vector<16x96xf32>, vector<96x32xf32>, vector<16x32xf32> -> vector<16x32xf32>
    %251 = arith.addf %250, %231 : vector<16x32xf32>
    %252 = vector.broadcast %8 : vector<1x32xf32> to vector<16x32xf32>
    %253 = arith.addf %251, %252 : vector<16x32xf32>
    %254 = math.tanh %253 : vector<16x32xf32>
    %255 = arith.mulf %245, %200 : vector<16x32xf32>
    %cst_74 = arith.constant 1.000000e+00 : f32
    %256 = vector.broadcast %cst_74 : f32 to vector<16x32xf32>
    %257 = arith.subf %256, %245 : vector<16x32xf32>
    %258 = arith.mulf %257, %254 : vector<16x32xf32>
    %259 = arith.addf %255, %258 : vector<16x32xf32>
    %260 = vector.extract_strided_slice %0 {offsets = [0, 4], sizes = [16, 1], strides = [1, 1]} : vector<16x8xf32> to vector<16x1xf32>
    %261 = vector.extract_strided_slice %21 {offsets = [0, 4], sizes = [16, 1], strides = [1, 1]} : vector<16x8xf32> to vector<16x1xf32>
    %262 = vector.extract_strided_slice %22 {offsets = [0, 4], sizes = [16, 1], strides = [1, 1]} : vector<16x8xf32> to vector<16x1xf32>
    %263 = vector.extract_strided_slice %3 {offsets = [0, 0], sizes = [1, 64], strides = [1, 1]} : vector<3x64xf32> to vector<1x64xf32>
    %264 = vector.broadcast %260 : vector<16x1xf32> to vector<16x64xf32>
    %265 = vector.broadcast %263 : vector<1x64xf32> to vector<16x64xf32>
    %266 = arith.mulf %264, %265 : vector<16x64xf32>
    %267 = vector.extract_strided_slice %3 {offsets = [1, 0], sizes = [1, 64], strides = [1, 1]} : vector<3x64xf32> to vector<1x64xf32>
    %268 = vector.broadcast %261 : vector<16x1xf32> to vector<16x64xf32>
    %269 = vector.broadcast %267 : vector<1x64xf32> to vector<16x64xf32>
    %270 = arith.mulf %268, %269 : vector<16x64xf32>
    %271 = arith.addf %266, %270 : vector<16x64xf32>
    %272 = vector.extract_strided_slice %3 {offsets = [2, 0], sizes = [1, 64], strides = [1, 1]} : vector<3x64xf32> to vector<1x64xf32>
    %273 = vector.broadcast %262 : vector<16x1xf32> to vector<16x64xf32>
    %274 = vector.broadcast %272 : vector<1x64xf32> to vector<16x64xf32>
    %275 = arith.mulf %273, %274 : vector<16x64xf32>
    %276 = arith.addf %271, %275 : vector<16x64xf32>
    %277 = vector.extract_strided_slice %4 {offsets = [0, 0], sizes = [1, 32], strides = [1, 1]} : vector<3x32xf32> to vector<1x32xf32>
    %278 = vector.broadcast %260 : vector<16x1xf32> to vector<16x32xf32>
    %279 = vector.broadcast %277 : vector<1x32xf32> to vector<16x32xf32>
    %280 = arith.mulf %278, %279 : vector<16x32xf32>
    %281 = vector.extract_strided_slice %4 {offsets = [1, 0], sizes = [1, 32], strides = [1, 1]} : vector<3x32xf32> to vector<1x32xf32>
    %282 = vector.broadcast %261 : vector<16x1xf32> to vector<16x32xf32>
    %283 = vector.broadcast %281 : vector<1x32xf32> to vector<16x32xf32>
    %284 = arith.mulf %282, %283 : vector<16x32xf32>
    %285 = arith.addf %280, %284 : vector<16x32xf32>
    %286 = vector.extract_strided_slice %4 {offsets = [2, 0], sizes = [1, 32], strides = [1, 1]} : vector<3x32xf32> to vector<1x32xf32>
    %287 = vector.broadcast %262 : vector<16x1xf32> to vector<16x32xf32>
    %288 = vector.broadcast %286 : vector<1x32xf32> to vector<16x32xf32>
    %289 = arith.mulf %287, %288 : vector<16x32xf32>
    %290 = arith.addf %285, %289 : vector<16x32xf32>
    %cst_75 = arith.constant dense<0.000000e+00> : vector<16x32xf32>
    %291 = tpu.matmul %1, %259, %cst_75 {dimension_numbers = #tpu.dot_dimension_numbers<[1], [0], [0], [1], [0, 0, 1, 1], [], []>} : vector<16x16xf32>, vector<16x32xf32>, vector<16x32xf32> -> vector<16x32xf32>
    %cst_76 = arith.constant dense<0.000000e+00> : vector<16x32xf32>
    %292 = tpu.matmul %2, %259, %cst_76 {dimension_numbers = #tpu.dot_dimension_numbers<[1], [0], [0], [1], [0, 0, 1, 1], [], []>} : vector<16x16xf32>, vector<16x32xf32>, vector<16x32xf32> -> vector<16x32xf32>
    %293 = tpu.concatenate %259, %291, %292 in 1 : vector<16x32xf32>, vector<16x32xf32>, vector<16x32xf32> -> vector<16x96xf32>
    %cst_77 = arith.constant dense<0.000000e+00> : vector<16x64xf32>
    %294 = tpu.matmul %293, %5, %cst_77 {dimension_numbers = #tpu.dot_dimension_numbers<[1], [0], [0], [1], [0, 0, 1, 1], [], []>} : vector<16x96xf32>, vector<96x64xf32>, vector<16x64xf32> -> vector<16x64xf32>
    %295 = arith.addf %294, %276 : vector<16x64xf32>
    %296 = vector.broadcast %7 : vector<1x64xf32> to vector<16x64xf32>
    %297 = arith.addf %295, %296 : vector<16x64xf32>
    %298 = arith.negf %297 : vector<16x64xf32>
    %299 = math.exp %298 : vector<16x64xf32>
    %cst_78 = arith.constant 1.000000e+00 : f32
    %300 = vector.broadcast %cst_78 : f32 to vector<16x64xf32>
    %301 = arith.addf %300, %299 : vector<16x64xf32>
    %302 = arith.divf %300, %301 : vector<16x64xf32>
    %303 = vector.extract_strided_slice %302 {offsets = [0, 0], sizes = [16, 32], strides = [1, 1]} : vector<16x64xf32> to vector<16x32xf32>
    %304 = vector.extract_strided_slice %302 {offsets = [0, 32], sizes = [16, 32], strides = [1, 1]} : vector<16x64xf32> to vector<16x32xf32>
    %305 = arith.mulf %303, %259 : vector<16x32xf32>
    %cst_79 = arith.constant dense<0.000000e+00> : vector<16x32xf32>
    %306 = tpu.matmul %1, %305, %cst_79 {dimension_numbers = #tpu.dot_dimension_numbers<[1], [0], [0], [1], [0, 0, 1, 1], [], []>} : vector<16x16xf32>, vector<16x32xf32>, vector<16x32xf32> -> vector<16x32xf32>
    %cst_80 = arith.constant dense<0.000000e+00> : vector<16x32xf32>
    %307 = tpu.matmul %2, %305, %cst_80 {dimension_numbers = #tpu.dot_dimension_numbers<[1], [0], [0], [1], [0, 0, 1, 1], [], []>} : vector<16x16xf32>, vector<16x32xf32>, vector<16x32xf32> -> vector<16x32xf32>
    %308 = tpu.concatenate %305, %306, %307 in 1 : vector<16x32xf32>, vector<16x32xf32>, vector<16x32xf32> -> vector<16x96xf32>
    %cst_81 = arith.constant dense<0.000000e+00> : vector<16x32xf32>
    %309 = tpu.matmul %308, %6, %cst_81 {dimension_numbers = #tpu.dot_dimension_numbers<[1], [0], [0], [1], [0, 0, 1, 1], [], []>} : vector<16x96xf32>, vector<96x32xf32>, vector<16x32xf32> -> vector<16x32xf32>
    %310 = arith.addf %309, %290 : vector<16x32xf32>
    %311 = vector.broadcast %8 : vector<1x32xf32> to vector<16x32xf32>
    %312 = arith.addf %310, %311 : vector<16x32xf32>
    %313 = math.tanh %312 : vector<16x32xf32>
    %314 = arith.mulf %304, %259 : vector<16x32xf32>
    %cst_82 = arith.constant 1.000000e+00 : f32
    %315 = vector.broadcast %cst_82 : f32 to vector<16x32xf32>
    %316 = arith.subf %315, %304 : vector<16x32xf32>
    %317 = arith.mulf %316, %313 : vector<16x32xf32>
    %318 = arith.addf %314, %317 : vector<16x32xf32>
    %319 = vector.extract_strided_slice %0 {offsets = [0, 5], sizes = [16, 1], strides = [1, 1]} : vector<16x8xf32> to vector<16x1xf32>
    %320 = vector.extract_strided_slice %21 {offsets = [0, 5], sizes = [16, 1], strides = [1, 1]} : vector<16x8xf32> to vector<16x1xf32>
    %321 = vector.extract_strided_slice %22 {offsets = [0, 5], sizes = [16, 1], strides = [1, 1]} : vector<16x8xf32> to vector<16x1xf32>
    %322 = vector.extract_strided_slice %3 {offsets = [0, 0], sizes = [1, 64], strides = [1, 1]} : vector<3x64xf32> to vector<1x64xf32>
    %323 = vector.broadcast %319 : vector<16x1xf32> to vector<16x64xf32>
    %324 = vector.broadcast %322 : vector<1x64xf32> to vector<16x64xf32>
    %325 = arith.mulf %323, %324 : vector<16x64xf32>
    %326 = vector.extract_strided_slice %3 {offsets = [1, 0], sizes = [1, 64], strides = [1, 1]} : vector<3x64xf32> to vector<1x64xf32>
    %327 = vector.broadcast %320 : vector<16x1xf32> to vector<16x64xf32>
    %328 = vector.broadcast %326 : vector<1x64xf32> to vector<16x64xf32>
    %329 = arith.mulf %327, %328 : vector<16x64xf32>
    %330 = arith.addf %325, %329 : vector<16x64xf32>
    %331 = vector.extract_strided_slice %3 {offsets = [2, 0], sizes = [1, 64], strides = [1, 1]} : vector<3x64xf32> to vector<1x64xf32>
    %332 = vector.broadcast %321 : vector<16x1xf32> to vector<16x64xf32>
    %333 = vector.broadcast %331 : vector<1x64xf32> to vector<16x64xf32>
    %334 = arith.mulf %332, %333 : vector<16x64xf32>
    %335 = arith.addf %330, %334 : vector<16x64xf32>
    %336 = vector.extract_strided_slice %4 {offsets = [0, 0], sizes = [1, 32], strides = [1, 1]} : vector<3x32xf32> to vector<1x32xf32>
    %337 = vector.broadcast %319 : vector<16x1xf32> to vector<16x32xf32>
    %338 = vector.broadcast %336 : vector<1x32xf32> to vector<16x32xf32>
    %339 = arith.mulf %337, %338 : vector<16x32xf32>
    %340 = vector.extract_strided_slice %4 {offsets = [1, 0], sizes = [1, 32], strides = [1, 1]} : vector<3x32xf32> to vector<1x32xf32>
    %341 = vector.broadcast %320 : vector<16x1xf32> to vector<16x32xf32>
    %342 = vector.broadcast %340 : vector<1x32xf32> to vector<16x32xf32>
    %343 = arith.mulf %341, %342 : vector<16x32xf32>
    %344 = arith.addf %339, %343 : vector<16x32xf32>
    %345 = vector.extract_strided_slice %4 {offsets = [2, 0], sizes = [1, 32], strides = [1, 1]} : vector<3x32xf32> to vector<1x32xf32>
    %346 = vector.broadcast %321 : vector<16x1xf32> to vector<16x32xf32>
    %347 = vector.broadcast %345 : vector<1x32xf32> to vector<16x32xf32>
    %348 = arith.mulf %346, %347 : vector<16x32xf32>
    %349 = arith.addf %344, %348 : vector<16x32xf32>
    %cst_83 = arith.constant dense<0.000000e+00> : vector<16x32xf32>
    %350 = tpu.matmul %1, %318, %cst_83 {dimension_numbers = #tpu.dot_dimension_numbers<[1], [0], [0], [1], [0, 0, 1, 1], [], []>} : vector<16x16xf32>, vector<16x32xf32>, vector<16x32xf32> -> vector<16x32xf32>
    %cst_84 = arith.constant dense<0.000000e+00> : vector<16x32xf32>
    %351 = tpu.matmul %2, %318, %cst_84 {dimension_numbers = #tpu.dot_dimension_numbers<[1], [0], [0], [1], [0, 0, 1, 1], [], []>} : vector<16x16xf32>, vector<16x32xf32>, vector<16x32xf32> -> vector<16x32xf32>
    %352 = tpu.concatenate %318, %350, %351 in 1 : vector<16x32xf32>, vector<16x32xf32>, vector<16x32xf32> -> vector<16x96xf32>
    %cst_85 = arith.constant dense<0.000000e+00> : vector<16x64xf32>
    %353 = tpu.matmul %352, %5, %cst_85 {dimension_numbers = #tpu.dot_dimension_numbers<[1], [0], [0], [1], [0, 0, 1, 1], [], []>} : vector<16x96xf32>, vector<96x64xf32>, vector<16x64xf32> -> vector<16x64xf32>
    %354 = arith.addf %353, %335 : vector<16x64xf32>
    %355 = vector.broadcast %7 : vector<1x64xf32> to vector<16x64xf32>
    %356 = arith.addf %354, %355 : vector<16x64xf32>
    %357 = arith.negf %356 : vector<16x64xf32>
    %358 = math.exp %357 : vector<16x64xf32>
    %cst_86 = arith.constant 1.000000e+00 : f32
    %359 = vector.broadcast %cst_86 : f32 to vector<16x64xf32>
    %360 = arith.addf %359, %358 : vector<16x64xf32>
    %361 = arith.divf %359, %360 : vector<16x64xf32>
    %362 = vector.extract_strided_slice %361 {offsets = [0, 0], sizes = [16, 32], strides = [1, 1]} : vector<16x64xf32> to vector<16x32xf32>
    %363 = vector.extract_strided_slice %361 {offsets = [0, 32], sizes = [16, 32], strides = [1, 1]} : vector<16x64xf32> to vector<16x32xf32>
    %364 = arith.mulf %362, %318 : vector<16x32xf32>
    %cst_87 = arith.constant dense<0.000000e+00> : vector<16x32xf32>
    %365 = tpu.matmul %1, %364, %cst_87 {dimension_numbers = #tpu.dot_dimension_numbers<[1], [0], [0], [1], [0, 0, 1, 1], [], []>} : vector<16x16xf32>, vector<16x32xf32>, vector<16x32xf32> -> vector<16x32xf32>
    %cst_88 = arith.constant dense<0.000000e+00> : vector<16x32xf32>
    %366 = tpu.matmul %2, %364, %cst_88 {dimension_numbers = #tpu.dot_dimension_numbers<[1], [0], [0], [1], [0, 0, 1, 1], [], []>} : vector<16x16xf32>, vector<16x32xf32>, vector<16x32xf32> -> vector<16x32xf32>
    %367 = tpu.concatenate %364, %365, %366 in 1 : vector<16x32xf32>, vector<16x32xf32>, vector<16x32xf32> -> vector<16x96xf32>
    %cst_89 = arith.constant dense<0.000000e+00> : vector<16x32xf32>
    %368 = tpu.matmul %367, %6, %cst_89 {dimension_numbers = #tpu.dot_dimension_numbers<[1], [0], [0], [1], [0, 0, 1, 1], [], []>} : vector<16x96xf32>, vector<96x32xf32>, vector<16x32xf32> -> vector<16x32xf32>
    %369 = arith.addf %368, %349 : vector<16x32xf32>
    %370 = vector.broadcast %8 : vector<1x32xf32> to vector<16x32xf32>
    %371 = arith.addf %369, %370 : vector<16x32xf32>
    %372 = math.tanh %371 : vector<16x32xf32>
    %373 = arith.mulf %363, %318 : vector<16x32xf32>
    %cst_90 = arith.constant 1.000000e+00 : f32
    %374 = vector.broadcast %cst_90 : f32 to vector<16x32xf32>
    %375 = arith.subf %374, %363 : vector<16x32xf32>
    %376 = arith.mulf %375, %372 : vector<16x32xf32>
    %377 = arith.addf %373, %376 : vector<16x32xf32>
    %378 = vector.extract_strided_slice %0 {offsets = [0, 6], sizes = [16, 1], strides = [1, 1]} : vector<16x8xf32> to vector<16x1xf32>
    %379 = vector.extract_strided_slice %21 {offsets = [0, 6], sizes = [16, 1], strides = [1, 1]} : vector<16x8xf32> to vector<16x1xf32>
    %380 = vector.extract_strided_slice %22 {offsets = [0, 6], sizes = [16, 1], strides = [1, 1]} : vector<16x8xf32> to vector<16x1xf32>
    %381 = vector.extract_strided_slice %3 {offsets = [0, 0], sizes = [1, 64], strides = [1, 1]} : vector<3x64xf32> to vector<1x64xf32>
    %382 = vector.broadcast %378 : vector<16x1xf32> to vector<16x64xf32>
    %383 = vector.broadcast %381 : vector<1x64xf32> to vector<16x64xf32>
    %384 = arith.mulf %382, %383 : vector<16x64xf32>
    %385 = vector.extract_strided_slice %3 {offsets = [1, 0], sizes = [1, 64], strides = [1, 1]} : vector<3x64xf32> to vector<1x64xf32>
    %386 = vector.broadcast %379 : vector<16x1xf32> to vector<16x64xf32>
    %387 = vector.broadcast %385 : vector<1x64xf32> to vector<16x64xf32>
    %388 = arith.mulf %386, %387 : vector<16x64xf32>
    %389 = arith.addf %384, %388 : vector<16x64xf32>
    %390 = vector.extract_strided_slice %3 {offsets = [2, 0], sizes = [1, 64], strides = [1, 1]} : vector<3x64xf32> to vector<1x64xf32>
    %391 = vector.broadcast %380 : vector<16x1xf32> to vector<16x64xf32>
    %392 = vector.broadcast %390 : vector<1x64xf32> to vector<16x64xf32>
    %393 = arith.mulf %391, %392 : vector<16x64xf32>
    %394 = arith.addf %389, %393 : vector<16x64xf32>
    %395 = vector.extract_strided_slice %4 {offsets = [0, 0], sizes = [1, 32], strides = [1, 1]} : vector<3x32xf32> to vector<1x32xf32>
    %396 = vector.broadcast %378 : vector<16x1xf32> to vector<16x32xf32>
    %397 = vector.broadcast %395 : vector<1x32xf32> to vector<16x32xf32>
    %398 = arith.mulf %396, %397 : vector<16x32xf32>
    %399 = vector.extract_strided_slice %4 {offsets = [1, 0], sizes = [1, 32], strides = [1, 1]} : vector<3x32xf32> to vector<1x32xf32>
    %400 = vector.broadcast %379 : vector<16x1xf32> to vector<16x32xf32>
    %401 = vector.broadcast %399 : vector<1x32xf32> to vector<16x32xf32>
    %402 = arith.mulf %400, %401 : vector<16x32xf32>
    %403 = arith.addf %398, %402 : vector<16x32xf32>
    %404 = vector.extract_strided_slice %4 {offsets = [2, 0], sizes = [1, 32], strides = [1, 1]} : vector<3x32xf32> to vector<1x32xf32>
    %405 = vector.broadcast %380 : vector<16x1xf32> to vector<16x32xf32>
    %406 = vector.broadcast %404 : vector<1x32xf32> to vector<16x32xf32>
    %407 = arith.mulf %405, %406 : vector<16x32xf32>
    %408 = arith.addf %403, %407 : vector<16x32xf32>
    %cst_91 = arith.constant dense<0.000000e+00> : vector<16x32xf32>
    %409 = tpu.matmul %1, %377, %cst_91 {dimension_numbers = #tpu.dot_dimension_numbers<[1], [0], [0], [1], [0, 0, 1, 1], [], []>} : vector<16x16xf32>, vector<16x32xf32>, vector<16x32xf32> -> vector<16x32xf32>
    %cst_92 = arith.constant dense<0.000000e+00> : vector<16x32xf32>
    %410 = tpu.matmul %2, %377, %cst_92 {dimension_numbers = #tpu.dot_dimension_numbers<[1], [0], [0], [1], [0, 0, 1, 1], [], []>} : vector<16x16xf32>, vector<16x32xf32>, vector<16x32xf32> -> vector<16x32xf32>
    %411 = tpu.concatenate %377, %409, %410 in 1 : vector<16x32xf32>, vector<16x32xf32>, vector<16x32xf32> -> vector<16x96xf32>
    %cst_93 = arith.constant dense<0.000000e+00> : vector<16x64xf32>
    %412 = tpu.matmul %411, %5, %cst_93 {dimension_numbers = #tpu.dot_dimension_numbers<[1], [0], [0], [1], [0, 0, 1, 1], [], []>} : vector<16x96xf32>, vector<96x64xf32>, vector<16x64xf32> -> vector<16x64xf32>
    %413 = arith.addf %412, %394 : vector<16x64xf32>
    %414 = vector.broadcast %7 : vector<1x64xf32> to vector<16x64xf32>
    %415 = arith.addf %413, %414 : vector<16x64xf32>
    %416 = arith.negf %415 : vector<16x64xf32>
    %417 = math.exp %416 : vector<16x64xf32>
    %cst_94 = arith.constant 1.000000e+00 : f32
    %418 = vector.broadcast %cst_94 : f32 to vector<16x64xf32>
    %419 = arith.addf %418, %417 : vector<16x64xf32>
    %420 = arith.divf %418, %419 : vector<16x64xf32>
    %421 = vector.extract_strided_slice %420 {offsets = [0, 0], sizes = [16, 32], strides = [1, 1]} : vector<16x64xf32> to vector<16x32xf32>
    %422 = vector.extract_strided_slice %420 {offsets = [0, 32], sizes = [16, 32], strides = [1, 1]} : vector<16x64xf32> to vector<16x32xf32>
    %423 = arith.mulf %421, %377 : vector<16x32xf32>
    %cst_95 = arith.constant dense<0.000000e+00> : vector<16x32xf32>
    %424 = tpu.matmul %1, %423, %cst_95 {dimension_numbers = #tpu.dot_dimension_numbers<[1], [0], [0], [1], [0, 0, 1, 1], [], []>} : vector<16x16xf32>, vector<16x32xf32>, vector<16x32xf32> -> vector<16x32xf32>
    %cst_96 = arith.constant dense<0.000000e+00> : vector<16x32xf32>
    %425 = tpu.matmul %2, %423, %cst_96 {dimension_numbers = #tpu.dot_dimension_numbers<[1], [0], [0], [1], [0, 0, 1, 1], [], []>} : vector<16x16xf32>, vector<16x32xf32>, vector<16x32xf32> -> vector<16x32xf32>
    %426 = tpu.concatenate %423, %424, %425 in 1 : vector<16x32xf32>, vector<16x32xf32>, vector<16x32xf32> -> vector<16x96xf32>
    %cst_97 = arith.constant dense<0.000000e+00> : vector<16x32xf32>
    %427 = tpu.matmul %426, %6, %cst_97 {dimension_numbers = #tpu.dot_dimension_numbers<[1], [0], [0], [1], [0, 0, 1, 1], [], []>} : vector<16x96xf32>, vector<96x32xf32>, vector<16x32xf32> -> vector<16x32xf32>
    %428 = arith.addf %427, %408 : vector<16x32xf32>
    %429 = vector.broadcast %8 : vector<1x32xf32> to vector<16x32xf32>
    %430 = arith.addf %428, %429 : vector<16x32xf32>
    %431 = math.tanh %430 : vector<16x32xf32>
    %432 = arith.mulf %422, %377 : vector<16x32xf32>
    %cst_98 = arith.constant 1.000000e+00 : f32
    %433 = vector.broadcast %cst_98 : f32 to vector<16x32xf32>
    %434 = arith.subf %433, %422 : vector<16x32xf32>
    %435 = arith.mulf %434, %431 : vector<16x32xf32>
    %436 = arith.addf %432, %435 : vector<16x32xf32>
    %437 = vector.extract_strided_slice %0 {offsets = [0, 7], sizes = [16, 1], strides = [1, 1]} : vector<16x8xf32> to vector<16x1xf32>
    %438 = vector.extract_strided_slice %21 {offsets = [0, 7], sizes = [16, 1], strides = [1, 1]} : vector<16x8xf32> to vector<16x1xf32>
    %439 = vector.extract_strided_slice %22 {offsets = [0, 7], sizes = [16, 1], strides = [1, 1]} : vector<16x8xf32> to vector<16x1xf32>
    %440 = vector.extract_strided_slice %3 {offsets = [0, 0], sizes = [1, 64], strides = [1, 1]} : vector<3x64xf32> to vector<1x64xf32>
    %441 = vector.broadcast %437 : vector<16x1xf32> to vector<16x64xf32>
    %442 = vector.broadcast %440 : vector<1x64xf32> to vector<16x64xf32>
    %443 = arith.mulf %441, %442 : vector<16x64xf32>
    %444 = vector.extract_strided_slice %3 {offsets = [1, 0], sizes = [1, 64], strides = [1, 1]} : vector<3x64xf32> to vector<1x64xf32>
    %445 = vector.broadcast %438 : vector<16x1xf32> to vector<16x64xf32>
    %446 = vector.broadcast %444 : vector<1x64xf32> to vector<16x64xf32>
    %447 = arith.mulf %445, %446 : vector<16x64xf32>
    %448 = arith.addf %443, %447 : vector<16x64xf32>
    %449 = vector.extract_strided_slice %3 {offsets = [2, 0], sizes = [1, 64], strides = [1, 1]} : vector<3x64xf32> to vector<1x64xf32>
    %450 = vector.broadcast %439 : vector<16x1xf32> to vector<16x64xf32>
    %451 = vector.broadcast %449 : vector<1x64xf32> to vector<16x64xf32>
    %452 = arith.mulf %450, %451 : vector<16x64xf32>
    %453 = arith.addf %448, %452 : vector<16x64xf32>
    %454 = vector.extract_strided_slice %4 {offsets = [0, 0], sizes = [1, 32], strides = [1, 1]} : vector<3x32xf32> to vector<1x32xf32>
    %455 = vector.broadcast %437 : vector<16x1xf32> to vector<16x32xf32>
    %456 = vector.broadcast %454 : vector<1x32xf32> to vector<16x32xf32>
    %457 = arith.mulf %455, %456 : vector<16x32xf32>
    %458 = vector.extract_strided_slice %4 {offsets = [1, 0], sizes = [1, 32], strides = [1, 1]} : vector<3x32xf32> to vector<1x32xf32>
    %459 = vector.broadcast %438 : vector<16x1xf32> to vector<16x32xf32>
    %460 = vector.broadcast %458 : vector<1x32xf32> to vector<16x32xf32>
    %461 = arith.mulf %459, %460 : vector<16x32xf32>
    %462 = arith.addf %457, %461 : vector<16x32xf32>
    %463 = vector.extract_strided_slice %4 {offsets = [2, 0], sizes = [1, 32], strides = [1, 1]} : vector<3x32xf32> to vector<1x32xf32>
    %464 = vector.broadcast %439 : vector<16x1xf32> to vector<16x32xf32>
    %465 = vector.broadcast %463 : vector<1x32xf32> to vector<16x32xf32>
    %466 = arith.mulf %464, %465 : vector<16x32xf32>
    %467 = arith.addf %462, %466 : vector<16x32xf32>
    %cst_99 = arith.constant dense<0.000000e+00> : vector<16x32xf32>
    %468 = tpu.matmul %1, %436, %cst_99 {dimension_numbers = #tpu.dot_dimension_numbers<[1], [0], [0], [1], [0, 0, 1, 1], [], []>} : vector<16x16xf32>, vector<16x32xf32>, vector<16x32xf32> -> vector<16x32xf32>
    %cst_100 = arith.constant dense<0.000000e+00> : vector<16x32xf32>
    %469 = tpu.matmul %2, %436, %cst_100 {dimension_numbers = #tpu.dot_dimension_numbers<[1], [0], [0], [1], [0, 0, 1, 1], [], []>} : vector<16x16xf32>, vector<16x32xf32>, vector<16x32xf32> -> vector<16x32xf32>
    %470 = tpu.concatenate %436, %468, %469 in 1 : vector<16x32xf32>, vector<16x32xf32>, vector<16x32xf32> -> vector<16x96xf32>
    %cst_101 = arith.constant dense<0.000000e+00> : vector<16x64xf32>
    %471 = tpu.matmul %470, %5, %cst_101 {dimension_numbers = #tpu.dot_dimension_numbers<[1], [0], [0], [1], [0, 0, 1, 1], [], []>} : vector<16x96xf32>, vector<96x64xf32>, vector<16x64xf32> -> vector<16x64xf32>
    %472 = arith.addf %471, %453 : vector<16x64xf32>
    %473 = vector.broadcast %7 : vector<1x64xf32> to vector<16x64xf32>
    %474 = arith.addf %472, %473 : vector<16x64xf32>
    %475 = arith.negf %474 : vector<16x64xf32>
    %476 = math.exp %475 : vector<16x64xf32>
    %cst_102 = arith.constant 1.000000e+00 : f32
    %477 = vector.broadcast %cst_102 : f32 to vector<16x64xf32>
    %478 = arith.addf %477, %476 : vector<16x64xf32>
    %479 = arith.divf %477, %478 : vector<16x64xf32>
    %480 = vector.extract_strided_slice %479 {offsets = [0, 0], sizes = [16, 32], strides = [1, 1]} : vector<16x64xf32> to vector<16x32xf32>
    %481 = vector.extract_strided_slice %479 {offsets = [0, 32], sizes = [16, 32], strides = [1, 1]} : vector<16x64xf32> to vector<16x32xf32>
    %482 = arith.mulf %480, %436 : vector<16x32xf32>
    %cst_103 = arith.constant dense<0.000000e+00> : vector<16x32xf32>
    %483 = tpu.matmul %1, %482, %cst_103 {dimension_numbers = #tpu.dot_dimension_numbers<[1], [0], [0], [1], [0, 0, 1, 1], [], []>} : vector<16x16xf32>, vector<16x32xf32>, vector<16x32xf32> -> vector<16x32xf32>
    %cst_104 = arith.constant dense<0.000000e+00> : vector<16x32xf32>
    %484 = tpu.matmul %2, %482, %cst_104 {dimension_numbers = #tpu.dot_dimension_numbers<[1], [0], [0], [1], [0, 0, 1, 1], [], []>} : vector<16x16xf32>, vector<16x32xf32>, vector<16x32xf32> -> vector<16x32xf32>
    %485 = tpu.concatenate %482, %483, %484 in 1 : vector<16x32xf32>, vector<16x32xf32>, vector<16x32xf32> -> vector<16x96xf32>
    %cst_105 = arith.constant dense<0.000000e+00> : vector<16x32xf32>
    %486 = tpu.matmul %485, %6, %cst_105 {dimension_numbers = #tpu.dot_dimension_numbers<[1], [0], [0], [1], [0, 0, 1, 1], [], []>} : vector<16x96xf32>, vector<96x32xf32>, vector<16x32xf32> -> vector<16x32xf32>
    %487 = arith.addf %486, %467 : vector<16x32xf32>
    %488 = vector.broadcast %8 : vector<1x32xf32> to vector<16x32xf32>
    %489 = arith.addf %487, %488 : vector<16x32xf32>
    %490 = math.tanh %489 : vector<16x32xf32>
    %491 = arith.mulf %481, %436 : vector<16x32xf32>
    %cst_106 = arith.constant 1.000000e+00 : f32
    %492 = vector.broadcast %cst_106 : f32 to vector<16x32xf32>
    %493 = arith.subf %492, %481 : vector<16x32xf32>
    %494 = arith.mulf %493, %490 : vector<16x32xf32>
    %495 = arith.addf %491, %494 : vector<16x32xf32>
    %496 = arith.addf %11, %13 : vector<96x64xf32>
    %cst_107 = arith.constant dense<0.000000e+00> : vector<16x32xf32>
    %497 = tpu.matmul %9, %495, %cst_107 {dimension_numbers = #tpu.dot_dimension_numbers<[1], [0], [0], [1], [0, 0, 1, 1], [], []>} : vector<16x16xf32>, vector<16x32xf32>, vector<16x32xf32> -> vector<16x32xf32>
    %cst_108 = arith.constant dense<0.000000e+00> : vector<16x32xf32>
    %498 = tpu.matmul %10, %495, %cst_108 {dimension_numbers = #tpu.dot_dimension_numbers<[1], [0], [0], [1], [0, 0, 1, 1], [], []>} : vector<16x16xf32>, vector<16x32xf32>, vector<16x32xf32> -> vector<16x32xf32>
    %499 = tpu.concatenate %495, %497, %498 in 1 : vector<16x32xf32>, vector<16x32xf32>, vector<16x32xf32> -> vector<16x96xf32>
    %cst_109 = arith.constant dense<0.000000e+00> : vector<16x64xf32>
    %500 = tpu.matmul %499, %11, %cst_109 {dimension_numbers = #tpu.dot_dimension_numbers<[1], [0], [0], [1], [0, 0, 1, 1], [], []>} : vector<16x96xf32>, vector<96x64xf32>, vector<16x64xf32> -> vector<16x64xf32>
    %501 = vector.broadcast %17 : vector<1x64xf32> to vector<16x64xf32>
    %502 = arith.addf %500, %501 : vector<16x64xf32>
    %503 = arith.negf %502 : vector<16x64xf32>
    %504 = math.exp %503 : vector<16x64xf32>
    %cst_110 = arith.constant 1.000000e+00 : f32
    %505 = vector.broadcast %cst_110 : f32 to vector<16x64xf32>
    %506 = arith.addf %505, %504 : vector<16x64xf32>
    %507 = arith.divf %505, %506 : vector<16x64xf32>
    %508 = vector.extract_strided_slice %507 {offsets = [0, 0], sizes = [16, 32], strides = [1, 1]} : vector<16x64xf32> to vector<16x32xf32>
    %509 = vector.extract_strided_slice %507 {offsets = [0, 32], sizes = [16, 32], strides = [1, 1]} : vector<16x64xf32> to vector<16x32xf32>
    %510 = arith.mulf %508, %495 : vector<16x32xf32>
    %cst_111 = arith.constant dense<0.000000e+00> : vector<16x32xf32>
    %511 = tpu.matmul %9, %510, %cst_111 {dimension_numbers = #tpu.dot_dimension_numbers<[1], [0], [0], [1], [0, 0, 1, 1], [], []>} : vector<16x16xf32>, vector<16x32xf32>, vector<16x32xf32> -> vector<16x32xf32>
    %cst_112 = arith.constant dense<0.000000e+00> : vector<16x32xf32>
    %512 = tpu.matmul %10, %510, %cst_112 {dimension_numbers = #tpu.dot_dimension_numbers<[1], [0], [0], [1], [0, 0, 1, 1], [], []>} : vector<16x16xf32>, vector<16x32xf32>, vector<16x32xf32> -> vector<16x32xf32>
    %513 = tpu.concatenate %510, %511, %512 in 1 : vector<16x32xf32>, vector<16x32xf32>, vector<16x32xf32> -> vector<16x96xf32>
    %cst_113 = arith.constant dense<0.000000e+00> : vector<16x32xf32>
    %514 = tpu.matmul %513, %12, %cst_113 {dimension_numbers = #tpu.dot_dimension_numbers<[1], [0], [0], [1], [0, 0, 1, 1], [], []>} : vector<16x96xf32>, vector<96x32xf32>, vector<16x32xf32> -> vector<16x32xf32>
    %515 = vector.broadcast %18 : vector<1x32xf32> to vector<16x32xf32>
    %516 = arith.addf %514, %515 : vector<16x32xf32>
    %517 = math.tanh %516 : vector<16x32xf32>
    %518 = arith.mulf %509, %495 : vector<16x32xf32>
    %cst_114 = arith.constant 1.000000e+00 : f32
    %519 = vector.broadcast %cst_114 : f32 to vector<16x32xf32>
    %520 = arith.subf %519, %509 : vector<16x32xf32>
    %521 = arith.mulf %520, %517 : vector<16x32xf32>
    %522 = arith.addf %518, %521 : vector<16x32xf32>
    %523 = vector.broadcast %19 : vector<1x32xf32> to vector<16x32xf32>
    %524 = arith.mulf %522, %523 : vector<16x32xf32>
    %cst_115 = arith.constant dense<0.000000e+00> : vector<16xf32>
    %525 = vector.multi_reduction <add>, %524, %cst_115 [1] : vector<16x32xf32> to vector<16xf32>
    %526 = vector.shape_cast %525 : vector<16xf32> to vector<16x1xf32>
    %527 = vector.broadcast %20 : vector<1x1xf32> to vector<16x1xf32>
    %528 = arith.addf %526, %527 : vector<16x1xf32>
    %cst_116 = arith.constant dense<0.000000e+00> : vector<16x32xf32>
    %529 = tpu.matmul %9, %522, %cst_116 {dimension_numbers = #tpu.dot_dimension_numbers<[1], [0], [0], [1], [0, 0, 1, 1], [], []>} : vector<16x16xf32>, vector<16x32xf32>, vector<16x32xf32> -> vector<16x32xf32>
    %cst_117 = arith.constant dense<0.000000e+00> : vector<16x32xf32>
    %530 = tpu.matmul %10, %522, %cst_117 {dimension_numbers = #tpu.dot_dimension_numbers<[1], [0], [0], [1], [0, 0, 1, 1], [], []>} : vector<16x16xf32>, vector<16x32xf32>, vector<16x32xf32> -> vector<16x32xf32>
    %531 = tpu.concatenate %522, %529, %530 in 1 : vector<16x32xf32>, vector<16x32xf32>, vector<16x32xf32> -> vector<16x96xf32>
    %cst_118 = arith.constant dense<0.000000e+00> : vector<16x64xf32>
    %532 = tpu.matmul %531, %496, %cst_118 {dimension_numbers = #tpu.dot_dimension_numbers<[1], [0], [0], [1], [0, 0, 1, 1], [], []>} : vector<16x96xf32>, vector<96x64xf32>, vector<16x64xf32> -> vector<16x64xf32>
    %533 = arith.addf %532, %15 : vector<16x64xf32>
    %cst_119 = arith.constant dense<0.000000e+00> : vector<16x32xf32>
    %534 = tpu.matmul %531, %14, %cst_119 {dimension_numbers = #tpu.dot_dimension_numbers<[1], [0], [0], [1], [0, 0, 1, 1], [], []>} : vector<16x96xf32>, vector<96x32xf32>, vector<16x32xf32> -> vector<16x32xf32>
    %535 = arith.addf %534, %16 : vector<16x32xf32>
    %536 = arith.negf %533 : vector<16x64xf32>
    %537 = math.exp %536 : vector<16x64xf32>
    %cst_120 = arith.constant 1.000000e+00 : f32
    %538 = vector.broadcast %cst_120 : f32 to vector<16x64xf32>
    %539 = arith.addf %538, %537 : vector<16x64xf32>
    %540 = arith.divf %538, %539 : vector<16x64xf32>
    %541 = vector.extract_strided_slice %540 {offsets = [0, 0], sizes = [16, 32], strides = [1, 1]} : vector<16x64xf32> to vector<16x32xf32>
    %542 = vector.extract_strided_slice %540 {offsets = [0, 32], sizes = [16, 32], strides = [1, 1]} : vector<16x64xf32> to vector<16x32xf32>
    %543 = arith.mulf %541, %522 : vector<16x32xf32>
    %cst_121 = arith.constant dense<0.000000e+00> : vector<16x32xf32>
    %544 = tpu.matmul %9, %543, %cst_121 {dimension_numbers = #tpu.dot_dimension_numbers<[1], [0], [0], [1], [0, 0, 1, 1], [], []>} : vector<16x16xf32>, vector<16x32xf32>, vector<16x32xf32> -> vector<16x32xf32>
    %cst_122 = arith.constant dense<0.000000e+00> : vector<16x32xf32>
    %545 = tpu.matmul %10, %543, %cst_122 {dimension_numbers = #tpu.dot_dimension_numbers<[1], [0], [0], [1], [0, 0, 1, 1], [], []>} : vector<16x16xf32>, vector<16x32xf32>, vector<16x32xf32> -> vector<16x32xf32>
    %546 = tpu.concatenate %543, %544, %545 in 1 : vector<16x32xf32>, vector<16x32xf32>, vector<16x32xf32> -> vector<16x96xf32>
    %cst_123 = arith.constant dense<0.000000e+00> : vector<16x32xf32>
    %547 = tpu.matmul %546, %12, %cst_123 {dimension_numbers = #tpu.dot_dimension_numbers<[1], [0], [0], [1], [0, 0, 1, 1], [], []>} : vector<16x96xf32>, vector<96x32xf32>, vector<16x32xf32> -> vector<16x32xf32>
    %548 = arith.addf %547, %535 : vector<16x32xf32>
    %549 = math.tanh %548 : vector<16x32xf32>
    %550 = arith.mulf %542, %522 : vector<16x32xf32>
    %cst_124 = arith.constant 1.000000e+00 : f32
    %551 = vector.broadcast %cst_124 : f32 to vector<16x32xf32>
    %552 = arith.subf %551, %542 : vector<16x32xf32>
    %553 = arith.mulf %552, %549 : vector<16x32xf32>
    %554 = arith.addf %550, %553 : vector<16x32xf32>
    %555 = vector.broadcast %19 : vector<1x32xf32> to vector<16x32xf32>
    %556 = arith.mulf %554, %555 : vector<16x32xf32>
    %cst_125 = arith.constant dense<0.000000e+00> : vector<16xf32>
    %557 = vector.multi_reduction <add>, %556, %cst_125 [1] : vector<16x32xf32> to vector<16xf32>
    %558 = vector.shape_cast %557 : vector<16xf32> to vector<16x1xf32>
    %559 = vector.broadcast %20 : vector<1x1xf32> to vector<16x1xf32>
    %560 = arith.addf %558, %559 : vector<16x1xf32>
    %cst_126 = arith.constant dense<0.000000e+00> : vector<16x32xf32>
    %561 = tpu.matmul %9, %554, %cst_126 {dimension_numbers = #tpu.dot_dimension_numbers<[1], [0], [0], [1], [0, 0, 1, 1], [], []>} : vector<16x16xf32>, vector<16x32xf32>, vector<16x32xf32> -> vector<16x32xf32>
    %cst_127 = arith.constant dense<0.000000e+00> : vector<16x32xf32>
    %562 = tpu.matmul %10, %554, %cst_127 {dimension_numbers = #tpu.dot_dimension_numbers<[1], [0], [0], [1], [0, 0, 1, 1], [], []>} : vector<16x16xf32>, vector<16x32xf32>, vector<16x32xf32> -> vector<16x32xf32>
    %563 = tpu.concatenate %554, %561, %562 in 1 : vector<16x32xf32>, vector<16x32xf32>, vector<16x32xf32> -> vector<16x96xf32>
    %cst_128 = arith.constant dense<0.000000e+00> : vector<16x64xf32>
    %564 = tpu.matmul %563, %496, %cst_128 {dimension_numbers = #tpu.dot_dimension_numbers<[1], [0], [0], [1], [0, 0, 1, 1], [], []>} : vector<16x96xf32>, vector<96x64xf32>, vector<16x64xf32> -> vector<16x64xf32>
    %565 = arith.addf %564, %15 : vector<16x64xf32>
    %cst_129 = arith.constant dense<0.000000e+00> : vector<16x32xf32>
    %566 = tpu.matmul %563, %14, %cst_129 {dimension_numbers = #tpu.dot_dimension_numbers<[1], [0], [0], [1], [0, 0, 1, 1], [], []>} : vector<16x96xf32>, vector<96x32xf32>, vector<16x32xf32> -> vector<16x32xf32>
    %567 = arith.addf %566, %16 : vector<16x32xf32>
    %568 = arith.negf %565 : vector<16x64xf32>
    %569 = math.exp %568 : vector<16x64xf32>
    %cst_130 = arith.constant 1.000000e+00 : f32
    %570 = vector.broadcast %cst_130 : f32 to vector<16x64xf32>
    %571 = arith.addf %570, %569 : vector<16x64xf32>
    %572 = arith.divf %570, %571 : vector<16x64xf32>
    %573 = vector.extract_strided_slice %572 {offsets = [0, 0], sizes = [16, 32], strides = [1, 1]} : vector<16x64xf32> to vector<16x32xf32>
    %574 = vector.extract_strided_slice %572 {offsets = [0, 32], sizes = [16, 32], strides = [1, 1]} : vector<16x64xf32> to vector<16x32xf32>
    %575 = arith.mulf %573, %554 : vector<16x32xf32>
    %cst_131 = arith.constant dense<0.000000e+00> : vector<16x32xf32>
    %576 = tpu.matmul %9, %575, %cst_131 {dimension_numbers = #tpu.dot_dimension_numbers<[1], [0], [0], [1], [0, 0, 1, 1], [], []>} : vector<16x16xf32>, vector<16x32xf32>, vector<16x32xf32> -> vector<16x32xf32>
    %cst_132 = arith.constant dense<0.000000e+00> : vector<16x32xf32>
    %577 = tpu.matmul %10, %575, %cst_132 {dimension_numbers = #tpu.dot_dimension_numbers<[1], [0], [0], [1], [0, 0, 1, 1], [], []>} : vector<16x16xf32>, vector<16x32xf32>, vector<16x32xf32> -> vector<16x32xf32>
    %578 = tpu.concatenate %575, %576, %577 in 1 : vector<16x32xf32>, vector<16x32xf32>, vector<16x32xf32> -> vector<16x96xf32>
    %cst_133 = arith.constant dense<0.000000e+00> : vector<16x32xf32>
    %579 = tpu.matmul %578, %12, %cst_133 {dimension_numbers = #tpu.dot_dimension_numbers<[1], [0], [0], [1], [0, 0, 1, 1], [], []>} : vector<16x96xf32>, vector<96x32xf32>, vector<16x32xf32> -> vector<16x32xf32>
    %580 = arith.addf %579, %567 : vector<16x32xf32>
    %581 = math.tanh %580 : vector<16x32xf32>
    %582 = arith.mulf %574, %554 : vector<16x32xf32>
    %cst_134 = arith.constant 1.000000e+00 : f32
    %583 = vector.broadcast %cst_134 : f32 to vector<16x32xf32>
    %584 = arith.subf %583, %574 : vector<16x32xf32>
    %585 = arith.mulf %584, %581 : vector<16x32xf32>
    %586 = arith.addf %582, %585 : vector<16x32xf32>
    %587 = vector.broadcast %19 : vector<1x32xf32> to vector<16x32xf32>
    %588 = arith.mulf %586, %587 : vector<16x32xf32>
    %cst_135 = arith.constant dense<0.000000e+00> : vector<16xf32>
    %589 = vector.multi_reduction <add>, %588, %cst_135 [1] : vector<16x32xf32> to vector<16xf32>
    %590 = vector.shape_cast %589 : vector<16xf32> to vector<16x1xf32>
    %591 = vector.broadcast %20 : vector<1x1xf32> to vector<16x1xf32>
    %592 = arith.addf %590, %591 : vector<16x1xf32>
    %cst_136 = arith.constant dense<0.000000e+00> : vector<16x32xf32>
    %593 = tpu.matmul %9, %586, %cst_136 {dimension_numbers = #tpu.dot_dimension_numbers<[1], [0], [0], [1], [0, 0, 1, 1], [], []>} : vector<16x16xf32>, vector<16x32xf32>, vector<16x32xf32> -> vector<16x32xf32>
    %cst_137 = arith.constant dense<0.000000e+00> : vector<16x32xf32>
    %594 = tpu.matmul %10, %586, %cst_137 {dimension_numbers = #tpu.dot_dimension_numbers<[1], [0], [0], [1], [0, 0, 1, 1], [], []>} : vector<16x16xf32>, vector<16x32xf32>, vector<16x32xf32> -> vector<16x32xf32>
    %595 = tpu.concatenate %586, %593, %594 in 1 : vector<16x32xf32>, vector<16x32xf32>, vector<16x32xf32> -> vector<16x96xf32>
    %cst_138 = arith.constant dense<0.000000e+00> : vector<16x64xf32>
    %596 = tpu.matmul %595, %496, %cst_138 {dimension_numbers = #tpu.dot_dimension_numbers<[1], [0], [0], [1], [0, 0, 1, 1], [], []>} : vector<16x96xf32>, vector<96x64xf32>, vector<16x64xf32> -> vector<16x64xf32>
    %597 = arith.addf %596, %15 : vector<16x64xf32>
    %cst_139 = arith.constant dense<0.000000e+00> : vector<16x32xf32>
    %598 = tpu.matmul %595, %14, %cst_139 {dimension_numbers = #tpu.dot_dimension_numbers<[1], [0], [0], [1], [0, 0, 1, 1], [], []>} : vector<16x96xf32>, vector<96x32xf32>, vector<16x32xf32> -> vector<16x32xf32>
    %599 = arith.addf %598, %16 : vector<16x32xf32>
    %600 = arith.negf %597 : vector<16x64xf32>
    %601 = math.exp %600 : vector<16x64xf32>
    %cst_140 = arith.constant 1.000000e+00 : f32
    %602 = vector.broadcast %cst_140 : f32 to vector<16x64xf32>
    %603 = arith.addf %602, %601 : vector<16x64xf32>
    %604 = arith.divf %602, %603 : vector<16x64xf32>
    %605 = vector.extract_strided_slice %604 {offsets = [0, 0], sizes = [16, 32], strides = [1, 1]} : vector<16x64xf32> to vector<16x32xf32>
    %606 = vector.extract_strided_slice %604 {offsets = [0, 32], sizes = [16, 32], strides = [1, 1]} : vector<16x64xf32> to vector<16x32xf32>
    %607 = arith.mulf %605, %586 : vector<16x32xf32>
    %cst_141 = arith.constant dense<0.000000e+00> : vector<16x32xf32>
    %608 = tpu.matmul %9, %607, %cst_141 {dimension_numbers = #tpu.dot_dimension_numbers<[1], [0], [0], [1], [0, 0, 1, 1], [], []>} : vector<16x16xf32>, vector<16x32xf32>, vector<16x32xf32> -> vector<16x32xf32>
    %cst_142 = arith.constant dense<0.000000e+00> : vector<16x32xf32>
    %609 = tpu.matmul %10, %607, %cst_142 {dimension_numbers = #tpu.dot_dimension_numbers<[1], [0], [0], [1], [0, 0, 1, 1], [], []>} : vector<16x16xf32>, vector<16x32xf32>, vector<16x32xf32> -> vector<16x32xf32>
    %610 = tpu.concatenate %607, %608, %609 in 1 : vector<16x32xf32>, vector<16x32xf32>, vector<16x32xf32> -> vector<16x96xf32>
    %cst_143 = arith.constant dense<0.000000e+00> : vector<16x32xf32>
    %611 = tpu.matmul %610, %12, %cst_143 {dimension_numbers = #tpu.dot_dimension_numbers<[1], [0], [0], [1], [0, 0, 1, 1], [], []>} : vector<16x96xf32>, vector<96x32xf32>, vector<16x32xf32> -> vector<16x32xf32>
    %612 = arith.addf %611, %599 : vector<16x32xf32>
    %613 = math.tanh %612 : vector<16x32xf32>
    %614 = arith.mulf %606, %586 : vector<16x32xf32>
    %cst_144 = arith.constant 1.000000e+00 : f32
    %615 = vector.broadcast %cst_144 : f32 to vector<16x32xf32>
    %616 = arith.subf %615, %606 : vector<16x32xf32>
    %617 = arith.mulf %616, %613 : vector<16x32xf32>
    %618 = arith.addf %614, %617 : vector<16x32xf32>
    %619 = vector.broadcast %19 : vector<1x32xf32> to vector<16x32xf32>
    %620 = arith.mulf %618, %619 : vector<16x32xf32>
    %cst_145 = arith.constant dense<0.000000e+00> : vector<16xf32>
    %621 = vector.multi_reduction <add>, %620, %cst_145 [1] : vector<16x32xf32> to vector<16xf32>
    %622 = vector.shape_cast %621 : vector<16xf32> to vector<16x1xf32>
    %623 = vector.broadcast %20 : vector<1x1xf32> to vector<16x1xf32>
    %624 = arith.addf %622, %623 : vector<16x1xf32>
    %625 = tpu.concatenate %528, %560, %592, %624 in 1 : vector<16x1xf32>, vector<16x1xf32>, vector<16x1xf32>, vector<16x1xf32> -> vector<16x4xf32>
    %c0_146 = arith.constant 0 : index
    %c0_147 = arith.constant 0 : index
    %626 = vector.load %arg21[%c0_146, %c0_147] : memref<16x4xf32, #tpu.memory_space<vmem>>, vector<16x4xf32>
    tpu.vector_store %arg21[%c0_146, %c0_147], %625 {strides = array<i32>} : memref<16x4xf32, #tpu.memory_space<vmem>>, vector<16x4xf32>,
    return
  }
}

</mosaic_0001>

<bundles_post_ra>
// kernel: tpu_custom_call.1
= control target key start
LH: loop header
LB: loop body
LE: loop exit
PB: predicated region body
PF: predicated region fallthrough
CT: control target
= control target key end

     0   :  { %vm164_vm0 = vcmask 130048   ;;  %v4346_v0 = vmov 0.0   ;;  %s4347_s29 = smov 32   ;;  %v4349_v23 = vmov 0   ;;  %vm341_vm1 = vcmask 261120   ;;  %s6808_s1 = inlined_call_operand.vmem [shape: f32[16,16], index: 1, kind: input, shape index: {}]   ;;  %s6809_s2 = inlined_call_operand.vmem [shape: f32[16,16], index: 2, kind: input, shape index: {}]   ;;  %s6810_s0 = inlined_call_operand.vmem [shape: f32[16,8], index: 0, kind: input, shape index: {}]   ;;  %s6811_s5 = inlined_call_operand.vmem [shape: f32[96,64], index: 5, kind: input, shape index: {}]   ;;  %s6812_s7 = inlined_call_operand.vmem [shape: f32[1,64], index: 7, kind: input, shape index: {}]   ;;  %s6813_s3 = inlined_call_operand.vmem [shape: f32[3,64], index: 3, kind: input, shape index: {}]   ;;  %s6814_s6 = inlined_call_operand.vmem [shape: f32[96,32], index: 6, kind: input, shape index: {}]   ;;  %s6815_s8 = inlined_call_operand.vmem [shape: f32[1,32], index: 8, kind: input, shape index: {}]   ;;  %s6816_s4 = inlined_call_operand.vmem [shape: f32[3,32], index: 4, kind: input, shape index: {}]   ;;  %s6817_s9 = inlined_call_operand.vmem [shape: f32[16,16], index: 9, kind: input, shape index: {}]   ;;  %s6818_s10 = inlined_call_operand.vmem [shape: f32[16,16], index: 10, kind: input, shape index: {}]   ;;  %s6819_s17 = inlined_call_operand.vmem [shape: f32[1,64], index: 17, kind: input, shape index: {}]   ;;  %s6820_s11 = inlined_call_operand.vmem [shape: f32[96,64], index: 11, kind: input, shape index: {}]   ;;  %s6821_s13 = inlined_call_operand.vmem [shape: f32[96,64], index: 13, kind: input, shape index: {}]   ;;  %s6822_s12 = inlined_call_operand.vmem [shape: f32[96,32], index: 12, kind: input, shape index: {}]   ;;  %s6823_s18 = inlined_call_operand.vmem [shape: f32[1,32], index: 18, kind: input, shape index: {}]   ;;  %s6824_s14 = inlined_call_operand.vmem [shape: f32[96,32], index: 14, kind: input, shape index: {}]   ;;  %s6825_s15 = inlined_call_operand.vmem [shape: f32[16,64], index: 15, kind: input, shape index: {}]   ;;  %s6826_s16 = inlined_call_operand.vmem [shape: f32[16,32], index: 16, kind: input, shape index: {}]   ;;  %s6827_s19 = inlined_call_operand.vmem [shape: f32[1,32], index: 19, kind: input, shape index: {}]   ;;  %s6828_s20 = inlined_call_operand.<no memory space> [shape: f32[1,1], index: 20, kind: input, shape index: {}]   ;;  %s6829_s21 = inlined_call_operand.vmem [shape: f32[16,4], index: 21, kind: output, shape index: {}]  }
   0x1   :  { %6857 = sst [smem:[#allocation11_spill]] %s6808_s1  ;;  %294 = vmatpush.msra.mxu2 %v4346_v0  ;;  %317 = vmatpush.msra.mxu3 %v4346_v0  ;;  %s4348_s1 = smov 64   ;;  %vm344_vm2 = vcmask 523264   ;;  %vm347_vm3 = vcmask 785408  }
   0x2   :  { %6858 = sst [smem:[#allocation12_spill]] %s6809_s2  ;;  %4106 = vset.pattern.permute.xlu1 %v4349_v23  ;;  %4105 = vset.pattern.permute.xlu0 %v4349_v23 }
   0x3   :  { %6859 = sst [smem:[#allocation13_spill]] %s6810_s0  ;;  %4104 = vset.pattern.permute.xlu2 %v4349_v23 }
   0x4   :  { %6860 = sst [smem:[#allocation14_spill]] %s6811_s5 }
   0x5   :  { %6861 = sst [smem:[#allocation15_spill]] %s6812_s7 }
   0x6   :  { %6862 = sst [smem:[#allocation16_spill]] %s6813_s3 }
   0x7   :  { %s6863_s26 = sld [smem:[#allocation11_spill]] }
   0x8   :  { %s6864_s28 = sld [smem:[#allocation12_spill]] }
   0x9   :  { %s6865_s23 = sld [smem:[#allocation13_spill]] }
   0xa   :  { %s6867_s27 = sld [smem:[#allocation14_spill]] }
   0xb   :  { %s6872_s22 = sld [smem:[#allocation16_spill]] }
   0xc   :  { %s6876_s0 = sld [smem:[#allocation15_spill]] }
   0xd   :  { %v4474_v1 = vld [vmem:[%s6863_s26] sm:$0xff]  ;;  %v4488_v3 = vld [vmem:[%s6863_s26 + $0x8] sm:$0xff] }
   0xe   :  { %v4479_v2 = vld [vmem:[%s6864_s28] sm:$0xff]  ;;  %3913 = vmatmul.msk.f32.vlgmr.msra.gmra.mxu2 %vm164_vm0, %v4474_v1  ;;  %v4493_v4 = vld [vmem:[%s6864_s28 + $0x8] sm:$0xff] }
   0xf   :  { %3915 = vmatmul.msk.f32.vlgmr.msra.gmra.mxu3 %vm164_vm0, %v4479_v2  ;;  %v4502_v5 = vld [vmem:[%s6865_s23 + $0x8] sm:$0xff]  ;;  %v4508_v6 = vld [vmem:[%s6865_s23] sm:$0xff] }
  0x10   :  { %185 = vmatpush.msra.mxu0 %v4502_v5  ;;  %6866 = vst [vmem:[#allocation3_spill] sm:$0xff] %v4508_v6  ;;  %214 = vmatpush.msra.mxu1 %v4502_v5  ;;  %v4524_v7 = vld [vmem:[%s6867_s27 + $0x58] sm:$0xff]  ;;  %v4529_v8 = vld [vmem:[%s6867_s27 + $0x50] sm:$0xff]  ;;  %v4535_v9 = vld [vmem:[%s6867_s27 + $0x48] sm:$0xff] }
  0x11   :  { %358 = vmatpush.msrb.mxu2 %v4524_v7  ;;  %v4541_v10 = vld [vmem:[%s6867_s27 + $0x40] sm:$0xff]  ;;  %v4547_v11 = vld [vmem:[%s6867_s27 + $0x38] sm:$0xff]  ;;  %v4553_v12 = vld [vmem:[%s6867_s27 + $0x30] sm:$0xff]  ;;  %230 = vperm.xlu2 %4104, %v4502_v5  }
  0x12   :  { %186 = vmatpush.msra.mxu0 %v4508_v6  ;;  %215 = vmatpush.msra.mxu1 %v4508_v6  ;;  %v4559_v13 = vld [vmem:[%s6867_s27 + $0x28] sm:$0xff]  ;;  %v4570_v18 = vld [vmem:[%s6867_s27 + $0x20] sm:$0xff]  ;;  %v4576_v19 = vld [vmem:[%s6867_s27 + $0x18] sm:$0xff] }
  0x13   :  { %3909 = vmatmul.msk.f32.vlgmr.msra.gmra.mxu0 %vm164_vm0, %v4474_v1  ;;  %3911 = vmatmul.msk.f32.vlgmr.msra.gmra.mxu1 %vm164_vm0, %v4479_v2  ;;  %v4581_v20 = vld [vmem:[%s6867_s27 + $0x10] sm:$0xff]  ;;  %v4587_v21 = vld [vmem:[%s6867_s27 + $0x8] sm:$0xff]  ;;  %v4594_v22 = vld [vmem:[%s6867_s27] sm:$0xff] }
  0x14   :  { %359 = vmatpush.msrb.mxu2 %v4529_v8  ;;  %v76_v38 = vld [vmem:[%s6872_s22] sm:$0x7] }
  0x15   :  { %v4638_v40 = vperm.slane %v76_v38, 0  ;;  %v4640_v41 = vperm.slane %v76_v38, 1  ;;  %v4650_v46 = vperm.slane %v76_v38, 2  ;;  %v4661_v52 = vld [vmem:[%s6876_s0] ss:$0 sm:$0xff] }
  0x16   :  { %3914 = vmatmul.msk.f32.gmra.mxu2 %vm164_vm0, %v4488_v3 }
  0x17   :  { %3916 = vmatmul.msk.f32.gmra.mxu3 %vm164_vm0, %v4493_v4  ;;  %360 = vmatpush.msrb.mxu2 %v4535_v9  ;;  %6873 = vst [vmem:[#allocation8_spill] sm:$0xff] %v4638_v40 }
  0x18   :  { %6874 = vst [vmem:[#allocation9_spill] sm:$0xff] %v4640_v41 }
  0x19   :  { %361 = vmatpush.msrb.mxu2 %v4541_v10  ;;  %6875 = vst [vmem:[#allocation10_spill] sm:$0xff] %v4650_v46 }
  0x1b   :  { %3910 = vmatmul.msk.f32.gmra.mxu0 %vm164_vm0, %v4488_v3  ;;  %3912 = vmatmul.msk.f32.gmra.mxu1 %vm164_vm0, %v4493_v4 }
  0x1c   :  { %362 = vmatpush.msrb.mxu2 %v4547_v11 }
  0x1e   :  { %363 = vmatpush.msrb.mxu2 %v4553_v12 }
  0x20   :  { %364 = vmatpush.msrb.mxu2 %v4559_v13 }
  0x22   :  { %365 = vmatpush.msrb.mxu2 %v4570_v18 }
  0x24   :  { %366 = vmatpush.msrb.mxu2 %v4576_v19 }
  0x26   :  { %367 = vmatpush.msrb.mxu2 %v4581_v20 }
  0x28   :  { %368 = vmatpush.msrb.mxu2 %v4587_v21 }
  0x2a   :  { %369 = vmatpush.msrb.mxu2 %v4594_v22 }
  0x2c   :  { %666 = vmatpush.msra.mxu2 %v4524_v7 }
  0x2e   :  { %667 = vmatpush.msra.mxu2 %v4529_v8 }
  0x30   :  { %668 = vmatpush.msra.mxu2 %v4535_v9 }
  0x32   :  { %669 = vmatpush.msra.mxu2 %v4541_v10 }
  0x34   :  { %670 = vmatpush.msra.mxu2 %v4547_v11 }
  0x36   :  { %671 = vmatpush.msra.mxu2 %v4553_v12 }
  0x38   :  { %672 = vmatpush.msra.mxu2 %v4559_v13 }
  0x3a   :  { %673 = vmatpush.msra.mxu2 %v4570_v18 }
  0x3c   :  { %674 = vmatpush.msra.mxu2 %v4576_v19 }
  0x3e   :  { %675 = vmatpush.msra.mxu2 %v4581_v20 }
  0x40   :  { %676 = vmatpush.msra.mxu2 %v4587_v21 }
  0x42   :  { %677 = vmatpush.msra.mxu2 %v4594_v22 }
  0x6b   :  { %v4629_v36 = vpop.permute.xlu2 %230 }
  0x6c   :  { %v235_v50 = vmul.f32 %v4638_v40, %v4629_v36 }
  0x90   :  { %v4601_v24 = vpop.f32.mrf.mxu0  ;;  %v4607_v25 = vpop.f32.mrf.mxu1 }
  0x91   :  { %v296_v14 = vpop.f32.mrf.mxu2  ;;  %6868 = vst [vmem:[#allocation4_spill] sm:$0xff] %v4601_v24 }
  0x92   :  { %327 = vrot.lane.b32.xlu0 %v296_v14, %s4347_s29  ;;  %v319_v15 = vpop.f32.mrf.mxu3  ;;  %6869 = vst [vmem:[#allocation5_spill] sm:$0xff] %v4607_v25 }
  0x98   :  { %v4610_v26 = vpop.f32.mrf.mxu0  ;;  %v4616_v27 = vpop.f32.mrf.mxu1 }
  0x99   :  { %v299_v16 = vpop.f32.mrf.mxu2  ;;  %6870 = vst [vmem:[#allocation6_spill] sm:$0xff] %v4610_v26  ;;  %243 = vperm.xlu2 %4104, %v4610_v26  }
  0x9a   :  { %335 = vrot.lane.b32.xlu0 %v319_v15, %s4348_s1  ;;  %329 = vrot.lane.b32.xlu1 %v299_v16, %s4347_s29  ;;  %v322_v17 = vpop.f32.mrf.mxu3  ;;  %6871 = vst [vmem:[#allocation7_spill] sm:$0xff] %v4616_v27 }
  0xa1   :  { %258 = vperm.xlu2 %4104, %v4616_v27  }
  0xa2   :  { %337 = vrot.lane.b32.xlu1 %v322_v17, %s4348_s1  ;;  %225 = vperm.xlu0 %4105, %v4508_v6  }
  0xaa   :  { %238 = vperm.xlu1 %4106, %v4601_v24  }
  0xb2   :  { %253 = vperm.xlu1 %4106, %v4607_v25  }
  0xf3   :  { %v4646_v44 = vpop.permute.xlu2 %243 }
  0xf4   :  { %v248_v51 = vmul.f32 %v4640_v41, %v4646_v44 }
  0xf6   :  { %v250_v56 = vadd.f32 %v248_v51, %v235_v50 }
  0xfb   :  { %v4663_v53 = vpop.permute.xlu2 %258 }
  0xfc   :  { %v263_v57 = vmul.f32 %v4650_v46, %v4663_v53 }
  0xfe   :  { %v265_v60 = vadd.f32 %v263_v57, %v250_v56 }
 0x104   :  { %v328_v28 = vpop.permute.xlu0 %327 }
 0x105   :  { %v342_v29 = vsel %vm341_vm1, 0.0, %v328_v28 }
 0x10c   :  { %v336_v30 = vpop.permute.xlu0 %335  ;;  %v330_v31 = vpop.permute.xlu1 %329 }
 0x10d   :  { %v345_v32 = vsel %vm344_vm2, %v342_v29, %v336_v30  ;;  %v343_v33 = vsel %vm341_vm1, 0.0, %v330_v31 }
 0x10e   :  { %3917 = vmatmul.msk.f32.vlgmr.msrb.gmra.mxu2 %vm347_vm3, %v345_v32 }
 0x114   :  { %v338_v34 = vpop.permute.xlu1 %337  ;;  %v4636_v39 = vpop.permute.xlu0 %225 }
 0x115   :  { %v346_v35 = vsel %vm344_vm2, %v343_v33, %v338_v34  ;;  %v234_v43 = vmul.f32 %v4638_v40, %v4636_v39 }
 0x116   :  { %3918 = vmatmul.msk.f32.gmra.mxu2 %vm347_vm3, %v346_v35 }
 0x11c   :  { %v4631_v37 = vpop.permute.xlu1 %238 }
 0x11d   :  { %v247_v42 = vmul.f32 %v4640_v41, %v4631_v37 }
 0x11f   :  { %v249_v47 = vadd.f32 %v247_v42, %v234_v43 }
 0x124   :  { %v4648_v45 = vpop.permute.xlu1 %253 }
 0x125   :  { %v262_v48 = vmul.f32 %v4650_v46, %v4648_v45 }
 0x127   :  { %v264_v49 = vadd.f32 %v262_v48, %v249_v47 }
 0x191   :  { %v371_v54 = vpop.f32.mrf.mxu2 }
 0x192   :  { %v372_v55 = vadd.f32 %v371_v54, %v264_v49 }
 0x194   :  { %v380_v58 = vadd.f32 %v4661_v52, %v372_v55 }
 0x196   :  { %v3919_v59 = vmul.f32 -1.442695, %v380_v58 }
 0x198   :  { %4134 = vpow2.f32 %v3919_v59  ;;  %v4694_v59 = vld [vmem:[%s6814_s6 + $0x58] sm:$0xff] }
 0x199   :  { %v374_v61 = vpop.f32.mrf.mxu2  ;;  %498 = vmatpush.msrb.mxu1 %v4694_v59 }
 0x19a   :  { %v375_v62 = vadd.f32 %v374_v61, %v265_v60  ;;  %v4699_v60 = vld [vmem:[%s6814_s6 + $0x50] sm:$0xff] }
 0x19b   :  { %499 = vmatpush.msrb.mxu1 %v4699_v60 }
 0x19c   :  { %v381_v63 = vadd.f32 %v4661_v52, %v375_v62 }
 0x19e   :  { %v4135_v0 = vpop.eup %4134  ;;  %v3920_v14 = vmul.f32 -1.442695, %v381_v63 }
 0x19f   :  { %v388_v15 = vadd.f32 1.0, %v4135_v0 }
 0x1a0   :  { %4136 = vpow2.f32 %v3920_v14  ;;  %v4710_v14 = vld [vmem:[%s6814_s6 + $0x48] sm:$0xff] }
 0x1a1   :  { %4138 = vrcp.f32 %v388_v15  ;;  %vm395_vm5 = vweird.f32 %v388_v15  ;;  %v401_v38 = vand.u32 2147483648, %v388_v15  ;;  %v399_v47 = vand.u32 2147483647, %v388_v15  ;;  %500 = vmatpush.msrb.mxu1 %v4710_v14 }
 0x1a3   :  { %v402_v51 = vor.u32 1.1754944e-38, %v401_v38  ;;  %vm400_vm11 = vcmp.eq.f32.partialorder %v399_v47, 8.507059e+37 }
 0x1a6   :  { %v4137_v16 = vpop.eup %4136 }
 0x1a7   :  { %v4139_v17 = vpop.eup %4138  ;;  %v389_v23 = vadd.f32 1.0, %v4137_v16  ;;  %v4721_v16 = vld [vmem:[%s6814_s6 + $0x38] sm:$0xff] }
 0x1a8   :  { %v391_v28 = vmul.f32 %v4139_v17, %v388_v15  ;;  %vm396_vm4 = vweird.f32 %v4139_v17  ;;  %v4716_v15 = vld [vmem:[%s6814_s6 + $0x40] sm:$0xff] }
 0x1a9   :  { %4140 = vrcp.f32 %v389_v23  ;;  %v416_v35 = vand.u32 2147483648, %v389_v23  ;;  %v414_v43 = vand.u32 2147483647, %v389_v23  ;;  %vm397_vm7 = vmor %vm395_vm5, %vm396_vm4  ;;  %vm410_vm8 = vweird.f32 %v389_v23  ;;  %501 = vmatpush.msrb.mxu1 %v4716_v15 }
 0x1aa   :  { %v392_v29 = vsub.f32 1.0, %v391_v28  ;;  %v4739_v28 = vld [vmem:[%s6814_s6 + $0x20] sm:$0xff] }
 0x1ab   :  { %v417_v50 = vor.u32 1.1754944e-38, %v416_v35  ;;  %vm415_vm10 = vcmp.eq.f32.partialorder %v414_v43, 8.507059e+37  ;;  %502 = vmatpush.msrb.mxu1 %v4721_v16 }
 0x1ac   :  { %v393_v30 = vmul.f32 %v4139_v17, %v392_v29  ;;  %v4745_v29 = vld [vmem:[%s6814_s6 + $0x18] sm:$0xff] }
 0x1ae   :  { %v394_v34 = vadd.f32 %v4139_v17, %v393_v30  ;;  %v4751_v30 = vld [vmem:[%s6814_s6 + $0x10] sm:$0xff] }
 0x1af   :  { %v4141_v31 = vpop.eup %4140 }
 0x1b0   :  { %v406_v32 = vmul.f32 %v4141_v31, %v389_v23  ;;  %vm411_vm6 = vweird.f32 %v4141_v31  ;;  %v398_v49 = vsel %vm397_vm7, %v4139_v17, %v394_v34  ;;  %v4727_v17 = vld [vmem:[%s6814_s6 + $0x30] sm:$0xff]  ;;  %v4733_v23 = vld [vmem:[%s6814_s6 + $0x28] sm:$0xff] }
 0x1b1   :  { %vm412_vm9 = vmor %vm410_vm8, %vm411_vm6  ;;  %v4671_v56 = vsel %vm400_vm11, %v402_v51, %v398_v49  ;;  %503 = vmatpush.msrb.mxu1 %v4727_v17  ;;  %v77_v49 = vld [vmem:[%s6816_s4] sm:$0x7]  ;;  %s4350_s4 = smov 96  }
 0x1b2   :  { %v407_v33 = vsub.f32 1.0, %v406_v32  ;;  %v4679_v58 = vmul.f32 0.0, %v4671_v56  ;;  %v4764_v32 = vld [vmem:[%s6814_s6] sm:$0xff]  ;;  %v4780_v51 = vperm.slane %v77_v49, 1 }
 0x1b3   :  { %504 = vmatpush.msrb.mxu1 %v4733_v23 }
 0x1b4   :  { %v408_v42 = vmul.f32 %v4141_v31, %v407_v33 }
 0x1b5   :  { %505 = vmatpush.msrb.mxu1 %v4739_v28 }
 0x1b6   :  { %v409_v48 = vadd.f32 %v4141_v31, %v408_v42 }
 0x1b7   :  { %506 = vmatpush.msrb.mxu1 %v4745_v29 }
 0x1b8   :  { %v413_v54 = vsel %vm412_vm9, %v4141_v31, %v409_v48  ;;  %v4757_v31 = vld [vmem:[%s6814_s6 + $0x8] sm:$0xff] }
 0x1b9   :  { %v4669_v55 = vsel %vm415_vm10, %v417_v50, %v413_v54  ;;  %507 = vmatpush.msrb.mxu1 %v4751_v30  ;;  %v4778_v50 = vperm.slane %v77_v49, 0  ;;  %v270_v54 = vmul.f32 %v4780_v51, %v4631_v37 }
 0x1ba   :  { %v4674_v57 = vmul.f32 0.0, %v4669_v55 }
 0x1bb   :  { %508 = vmatpush.msrb.mxu1 %v4757_v31  ;;  %v268_v37 = vmul.f32 %v4778_v50, %v4629_v36  ;;  %v524_v36 = vsub.f32 1.0, %v4671_v56 }
 0x1bc   :  { %436 = vmatpush.msrb.mxu3 %v4674_v57  ;;  %459 = vmatpush.msrb.mxu0 %v4674_v57 }
 0x1bd   :  { %509 = vmatpush.msrb.mxu1 %v4764_v32 }
 0x1be   :  { %437 = vmatpush.msrb.mxu3 %v4679_v58  ;;  %460 = vmatpush.msrb.mxu0 %v4679_v58 }
 0x1bf   :  { %3921 = vmatmul.msk.f32.vlgmr.msrb.gmra.mxu3 %vm164_vm0, %v4474_v1  ;;  %3923 = vmatmul.msk.f32.vlgmr.msrb.gmra.mxu0 %vm164_vm0, %v4479_v2 }
 0x1c7   :  { %3922 = vmatmul.msk.f32.gmra.mxu3 %vm164_vm0, %v4488_v3  ;;  %3924 = vmatmul.msk.f32.gmra.mxu0 %vm164_vm0, %v4493_v4 }
 0x23c   :  { %v462_v61 = vpop.f32.mrf.mxu0 }
 0x23d   :  { %478 = vrot.lane.b32.xlu0 %v462_v61, %s4348_s1  ;;  %v267_v61 = vmul.f32 %v4778_v50, %v4636_v39  ;;  %v271_v39 = vmul.f32 %v4780_v51, %v4646_v44 }
 0x242   :  { %v439_v62 = vpop.f32.mrf.mxu3 }
 0x243   :  { %470 = vrot.lane.b32.xlu2 %v439_v62, %s4347_s29  ;;  %v4786_v62 = vperm.slane %v77_v49, 2 }
 0x244   :  { %v465_v63 = vpop.f32.mrf.mxu0 }
 0x24a   :  { %v442_v0 = vpop.f32.mrf.mxu3 }
 0x24b   :  { %472 = vrot.lane.b32.xlu1 %v442_v0, %s4347_s29  ;;  %480 = vrot.lane.b32.xlu2 %v465_v63, %s4348_s1  ;;  %v272_v63 = vadd.f32 %v270_v54, %v267_v61  ;;  %v275_v0 = vmul.f32 %v4786_v62, %v4648_v45  ;;  %v276_v45 = vmul.f32 %v4786_v62, %v4663_v53  ;;  %v525_v53 = vsub.f32 1.0, %v4669_v55 }
 0x24c   :  { %v4351_v55 = vmov 1  }
 0x24d   :  { %4107 = vset.pattern.permute.xlu2 %v4351_v55  ;;  %4108 = vset.pattern.permute.xlu0 %v4351_v55 }
 0x24e   :  { %4109 = vset.pattern.permute.xlu1 %v4351_v55 }
 0x29d   :  { %v471_v33 = vpop.permute.xlu2 %470 }
 0x29e   :  { %v484_v34 = vsel %vm341_vm1, %v4679_v58, %v471_v33  ;;  %v277_v33 = vadd.f32 %v275_v0, %v272_v63 }
 0x2a5   :  { %v481_v42 = vpop.permute.xlu2 %480 }
 0x2af   :  { %v479_v35 = vpop.permute.xlu0 %478 }
 0x2b0   :  { %v486_v38 = vsel %vm344_vm2, %v484_v34, %v479_v35  ;;  %v4793_v34 = vld [vmem:[%s6815_s8] ss:$0 sm:$0xff] }
 0x2b1   :  { %3925 = vmatmul.msk.f32.vlgmr.msrb.gmra.mxu1 %vm347_vm3, %v486_v38 }
 0x2bd   :  { %v473_v43 = vpop.permute.xlu1 %472 }
 0x2be   :  { %v485_v47 = vsel %vm341_vm1, %v4674_v57, %v473_v43  ;;  %v273_v43 = vadd.f32 %v271_v39, %v268_v37 }
 0x2bf   :  { %v487_v48 = vsel %vm344_vm2, %v485_v47, %v481_v42 }
 0x2c0   :  { %3926 = vmatmul.msk.f32.gmra.mxu1 %vm347_vm3, %v487_v48  ;;  %v278_v48 = vadd.f32 %v276_v45, %v273_v43 }
 0x32e   :  { %v511_v35 = vpop.f32.mrf.mxu1 }
 0x32f   :  { %v512_v38 = vadd.f32 %v511_v35, %v277_v33 }
 0x331   :  { %v520_v42 = vadd.f32 %v4793_v34, %v512_v38 }
 0x333   :  { %4142 = vtanh.f32 %v520_v42 }
 0x339   :  { %v4143_v47 = vpop.eup %4142 }
 0x33a   :  { %528 = vrot.lane.b32.xlu1 %v4143_v47, %s4347_s29 }
 0x33d   :  { %v514_v49 = vpop.f32.mrf.mxu1 }
 0x33e   :  { %v515_v54 = vadd.f32 %v514_v49, %v278_v48 }
 0x340   :  { %v521_v61 = vadd.f32 %v4793_v34, %v515_v54 }
 0x342   :  { %4144 = vtanh.f32 %v521_v61 }
 0x348   :  { %v4145_v63 = vpop.eup %4144 }
 0x349   :  { %530 = vrot.lane.b32.xlu0 %v4145_v63, %s4347_s29 }
 0x3ac   :  { %v529_v0 = vpop.permute.xlu1 %528 }
 0x3ad   :  { %v534_v44 = vmul.f32 %v529_v0, %v524_v36 }
 0x3af   :  { %v4807_v33 = vadd.f32 %v534_v44, %v4679_v58 }
 0x3b1   :  { %584 = vrot.lane.b32.xlu0 %v4807_v33, %s4350_s4 }
 0x3bb   :  { %v531_v35 = vpop.permute.xlu0 %530 }
 0x3bc   :  { %v535_v38 = vmul.f32 %v531_v35, %v525_v53 }
 0x3be   :  { %v4813_v42 = vadd.f32 %v535_v38, %v4674_v57 }
 0x3c0   :  { %586 = vrot.lane.b32.xlu2 %v4813_v42, %s4350_s4 }
 0x41a   :  { %v4817_v56 = vpop.permute.xlu2 %586 }
 0x41b   :  { %604 = vmatpush.msra.mxu1 %v4817_v56  ;;  %4087 = vmatpush.msra.mxu3 %v4817_v56 }
 0x41c   :  { %627 = vmatpush.msra.mxu0 %v4817_v56 }
 0x423   :  { %v4822_v58 = vpop.permute.xlu0 %584 }
 0x424   :  { %605 = vmatpush.msra.mxu1 %v4822_v58  ;;  %4088 = vmatpush.msra.mxu3 %v4822_v58 }
 0x425   :  { %628 = vmatpush.msra.mxu0 %v4822_v58  ;;  %3927 = vmatmul.msk.f32.vlgmr.msra.gmra.mxu1 %vm164_vm0, %v4474_v1 }
 0x426   :  { %3928 = vmatmul.msk.f32.vlgmr.msra.gmra.mxu3 %vm164_vm0, %v4488_v3  ;;  %3929 = vmatmul.msk.f32.vlgmr.msra.gmra.mxu0 %vm164_vm0, %v4479_v2 }
 0x427   :  { %803 = vmatpush.msrb.mxu0 %v4694_v59 }
 0x429   :  { %804 = vmatpush.msrb.mxu0 %v4699_v60 }
 0x42b   :  { %805 = vmatpush.msrb.mxu0 %v4710_v14 }
 0x42d   :  { %806 = vmatpush.msrb.mxu0 %v4716_v15 }
 0x42e   :  { %3930 = vmatmul.msk.f32.gmra.mxu0 %vm164_vm0, %v4493_v4 }
 0x42f   :  { %807 = vmatpush.msrb.mxu0 %v4721_v16 }
 0x431   :  { %808 = vmatpush.msrb.mxu0 %v4727_v17 }
 0x433   :  { %809 = vmatpush.msrb.mxu0 %v4733_v23 }
 0x435   :  { %810 = vmatpush.msrb.mxu0 %v4739_v28 }
 0x437   :  { %811 = vmatpush.msrb.mxu0 %v4745_v29 }
 0x439   :  { %812 = vmatpush.msrb.mxu0 %v4751_v30 }
 0x43b   :  { %813 = vmatpush.msrb.mxu0 %v4757_v31 }
 0x43d   :  { %814 = vmatpush.msrb.mxu0 %v4764_v32 }
 0x4a2   :  { %v607_v57 = vpop.f32.mrf.mxu1 }
 0x4a3   :  { %v630_v37 = vpop.f32.mrf.mxu0  ;;  %638 = vrot.lane.b32.xlu1 %v607_v57, %s4347_s29 }
 0x4a4   :  { %646 = vrot.lane.b32.xlu2 %v630_v37, %s4348_s1 }
 0x4a9   :  { %v610_v39 = vpop.f32.mrf.mxu3 }
 0x4aa   :  { %640 = vrot.lane.b32.xlu0 %v610_v39, %s4347_s29 }
 0x4ab   :  { %v633_v43 = vpop.f32.mrf.mxu0 }
 0x4ac   :  { %543 = vperm.xlu2 %4107, %v4502_v5   ;;  %648 = vrot.lane.b32.xlu1 %v633_v43, %s4348_s1 }
 0x4b2   :  { %553 = vperm.xlu0 %4108, %v4610_v26  }
 0x4b4   :  { %549 = vperm.xlu2 %4107, %v4601_v24   ;;  %539 = vperm.xlu1 %4109, %v4508_v6  }
 0x4bc   :  { %561 = vperm.xlu2 %4107, %v4607_v25   ;;  %565 = vperm.xlu1 %4109, %v4616_v27  }
 0x4fe   :  { %v647_v47 = vpop.permute.xlu2 %646 }
 0x506   :  { %v4865_v0 = vpop.permute.xlu2 %543 }
 0x50e   :  { %v4867_v44 = vpop.permute.xlu2 %549 }
 0x50f   :  { %v556_v38 = vmul.f32 %v4867_v44, %v4640_v41 }
 0x515   :  { %v639_v45 = vpop.permute.xlu1 %638 }
 0x516   :  { %v652_v48 = vsel %vm341_vm1, %v4822_v58, %v639_v45  ;;  %v4875_v55 = vpop.permute.xlu2 %561 }
 0x517   :  { %v654_v49 = vsel %vm344_vm2, %v652_v48, %v647_v47  ;;  %v568_v37 = vmul.f32 %v4875_v55, %v4650_v46  ;;  %v547_v48 = vmul.f32 %v4865_v0, %v4638_v40 }
 0x518   :  { %3931 = vmatmul.msk.f32.vlgmr.msra.gmra.mxu2 %vm347_vm3, %v654_v49 }
 0x51c   :  { %v641_v54 = vpop.permute.xlu0 %640 }
 0x51d   :  { %v653_v61 = vsel %vm341_vm1, %v4817_v56, %v641_v54 }
 0x51e   :  { %v649_v63 = vpop.permute.xlu1 %648 }
 0x51f   :  { %v655_v36 = vsel %vm344_vm2, %v653_v61, %v649_v63 }
 0x520   :  { %3932 = vmatmul.msk.f32.gmra.mxu2 %vm347_vm3, %v655_v36 }
 0x524   :  { %v4879_v39 = vpop.permute.xlu0 %553 }
 0x525   :  { %v557_v49 = vmul.f32 %v4879_v39, %v4640_v41 }
 0x526   :  { %v4869_v53 = vpop.permute.xlu1 %539 }
 0x527   :  { %v546_v35 = vmul.f32 %v4869_v53, %v4638_v40  ;;  %v559_v36 = vadd.f32 %v557_v49, %v547_v48 }
 0x529   :  { %v558_v57 = vadd.f32 %v556_v38, %v546_v35 }
 0x52b   :  { %v570_v43 = vadd.f32 %v568_v37, %v558_v57 }
 0x52e   :  { %v4881_v45 = vpop.permute.xlu1 %565 }
 0x52f   :  { %v569_v61 = vmul.f32 %v4881_v45, %v4650_v46 }
 0x531   :  { %v571_v38 = vadd.f32 %v569_v61, %v559_v36 }
 0x59b   :  { %v679_v47 = vpop.f32.mrf.mxu2 }
 0x59c   :  { %v680_v54 = vadd.f32 %v679_v47, %v570_v43 }
 0x59e   :  { %v685_v63 = vadd.f32 %v4661_v52, %v680_v54 }
 0x5a0   :  { %v3933_v35 = vmul.f32 -1.442695, %v685_v63 }
 0x5a2   :  { %4146 = vpow2.f32 %v3933_v35 }
 0x5a3   :  { %v682_v57 = vpop.f32.mrf.mxu2 }
 0x5a4   :  { %v683_v37 = vadd.f32 %v682_v57, %v571_v38 }
 0x5a6   :  { %v686_v27 = vadd.f32 %v4661_v52, %v683_v37 }
 0x5a8   :  { %v4147_v24 = vpop.eup %4146  ;;  %v3934_v6 = vmul.f32 -1.442695, %v686_v27 }
 0x5a9   :  { %v693_v40 = vadd.f32 1.0, %v4147_v24 }
 0x5aa   :  { %4148 = vpow2.f32 %v3934_v6 }
 0x5ab   :  { %4150 = vrcp.f32 %v693_v40  ;;  %vm700_vm13 = vweird.f32 %v693_v40  ;;  %v706_v35 = vand.u32 2147483648, %v693_v40  ;;  %v704_v6 = vand.u32 2147483647, %v693_v40 }
 0x5ad   :  { %vm705_vm7 = vcmp.eq.f32.partialorder %v704_v6, 8.507059e+37 }
 0x5b0   :  { %v4149_v41 = vpop.eup %4148 }
 0x5b1   :  { %v4151_v43 = vpop.eup %4150  ;;  %v694_v47 = vadd.f32 1.0, %v4149_v41 }
 0x5b2   :  { %v696_v25 = vmul.f32 %v4151_v43, %v693_v40  ;;  %vm701_vm12 = vweird.f32 %v4151_v43 }
 0x5b3   :  { %4152 = vrcp.f32 %v694_v47  ;;  %v721_v36 = vand.u32 2147483648, %v694_v47  ;;  %v719_v24 = vand.u32 2147483647, %v694_v47  ;;  %vm702_vm15 = vmor %vm700_vm13, %vm701_vm12  ;;  %vm715_vm4 = vweird.f32 %v694_v47 }
 0x5b4   :  { %v697_v46 = vsub.f32 1.0, %v696_v25  ;;  %v707_v25 = vor.u32 1.1754944e-38, %v706_v35 }
 0x5b5   :  { %v722_v57 = vor.u32 1.1754944e-38, %v721_v36  ;;  %vm720_vm6 = vcmp.eq.f32.partialorder %v719_v24, 8.507059e+37  ;;  %v575_v36 = vmul.f32 %v4879_v39, %v4780_v51 }
 0x5b6   :  { %v698_v54 = vmul.f32 %v4151_v43, %v697_v46 }
 0x5b8   :  { %v699_v61 = vadd.f32 %v4151_v43, %v698_v54 }
 0x5b9   :  { %v4153_v48 = vpop.eup %4152 }
 0x5ba   :  { %v711_v49 = vmul.f32 %v4153_v48, %v694_v47  ;;  %vm716_vm14 = vweird.f32 %v4153_v48  ;;  %v703_v41 = vsel %vm702_vm15, %v4151_v43, %v699_v61  ;;  %v578_v47 = vmul.f32 %v4875_v55, %v4786_v62 }
 0x5bb   :  { %vm717_vm5 = vmor %vm715_vm4, %vm716_vm14  ;;  %v4893_v54 = vsel %vm705_vm7, %v707_v25, %v703_v41  ;;  %v573_v61 = vmul.f32 %v4865_v0, %v4778_v50 }
 0x5bc   :  { %v712_v63 = vsub.f32 1.0, %v711_v49  ;;  %v725_v40 = vmul.f32 %v4893_v54, %v4822_v58  ;;  %v574_v58 = vmul.f32 %v4867_v44, %v4780_v51  ;;  %v828_v39 = vsub.f32 1.0, %v4893_v54 }
 0x5bd   :  { %v577_v24 = vadd.f32 %v575_v36, %v573_v61  ;;  %v6882_v36 = vld [vmem:[#allocation9_spill] sm:$0xff] }
 0x5be   :  { %v713_v38 = vmul.f32 %v4153_v48, %v712_v63 }
 0x5c0   :  { %v714_v27 = vadd.f32 %v4153_v48, %v713_v38  ;;  %v579_v38 = vmul.f32 %v4881_v45, %v4786_v62  ;;  %v826_v45 = vmul.f32 %v4893_v54, %v4807_v33  ;;  %v6878_v54 = vld [vmem:[#allocation3_spill] sm:$0xff] }
 0x5c2   :  { %v718_v46 = vsel %vm717_vm5, %v4153_v48, %v714_v27  ;;  %v581_v44 = vadd.f32 %v579_v38, %v577_v24  ;;  %v6883_v24 = vld [vmem:[#allocation10_spill] sm:$0xff] }
 0x5c3   :  { %v4891_v37 = vsel %vm720_vm6, %v722_v57, %v718_v46 }
 0x5c4   :  { %v726_v49 = vmul.f32 %v4891_v37, %v4817_v56  ;;  %v572_v56 = vmul.f32 %v4869_v53, %v4778_v50 }
 0x5c6   :  { %741 = vmatpush.msrb.mxu1 %v726_v49  ;;  %764 = vmatpush.msrb.mxu3 %v726_v49  ;;  %v576_v43 = vadd.f32 %v574_v58, %v572_v56 }
 0x5c8   :  { %742 = vmatpush.msrb.mxu1 %v725_v40  ;;  %765 = vmatpush.msrb.mxu3 %v725_v40  ;;  %v580_v48 = vadd.f32 %v578_v47, %v576_v43 }
 0x5c9   :  { %3935 = vmatmul.msk.f32.vlgmr.msrb.gmra.mxu1 %vm164_vm0, %v4474_v1  ;;  %3937 = vmatmul.msk.f32.vlgmr.msrb.gmra.mxu3 %vm164_vm0, %v4479_v2 }
 0x5ca   :  { %970 = vmatpush.msra.mxu3 %v4524_v7 }
 0x5cc   :  { %971 = vmatpush.msra.mxu3 %v4529_v8 }
 0x5ce   :  { %972 = vmatpush.msra.mxu3 %v4535_v9 }
 0x5d0   :  { %973 = vmatpush.msra.mxu3 %v4541_v10 }
 0x5d1   :  { %3936 = vmatmul.msk.f32.gmra.mxu1 %vm164_vm0, %v4488_v3  ;;  %3938 = vmatmul.msk.f32.gmra.mxu3 %vm164_vm0, %v4493_v4 }
 0x5d2   :  { %974 = vmatpush.msra.mxu3 %v4547_v11 }
 0x5d4   :  { %975 = vmatpush.msra.mxu3 %v4553_v12 }
 0x5d6   :  { %976 = vmatpush.msra.mxu3 %v4559_v13 }
 0x5d8   :  { %977 = vmatpush.msra.mxu3 %v4570_v18 }
 0x5da   :  { %978 = vmatpush.msra.mxu3 %v4576_v19 }
 0x5dc   :  { %979 = vmatpush.msra.mxu3 %v4581_v20 }
 0x5de   :  { %980 = vmatpush.msra.mxu3 %v4587_v21 }
 0x5e0   :  { %981 = vmatpush.msra.mxu3 %v4594_v22 }
 0x646   :  { %v744_v7 = vpop.f32.mrf.mxu1 }
 0x647   :  { %775 = vrot.lane.b32.xlu0 %v744_v7, %s4347_s29  ;;  %v827_v7 = vmul.f32 %v4891_v37, %v4813_v42 }
 0x64c   :  { %v767_v8 = vpop.f32.mrf.mxu3 }
 0x64d   :  { %783 = vrot.lane.b32.xlu1 %v767_v8, %s4348_s1 }
 0x64e   :  { %v747_v9 = vpop.f32.mrf.mxu1 }
 0x64f   :  { %777 = vrot.lane.b32.xlu2 %v747_v9, %s4347_s29 }
 0x654   :  { %v770_v10 = vpop.f32.mrf.mxu3 }
 0x655   :  { %785 = vrot.lane.b32.xlu0 %v770_v10, %s4348_s1 }
 0x6a9   :  { %v778_v19 = vpop.permute.xlu2 %777 }
 0x6aa   :  { %v790_v20 = vsel %vm341_vm1, %v726_v49, %v778_v19  ;;  %v829_v49 = vsub.f32 1.0, %v4891_v37  ;;  %v6877_v37 = vld [vmem:[#allocation5_spill] sm:$0xff] }
 0x6b9   :  { %v776_v11 = vpop.permute.xlu0 %775 }
 0x6ba   :  { %v789_v12 = vsel %vm341_vm1, %v725_v40, %v776_v11  ;;  %v6879_v11 = vld [vmem:[#allocation4_spill] sm:$0xff] }
 0x6bf   :  { %v784_v13 = vpop.permute.xlu1 %783 }
 0x6c0   :  { %v791_v18 = vsel %vm344_vm2, %v789_v12, %v784_v13  ;;  %v6880_v12 = vld [vmem:[#allocation7_spill] sm:$0xff] }
 0x6c1   :  { %3939 = vmatmul.msk.f32.vlgmr.msrb.gmra.mxu0 %vm347_vm3, %v791_v18 }
 0x6c7   :  { %v786_v21 = vpop.permute.xlu0 %785 }
 0x6c8   :  { %v792_v22 = vsel %vm344_vm2, %v790_v20, %v786_v21 }
 0x6c9   :  { %3940 = vmatmul.msk.f32.gmra.mxu0 %vm347_vm3, %v792_v22 }
 0x73e   :  { %v816_v63 = vpop.f32.mrf.mxu0 }
 0x73f   :  { %v817_v35 = vadd.f32 %v816_v63, %v580_v48  ;;  %v6881_v63 = vld [vmem:[#allocation8_spill] sm:$0xff] }
 0x741   :  { %v822_v53 = vadd.f32 %v4793_v34, %v817_v35 }
 0x743   :  { %4154 = vtanh.f32 %v822_v53 }
 0x746   :  { %v819_v6 = vpop.f32.mrf.mxu0 }
 0x747   :  { %v820_v27 = vadd.f32 %v819_v6, %v581_v44 }
 0x749   :  { %v4155_v55 = vpop.eup %4154  ;;  %v823_v41 = vadd.f32 %v4793_v34, %v820_v27 }
 0x74a   :  { %832 = vrot.lane.b32.xlu2 %v4155_v55, %s4347_s29 }
 0x74b   :  { %4156 = vtanh.f32 %v823_v41 }
 0x751   :  { %v4157_v0 = vpop.eup %4156 }
 0x752   :  { %834 = vrot.lane.b32.xlu1 %v4157_v0, %s4347_s29 }
 0x7a4   :  { %v833_v57 = vpop.permute.xlu2 %832 }
 0x7a5   :  { %v838_v25 = vmul.f32 %v833_v57, %v828_v39 }
 0x7a7   :  { %v4948_v46 = vadd.f32 %v838_v25, %v826_v45 }
 0x7a9   :  { %888 = vrot.lane.b32.xlu1 %v4948_v46, %s4350_s4 }
 0x7c4   :  { %v835_v40 = vpop.permute.xlu1 %834 }
 0x7c5   :  { %v839_v8 = vmul.f32 %v835_v40, %v829_v49 }
 0x7c7   :  { %v4955_v9 = vadd.f32 %v839_v8, %v827_v7 }
 0x7c9   :  { %890 = vrot.lane.b32.xlu0 %v4955_v9, %s4350_s4 }
 0x81b   :  { %v4963_v33 = vpop.permute.xlu1 %888 }
 0x83b   :  { %v4959_v10 = vpop.permute.xlu0 %890 }
 0x83c   :  { %908 = vmatpush.msra.mxu1 %v4959_v10  ;;  %931 = vmatpush.msrb.mxu2 %v4959_v10 }
 0x83e   :  { %909 = vmatpush.msra.mxu1 %v4963_v33  ;;  %932 = vmatpush.msrb.mxu2 %v4963_v33 }
 0x83f   :  { %3941 = vmatmul.msk.f32.vlgmr.msra.gmra.mxu1 %vm164_vm0, %v4474_v1  ;;  %3943 = vmatmul.msk.f32.vlgmr.msrb.gmra.mxu2 %vm164_vm0, %v4479_v2  ;;  %v4352_v1 = vmov 2  }
 0x840   :  { %1107 = vmatpush.msra.mxu2 %v4694_v59  ;;  %4110 = vset.pattern.permute.xlu0 %v4352_v1 }
 0x841   :  { %4111 = vset.pattern.permute.xlu1 %v4352_v1  ;;  %4112 = vset.pattern.permute.xlu2 %v4352_v1 }
 0x842   :  { %1108 = vmatpush.msra.mxu2 %v4699_v60 }
 0x844   :  { %1109 = vmatpush.msra.mxu2 %v4710_v14 }
 0x846   :  { %1110 = vmatpush.msra.mxu2 %v4716_v15 }
 0x847   :  { %3942 = vmatmul.msk.f32.gmra.mxu1 %vm164_vm0, %v4488_v3  ;;  %3944 = vmatmul.msk.f32.gmra.mxu2 %vm164_vm0, %v4493_v4 }
 0x848   :  { %1111 = vmatpush.msra.mxu2 %v4721_v16 }
 0x84a   :  { %1112 = vmatpush.msra.mxu2 %v4727_v17 }
 0x84c   :  { %1113 = vmatpush.msra.mxu2 %v4733_v23 }
 0x84e   :  { %1114 = vmatpush.msra.mxu2 %v4739_v28 }
 0x850   :  { %1115 = vmatpush.msra.mxu2 %v4745_v29 }
 0x852   :  { %1116 = vmatpush.msra.mxu2 %v4751_v30 }
 0x854   :  { %1117 = vmatpush.msra.mxu2 %v4757_v31 }
 0x856   :  { %1118 = vmatpush.msra.mxu2 %v4764_v32 }
 0x8bc   :  { %v911_v2 = vpop.f32.mrf.mxu1 }
 0x8bd   :  { %942 = vrot.lane.b32.xlu2 %v911_v2, %s4347_s29 }
 0x8c2   :  { %v934_v3 = vpop.f32.mrf.mxu2 }
 0x8c3   :  { %950 = vrot.lane.b32.xlu0 %v934_v3, %s4348_s1 }
 0x8c4   :  { %v914_v4 = vpop.f32.mrf.mxu1 }
 0x8c5   :  { %944 = vrot.lane.b32.xlu1 %v914_v4, %s4347_s29 }
 0x8ca   :  { %v937_v42 = vpop.f32.mrf.mxu2 }
 0x8cb   :  { %847 = vperm.xlu0 %4110, %v4502_v5   ;;  %952 = vrot.lane.b32.xlu2 %v937_v42, %s4348_s1 }
 0x8cd   :  { %857 = vperm.xlu1 %4111, %v4610_v26  }
 0x8d3   :  { %865 = vperm.xlu0 %4110, %v6877_v37   ;;  %843 = vperm.xlu2 %4112, %v6878_v54  }
 0x8d5   :  { %853 = vperm.xlu1 %4111, %v6879_v11  }
 0x8db   :  { %869 = vperm.xlu2 %4112, %v6880_v12  }
 0x917   :  { %v943_v13 = vpop.permute.xlu2 %942 }
 0x918   :  { %v956_v18 = vsel %vm341_vm1, %v4963_v33, %v943_v13 }
 0x925   :  { %v953_v22 = vpop.permute.xlu2 %952 }
 0x92d   :  { %v5011_v48 = vpop.permute.xlu2 %843 }
 0x92e   :  { %v850_v61 = vmul.f32 %v5011_v48, %v6881_v63 }
 0x935   :  { %v951_v19 = vpop.permute.xlu0 %950  ;;  %v5025_v39 = vpop.permute.xlu2 %869 }
 0x936   :  { %v958_v20 = vsel %vm344_vm2, %v956_v18, %v951_v19  ;;  %v873_v25 = vmul.f32 %v5025_v39, %v6883_v24 }
 0x937   :  { %3945 = vmatmul.msk.f32.vlgmr.msra.gmra.mxu3 %vm347_vm3, %v958_v20  ;;  %v945_v5 = vpop.permute.xlu1 %944 }
 0x938   :  { %v957_v21 = vsel %vm341_vm1, %v4959_v10, %v945_v5 }
 0x939   :  { %v959_v56 = vsel %vm344_vm2, %v957_v21, %v953_v22 }
 0x93d   :  { %v5007_v43 = vpop.permute.xlu0 %847 }
 0x93e   :  { %v851_v6 = vmul.f32 %v5007_v43, %v6881_v63 }
 0x93f   :  { %3946 = vmatmul.msk.f32.gmra.mxu3 %vm347_vm3, %v959_v56  ;;  %v5005_v58 = vpop.permute.xlu1 %857 }
 0x940   :  { %v861_v27 = vmul.f32 %v5005_v58, %v6882_v36 }
 0x942   :  { %v863_v57 = vadd.f32 %v861_v27, %v851_v6 }
 0x944   :  { %v875_v40 = vadd.f32 %v873_v25, %v863_v57 }
 0x945   :  { %v5017_v38 = vpop.permute.xlu0 %865 }
 0x946   :  { %v872_v44 = vmul.f32 %v5017_v38, %v6883_v24 }
 0x947   :  { %v5009_v47 = vpop.permute.xlu1 %853 }
 0x948   :  { %v860_v35 = vmul.f32 %v5009_v47, %v6882_v36 }
 0x94a   :  { %v862_v53 = vadd.f32 %v860_v35, %v850_v61 }
 0x94c   :  { %v874_v55 = vadd.f32 %v872_v44, %v862_v53 }
 0x9ba   :  { %v983_v41 = vpop.f32.mrf.mxu3 }
 0x9bb   :  { %v984_v0 = vadd.f32 %v983_v41, %v874_v55 }
 0x9bd   :  { %v989_v45 = vadd.f32 %v4661_v52, %v984_v0 }
 0x9bf   :  { %v3947_v49 = vmul.f32 -1.442695, %v989_v45 }
 0x9c1   :  { %4158 = vpow2.f32 %v3947_v49 }
 0x9c2   :  { %v986_v7 = vpop.f32.mrf.mxu3 }
 0x9c3   :  { %v987_v8 = vadd.f32 %v986_v7, %v875_v40  ;;  %v5042_v40 = vld [vmem:[%s6863_s26] sm:$0xff] }
 0x9c4   :  { %v5049_v7 = vld [vmem:[%s6864_s28] sm:$0xff] }
 0x9c5   :  { %v990_v1 = vadd.f32 %v4661_v52, %v987_v8  ;;  %v5068_v8 = vld [vmem:[%s6867_s27 + $0x48] sm:$0xff] }
 0x9c7   :  { %v4159_v2 = vpop.eup %4158  ;;  %v3948_v3 = vmul.f32 -1.442695, %v990_v1  ;;  %v5074_v1 = vld [vmem:[%s6867_s27 + $0x40] sm:$0xff] }
 0x9c8   :  { %v997_v4 = vadd.f32 1.0, %v4159_v2  ;;  %v5080_v2 = vld [vmem:[%s6863_s26 + $0x8] sm:$0xff] }
 0x9c9   :  { %4160 = vpow2.f32 %v3948_v3  ;;  %v5087_v3 = vld [vmem:[%s6864_s28 + $0x8] sm:$0xff] }
 0x9ca   :  { %4162 = vrcp.f32 %v997_v4  ;;  %vm1004_vm9 = vweird.f32 %v997_v4  ;;  %v1010_v52 = vand.u32 2147483648, %v997_v4  ;;  %v1008_v44 = vand.u32 2147483647, %v997_v4 }
 0x9cc   :  { %v1011_v41 = vor.u32 1.1754944e-38, %v1010_v52  ;;  %vm1009_vm15 = vcmp.eq.f32.partialorder %v1008_v44, 8.507059e+37 }
 0x9cf   :  { %v4161_v42 = vpop.eup %4160 }
 0x9d0   :  { %v4163_v54 = vpop.eup %4162  ;;  %v998_v13 = vadd.f32 1.0, %v4161_v42  ;;  %v5100_v42 = vld [vmem:[%s6867_s27 + $0x30] sm:$0xff] }
 0x9d1   :  { %v1000_v18 = vmul.f32 %v4163_v54, %v997_v4  ;;  %vm1005_vm8 = vweird.f32 %v4163_v54  ;;  %v5094_v4 = vld [vmem:[%s6867_s27 + $0x38] sm:$0xff] }
 0x9d2   :  { %4164 = vrcp.f32 %v998_v13  ;;  %v1025_v61 = vand.u32 2147483648, %v998_v13  ;;  %v1023_v53 = vand.u32 2147483647, %v998_v13  ;;  %vm1006_vm11 = vmor %vm1004_vm9, %vm1005_vm8  ;;  %vm1019_vm12 = vweird.f32 %v998_v13 }
 0x9d3   :  { %v1001_v19 = vsub.f32 1.0, %v1000_v18  ;;  %v5118_v18 = vld [vmem:[%s6867_s27 + $0x18] sm:$0xff] }
 0x9d4   :  { %v1026_v55 = vor.u32 1.1754944e-38, %v1025_v61  ;;  %vm1024_vm14 = vcmp.eq.f32.partialorder %v1023_v53, 8.507059e+37 }
 0x9d5   :  { %v1002_v20 = vmul.f32 %v4163_v54, %v1001_v19  ;;  %v5124_v19 = vld [vmem:[%s6867_s27 + $0x10] sm:$0xff] }
 0x9d7   :  { %v1003_v56 = vadd.f32 %v4163_v54, %v1002_v20  ;;  %v5130_v20 = vld [vmem:[%s6867_s27 + $0x8] sm:$0xff] }
 0x9d8   :  { %v4165_v5 = vpop.eup %4164 }
 0x9d9   :  { %v1015_v21 = vmul.f32 %v4165_v5, %v998_v13  ;;  %vm1020_vm10 = vweird.f32 %v4165_v5  ;;  %v1007_v27 = vsel %vm1006_vm11, %v4163_v54, %v1003_v56  ;;  %v5106_v54 = vld [vmem:[%s6867_s27 + $0x28] sm:$0xff]  ;;  %v5112_v13 = vld [vmem:[%s6867_s27 + $0x20] sm:$0xff] }
 0x9da   :  { %vm1021_vm13 = vmor %vm1019_vm12, %vm1020_vm10  ;;  %v5033_v45 = vsel %vm1009_vm15, %v1011_v41, %v1007_v27 }
 0x9db   :  { %v1016_v22 = vsub.f32 1.0, %v1015_v21  ;;  %v1029_v49 = vmul.f32 %v5033_v45, %v4963_v33  ;;  %v5062_v33 = vld [vmem:[%s6867_s27 + $0x50] sm:$0xff] }
 0x9dd   :  { %v1017_v35 = vmul.f32 %v4165_v5, %v1016_v22 }
 0x9df   :  { %v1018_v6 = vadd.f32 %v4165_v5, %v1017_v35 }
 0x9e1   :  { %v1022_v0 = vsel %vm1021_vm13, %v4165_v5, %v1018_v6  ;;  %v5136_v5 = vld [vmem:[%s6867_s27] sm:$0xff] }
 0x9e2   :  { %v5031_v57 = vsel %vm1024_vm14, %v1026_v55, %v1022_v0  ;;  %v876_v0 = vmul.f32 %v5011_v48, %v4778_v50  ;;  %v883_v48 = vmul.f32 %v5025_v39, %v4786_v62 }
 0x9e3   :  { %v1030_v25 = vmul.f32 %v5031_v57, %v4959_v10  ;;  %v5056_v10 = vld [vmem:[%s6867_s27 + $0x58] sm:$0xff] }
 0x9e5   :  { %1045 = vmatpush.msra.mxu0 %v1030_v25  ;;  %1068 = vmatpush.msrb.mxu1 %v1030_v25 }
 0x9e7   :  { %1046 = vmatpush.msra.mxu0 %v1029_v49  ;;  %1069 = vmatpush.msrb.mxu1 %v1029_v49 }
 0x9e8   :  { %3949 = vmatmul.msk.f32.vlgmr.msra.gmra.mxu0 %vm164_vm0, %v5042_v40  ;;  %3951 = vmatmul.msk.f32.vlgmr.msrb.gmra.mxu1 %vm164_vm0, %v5049_v7 }
 0x9e9   :  { %1274 = vmatpush.msra.mxu1 %v5056_v10 }
 0x9eb   :  { %1275 = vmatpush.msra.mxu1 %v5062_v33 }
 0x9ed   :  { %1276 = vmatpush.msra.mxu1 %v5068_v8 }
 0x9ef   :  { %1277 = vmatpush.msra.mxu1 %v5074_v1 }
 0x9f0   :  { %3950 = vmatmul.msk.f32.gmra.mxu0 %vm164_vm0, %v5080_v2  ;;  %3952 = vmatmul.msk.f32.gmra.mxu1 %vm164_vm0, %v5087_v3 }
 0x9f1   :  { %1278 = vmatpush.msra.mxu1 %v5094_v4 }
 0x9f3   :  { %1279 = vmatpush.msra.mxu1 %v5100_v42 }
 0x9f5   :  { %1280 = vmatpush.msra.mxu1 %v5106_v54 }
 0x9f7   :  { %1281 = vmatpush.msra.mxu1 %v5112_v13 }
 0x9f9   :  { %1282 = vmatpush.msra.mxu1 %v5118_v18 }
 0x9fb   :  { %1283 = vmatpush.msra.mxu1 %v5124_v19 }
 0x9fd   :  { %1284 = vmatpush.msra.mxu1 %v5130_v20 }
 0x9ff   :  { %1285 = vmatpush.msra.mxu1 %v5136_v5 }
 0xa65   :  { %v1048_v21 = vpop.f32.mrf.mxu0  ;;  %v1071_v22 = vpop.f32.mrf.mxu1 }
 0xa66   :  { %1079 = vrot.lane.b32.xlu1 %v1048_v21, %s4347_s29  ;;  %1087 = vrot.lane.b32.xlu2 %v1071_v22, %s4348_s1  ;;  %v878_v21 = vmul.f32 %v5009_v47, %v4780_v51 }
 0xa68   :  { %v880_v22 = vadd.f32 %v878_v21, %v876_v0  ;;  %v1131_v0 = vmul.f32 %v5031_v57, %v4955_v9 }
 0xa6d   :  { %v1051_v56 = vpop.f32.mrf.mxu0  ;;  %v1074_v61 = vpop.f32.mrf.mxu1 }
 0xa6e   :  { %1081 = vrot.lane.b32.xlu0 %v1051_v56, %s4347_s29  ;;  %1089 = vrot.lane.b32.xlu1 %v1074_v61, %s4348_s1  ;;  %v877_v56 = vmul.f32 %v5007_v43, %v4778_v50  ;;  %v1133_v43 = vsub.f32 1.0, %v5031_v57 }
 0xac0   :  { %v1088_v35 = vpop.permute.xlu2 %1087 }
 0xad8   :  { %v1080_v52 = vpop.permute.xlu1 %1079 }
 0xad9   :  { %v1093_v53 = vsel %vm341_vm1, %v1029_v49, %v1080_v52  ;;  %v882_v49 = vmul.f32 %v5017_v38, %v4786_v62 }
 0xada   :  { %v1095_v44 = vsel %vm344_vm2, %v1093_v53, %v1088_v35 }
 0xadb   :  { %3953 = vmatmul.msk.f32.vlgmr.msra.gmra.mxu2 %vm347_vm3, %v1095_v44  ;;  %v884_v61 = vadd.f32 %v882_v49, %v880_v22  ;;  %v1130_v49 = vmul.f32 %v5033_v45, %v4948_v46 }
 0xae0   :  { %v1082_v6 = vpop.permute.xlu0 %1081  ;;  %v1090_v27 = vpop.permute.xlu1 %1089 }
 0xae1   :  { %v1094_v55 = vsel %vm341_vm1, %v1030_v25, %v1082_v6  ;;  %v879_v25 = vmul.f32 %v5005_v58, %v4780_v51 }
 0xae2   :  { %v1096_v41 = vsel %vm344_vm2, %v1094_v55, %v1090_v27 }
 0xae3   :  { %3954 = vmatmul.msk.f32.gmra.mxu2 %vm347_vm3, %v1096_v41  ;;  %v881_v53 = vadd.f32 %v879_v25, %v877_v56 }
 0xae5   :  { %v885_v47 = vadd.f32 %v883_v48, %v881_v53 }
 0xb5e   :  { %v1120_v52 = vpop.f32.mrf.mxu2 }
 0xb5f   :  { %v1121_v35 = vadd.f32 %v1120_v52, %v884_v61 }
 0xb61   :  { %v1126_v44 = vadd.f32 %v4793_v34, %v1121_v35 }
 0xb63   :  { %4166 = vtanh.f32 %v1126_v44 }
 0xb66   :  { %v1123_v6 = vpop.f32.mrf.mxu2 }
 0xb67   :  { %v1124_v27 = vadd.f32 %v1123_v6, %v885_v47 }
 0xb69   :  { %v4167_v38 = vpop.eup %4166  ;;  %v1127_v55 = vadd.f32 %v4793_v34, %v1124_v27  ;;  %v1132_v34 = vsub.f32 1.0, %v5033_v45 }
 0xb6a   :  { %1136 = vrot.lane.b32.xlu0 %v4167_v38, %s4347_s29 }
 0xb6b   :  { %4168 = vtanh.f32 %v1127_v55 }
 0xb71   :  { %v4169_v58 = vpop.eup %4168 }
 0xb72   :  { %1138 = vrot.lane.b32.xlu2 %v4169_v58, %s4347_s29 }
 0xbcc   :  { %v1139_v41 = vpop.permute.xlu2 %1138 }
 0xbcd   :  { %v1143_v39 = vmul.f32 %v1139_v41, %v1133_v43 }
 0xbcf   :  { %v5168_v21 = vadd.f32 %v1143_v39, %v1131_v0 }
 0xbd1   :  { %1194 = vrot.lane.b32.xlu1 %v5168_v21, %s4350_s4 }
 0xbdc   :  { %v1137_v22 = vpop.permute.xlu0 %1136 }
 0xbdd   :  { %v1142_v56 = vmul.f32 %v1137_v22, %v1132_v34  ;;  %v5260_v22 = vld [vmem:[%s6876_s0] ss:$0 sm:$0xff] }
 0xbdf   :  { %v5175_v25 = vadd.f32 %v1142_v56, %v1130_v49 }
 0xbe1   :  { %1192 = vrot.lane.b32.xlu2 %v5175_v25, %s4350_s4 }
 0xc3b   :  { %v5183_v9 = vpop.permute.xlu2 %1192 }
 0xc43   :  { %v5179_v61 = vpop.permute.xlu1 %1194 }
 0xc44   :  { %1212 = vmatpush.msrb.mxu3 %v5179_v61  ;;  %1235 = vmatpush.msrb.mxu0 %v5179_v61 }
 0xc46   :  { %1213 = vmatpush.msrb.mxu3 %v5183_v9  ;;  %1236 = vmatpush.msrb.mxu0 %v5183_v9 }
 0xc47   :  { %3955 = vmatmul.msk.f32.vlgmr.msrb.gmra.mxu3 %vm164_vm0, %v5042_v40  ;;  %3957 = vmatmul.msk.f32.vlgmr.msrb.gmra.mxu0 %vm164_vm0, %v5049_v7 }
 0xc48   :  { %1411 = vmatpush.msra.mxu0 %v4694_v59  ;;  %v4353_v59 = vmov 3  }
 0xc49   :  { %4113 = vset.pattern.permute.xlu1 %v4353_v59  ;;  %4115 = vset.pattern.permute.xlu0 %v4353_v59 }
 0xc4a   :  { %1412 = vmatpush.msra.mxu0 %v4699_v60  ;;  %4114 = vset.pattern.permute.xlu2 %v4353_v59 }
 0xc4c   :  { %1413 = vmatpush.msra.mxu0 %v4710_v14 }
 0xc4e   :  { %1414 = vmatpush.msra.mxu0 %v4716_v15  ;;  %v5212_v15 = vld [vmem:[%s6865_s23 + $0x8] sm:$0xff] }
 0xc4f   :  { %3956 = vmatmul.msk.f32.gmra.mxu3 %vm164_vm0, %v5080_v2  ;;  %3958 = vmatmul.msk.f32.gmra.mxu0 %vm164_vm0, %v5087_v3 }
 0xc50   :  { %1415 = vmatpush.msra.mxu0 %v4721_v16 }
 0xc52   :  { %1416 = vmatpush.msra.mxu0 %v4727_v17 }
 0xc54   :  { %1417 = vmatpush.msra.mxu0 %v4733_v23  ;;  %v5221_v23 = vld [vmem:[%s6865_s23] sm:$0xff] }
 0xc56   :  { %1418 = vmatpush.msra.mxu0 %v4739_v28 }
 0xc58   :  { %1419 = vmatpush.msra.mxu0 %v4745_v29 }
 0xc5a   :  { %1420 = vmatpush.msra.mxu0 %v4751_v30 }
 0xc5c   :  { %1421 = vmatpush.msra.mxu0 %v4757_v31 }
 0xc5e   :  { %1422 = vmatpush.msra.mxu0 %v4764_v32 }
 0xcc4   :  { %v1238_v60 = vpop.f32.mrf.mxu0 }
 0xcc5   :  { %1254 = vrot.lane.b32.xlu1 %v1238_v60, %s4348_s1 }
 0xcca   :  { %v1215_v14 = vpop.f32.mrf.mxu3 }
 0xccb   :  { %1246 = vrot.lane.b32.xlu0 %v1215_v14, %s4347_s29 }
 0xccc   :  { %v1241_v16 = vpop.f32.mrf.mxu0 }
 0xccd   :  { %1151 = vperm.xlu1 %4113, %v5212_v15  }
 0xcd2   :  { %v1218_v17 = vpop.f32.mrf.mxu3 }
 0xcd3   :  { %1256 = vrot.lane.b32.xlu0 %v1241_v16, %s4348_s1  ;;  %1248 = vrot.lane.b32.xlu2 %v1218_v17, %s4347_s29 }
 0xcd5   :  { %1157 = vperm.xlu1 %4113, %v6879_v11  }
 0xcdb   :  { %1147 = vperm.xlu0 %4115, %v5221_v23   ;;  %1161 = vperm.xlu2 %4114, %v4610_v26  }
 0xcdd   :  { %1169 = vperm.xlu1 %4113, %v6877_v37  }
 0xce3   :  { %1173 = vperm.xlu2 %4114, %v6880_v12  }
 0xd2d   :  { %v1249_v32 = vpop.permute.xlu2 %1248 }
 0xd2e   :  { %v1261_v46 = vsel %vm341_vm1, %v5179_v61, %v1249_v32 }
 0xd35   :  { %v5243_v48 = vpop.permute.xlu2 %1161 }
 0xd36   :  { %v1165_v41 = vmul.f32 %v5243_v48, %v6882_v36 }
 0xd37   :  { %v1255_v29 = vpop.permute.xlu1 %1254 }
 0xd3d   :  { %v1247_v28 = vpop.permute.xlu0 %1246  ;;  %v5255_v39 = vpop.permute.xlu2 %1173 }
 0xd3e   :  { %v1260_v30 = vsel %vm341_vm1, %v5183_v9, %v1247_v28  ;;  %v1177_v56 = vmul.f32 %v5255_v39, %v6883_v24 }
 0xd3f   :  { %v1262_v31 = vsel %vm344_vm2, %v1260_v30, %v1255_v29  ;;  %v5235_v52 = vpop.permute.xlu1 %1151 }
 0xd40   :  { %3959 = vmatmul.msk.f32.vlgmr.msra.gmra.mxu1 %vm347_vm3, %v1262_v31  ;;  %v1155_v55 = vmul.f32 %v5235_v52, %v6881_v63 }
 0xd42   :  { %v1167_v34 = vadd.f32 %v1165_v41, %v1155_v55 }
 0xd44   :  { %v1179_v60 = vadd.f32 %v1177_v56, %v1167_v34 }
 0xd45   :  { %v1257_v57 = vpop.permute.xlu0 %1256 }
 0xd46   :  { %v1263_v45 = vsel %vm344_vm2, %v1261_v46, %v1257_v57 }
 0xd47   :  { %v5237_v35 = vpop.permute.xlu1 %1157 }
 0xd48   :  { %3960 = vmatmul.msk.f32.gmra.mxu1 %vm347_vm3, %v1263_v45  ;;  %v1164_v6 = vmul.f32 %v5237_v35, %v6882_v36 }
 0xd4d   :  { %v5239_v53 = vpop.permute.xlu0 %1147 }
 0xd4e   :  { %v1154_v44 = vmul.f32 %v5239_v53, %v6881_v63 }
 0xd4f   :  { %v5245_v47 = vpop.permute.xlu1 %1169 }
 0xd50   :  { %v1166_v27 = vadd.f32 %v1164_v6, %v1154_v44  ;;  %v1176_v38 = vmul.f32 %v5245_v47, %v6883_v24 }
 0xd52   :  { %v1178_v58 = vadd.f32 %v1176_v38, %v1166_v27 }
 0xdbd   :  { %v1287_v43 = vpop.f32.mrf.mxu1 }
 0xdbe   :  { %v1288_v0 = vadd.f32 %v1287_v43, %v1178_v58 }
 0xdc0   :  { %v1293_v49 = vadd.f32 %v5260_v22, %v1288_v0 }
 0xdc2   :  { %v3961_v59 = vmul.f32 -1.442695, %v1293_v49 }
 0xdc4   :  { %4170 = vpow2.f32 %v3961_v59 }
 0xdc5   :  { %v1290_v14 = vpop.f32.mrf.mxu1 }
 0xdc6   :  { %v1291_v16 = vadd.f32 %v1290_v14, %v1179_v60 }
 0xdc8   :  { %v1294_v17 = vadd.f32 %v5260_v22, %v1291_v16 }
 0xdca   :  { %v4171_v28 = vpop.eup %4170  ;;  %v3962_v29 = vmul.f32 -1.442695, %v1294_v17 }
 0xdcb   :  { %v1301_v30 = vadd.f32 1.0, %v4171_v28 }
 0xdcc   :  { %4172 = vpow2.f32 %v3962_v29 }
 0xdcd   :  { %4174 = vrcp.f32 %v1301_v30  ;;  %vm1308_vm5 = vweird.f32 %v1301_v30  ;;  %v1314_v43 = vand.u32 2147483648, %v1301_v30  ;;  %v1312_v34 = vand.u32 2147483647, %v1301_v30 }
 0xdcf   :  { %v1315_v60 = vor.u32 1.1754944e-38, %v1314_v43  ;;  %vm1313_vm11 = vcmp.eq.f32.partialorder %v1312_v34, 8.507059e+37  ;;  %v1181_v34 = vmul.f32 %v5235_v52, %v4778_v50 }
 0xdd2   :  { %v4173_v31 = vpop.eup %4172 }
 0xdd3   :  { %v4175_v32 = vpop.eup %4174  ;;  %v1302_v46 = vadd.f32 1.0, %v4173_v31 }
 0xdd4   :  { %v1304_v57 = vmul.f32 %v4175_v32, %v1301_v30  ;;  %vm1309_vm4 = vweird.f32 %v4175_v32 }
 0xdd5   :  { %4176 = vrcp.f32 %v1302_v46  ;;  %v1329_v58 = vand.u32 2147483648, %v1302_v46  ;;  %v1327_v0 = vand.u32 2147483647, %v1302_v46  ;;  %vm1310_vm7 = vmor %vm1308_vm5, %vm1309_vm4  ;;  %vm1323_vm8 = vweird.f32 %v1302_v46 }
 0xdd6   :  { %v1305_v45 = vsub.f32 1.0, %v1304_v57 }
 0xdd7   :  { %v1330_v59 = vor.u32 1.1754944e-38, %v1329_v58  ;;  %vm1328_vm10 = vcmp.eq.f32.partialorder %v1327_v0, 8.507059e+37  ;;  %v1182_v58 = vmul.f32 %v5237_v35, %v4780_v51 }
 0xdd8   :  { %v1306_v44 = vmul.f32 %v4175_v32, %v1305_v45 }
 0xdda   :  { %v1307_v55 = vadd.f32 %v4175_v32, %v1306_v44 }
 0xddb   :  { %v4177_v6 = vpop.eup %4176 }
 0xddc   :  { %v1319_v27 = vmul.f32 %v4177_v6, %v1302_v46  ;;  %vm1324_vm6 = vweird.f32 %v4177_v6  ;;  %v1311_v56 = vsel %vm1310_vm7, %v4175_v32, %v1307_v55  ;;  %v1180_v55 = vmul.f32 %v5239_v53, %v4778_v50  ;;  %v5317_v53 = vld [vmem:[%s6815_s8] ss:$0 sm:$0xff] }
 0xddd   :  { %vm1325_vm9 = vmor %vm1323_vm8, %vm1324_vm6  ;;  %v5268_v17 = vsel %vm1313_vm11, %v1315_v60, %v1311_v56 }
 0xdde   :  { %v1320_v38 = vsub.f32 1.0, %v1319_v27  ;;  %v1333_v29 = vmul.f32 %v5268_v17, %v5183_v9  ;;  %v1184_v43 = vadd.f32 %v1182_v58, %v1180_v55  ;;  %v5382_v55 = vld [vmem:[%s6814_s6 + $0x38] sm:$0xff]  ;;  %v5388_v58 = vld [vmem:[%s6814_s6 + $0x30] sm:$0xff] }
 0xde0   :  { %v1321_v41 = vmul.f32 %v4177_v6, %v1320_v38 }
 0xde2   :  { %v1322_v49 = vadd.f32 %v4177_v6, %v1321_v41  ;;  %v1186_v41 = vmul.f32 %v5245_v47, %v4786_v62  ;;  %v1187_v47 = vmul.f32 %v5255_v39, %v4786_v62 }
 0xde4   :  { %v1326_v14 = vsel %vm1325_vm9, %v4177_v6, %v1322_v49  ;;  %v1188_v0 = vadd.f32 %v1186_v41, %v1184_v43  ;;  %v5394_v43 = vld [vmem:[%s6814_s6 + $0x28] sm:$0xff]  ;;  %v5400_v41 = vld [vmem:[%s6814_s6 + $0x20] sm:$0xff] }
 0xde5   :  { %v5266_v16 = vsel %vm1328_vm10, %v1330_v59, %v1326_v14  ;;  %v1183_v59 = vmul.f32 %v5243_v48, %v4780_v51 }
 0xde6   :  { %v1334_v28 = vmul.f32 %v5266_v16, %v5179_v61 }
 0xde7   :  { %v1185_v60 = vadd.f32 %v1183_v59, %v1181_v34  ;;  %v5412_v34 = vld [vmem:[%s6814_s6 + $0x10] sm:$0xff]  ;;  %v4354_v59 = vmov 4  }
 0xde8   :  { %1349 = vmatpush.msrb.mxu2 %v1334_v28  ;;  %1372 = vmatpush.msra.mxu3 %v1334_v28 }
 0xde9   :  { %v1189_v14 = vadd.f32 %v1187_v47, %v1185_v60  ;;  %4116 = vset.pattern.permute.xlu2 %v4354_v59  ;;  %4117 = vset.pattern.permute.xlu0 %v4354_v59 }
 0xdea   :  { %1350 = vmatpush.msrb.mxu2 %v1333_v29  ;;  %1373 = vmatpush.msra.mxu3 %v1333_v29 }
 0xdeb   :  { %3963 = vmatmul.msk.f32.vlgmr.msrb.gmra.mxu2 %vm164_vm0, %v5042_v40  ;;  %3965 = vmatmul.msk.f32.vlgmr.msra.gmra.mxu3 %vm164_vm0, %v5049_v7 }
 0xdec   :  { %1578 = vmatpush.msrb.mxu3 %v5056_v10  ;;  %4118 = vset.pattern.permute.xlu1 %v4354_v59 }
 0xdee   :  { %1579 = vmatpush.msrb.mxu3 %v5062_v33 }
 0xdf0   :  { %1580 = vmatpush.msrb.mxu3 %v5068_v8 }
 0xdf2   :  { %1581 = vmatpush.msrb.mxu3 %v5074_v1 }
 0xdf3   :  { %3964 = vmatmul.msk.f32.gmra.mxu2 %vm164_vm0, %v5080_v2  ;;  %3966 = vmatmul.msk.f32.gmra.mxu3 %vm164_vm0, %v5087_v3 }
 0xdf4   :  { %1582 = vmatpush.msrb.mxu3 %v5094_v4 }
 0xdf6   :  { %1583 = vmatpush.msrb.mxu3 %v5100_v42 }
 0xdf8   :  { %1584 = vmatpush.msrb.mxu3 %v5106_v54 }
 0xdfa   :  { %1585 = vmatpush.msrb.mxu3 %v5112_v13 }
 0xdfc   :  { %1586 = vmatpush.msrb.mxu3 %v5118_v18 }
 0xdfe   :  { %1587 = vmatpush.msrb.mxu3 %v5124_v19 }
 0xe00   :  { %1588 = vmatpush.msrb.mxu3 %v5130_v20 }
 0xe02   :  { %1589 = vmatpush.msrb.mxu3 %v5136_v5 }
 0xe6e   :  { %v1352_v61 = vpop.f32.mrf.mxu2  ;;  %v1375_v9 = vpop.f32.mrf.mxu3 }
 0xe6f   :  { %1391 = vrot.lane.b32.xlu0 %v1375_v9, %s4348_s1  ;;  %1383 = vrot.lane.b32.xlu2 %v1352_v61, %s4347_s29  ;;  %v1436_v9 = vsub.f32 1.0, %v5268_v17 }
 0xe76   :  { %v1355_v30 = vpop.f32.mrf.mxu2  ;;  %v1378_v31 = vpop.f32.mrf.mxu3 }
 0xe77   :  { %1385 = vrot.lane.b32.xlu1 %v1355_v30, %s4347_s29  ;;  %1393 = vrot.lane.b32.xlu2 %v1378_v31, %s4348_s1  ;;  %v1434_v31 = vmul.f32 %v5268_v17, %v5175_v25  ;;  %v5366_v17 = vld [vmem:[%s6814_s6 + $0x48] sm:$0xff] }
 0xec9   :  { %v1384_v32 = vpop.permute.xlu2 %1383 }
 0xeca   :  { %v1397_v46 = vsel %vm341_vm1, %v1333_v29, %v1384_v32 }
 0xed1   :  { %v1394_v44 = vpop.permute.xlu2 %1393 }
 0xee1   :  { %v1392_v57 = vpop.permute.xlu0 %1391 }
 0xee2   :  { %v1399_v45 = vsel %vm344_vm2, %v1397_v46, %v1392_v57  ;;  %v1437_v46 = vsub.f32 1.0, %v5266_v16 }
 0xee3   :  { %3967 = vmatmul.msk.f32.vlgmr.msra.gmra.mxu0 %vm347_vm3, %v1399_v45  ;;  %v1435_v45 = vmul.f32 %v5266_v16, %v5168_v21  ;;  %v5354_v21 = vld [vmem:[%s6814_s6 + $0x58] sm:$0xff]  ;;  %v5360_v16 = vld [vmem:[%s6814_s6 + $0x50] sm:$0xff] }
 0xee9   :  { %v1386_v6 = vpop.permute.xlu1 %1385 }
 0xeea   :  { %v1398_v27 = vsel %vm341_vm1, %v1334_v28, %v1386_v6 }
 0xeeb   :  { %v1400_v38 = vsel %vm344_vm2, %v1398_v27, %v1394_v44 }
 0xeec   :  { %3968 = vmatmul.msk.f32.gmra.mxu0 %vm347_vm3, %v1400_v38  ;;  %v5372_v38 = vld [vmem:[%s6814_s6 + $0x40] sm:$0xff] }
 0xf60   :  { %v1424_v49 = vpop.f32.mrf.mxu0 }
 0xf61   :  { %v1425_v56 = vadd.f32 %v1424_v49, %v1188_v0  ;;  %v5406_v0 = vld [vmem:[%s6814_s6 + $0x18] sm:$0xff]  ;;  %v5418_v49 = vld [vmem:[%s6814_s6 + $0x8] sm:$0xff] }
 0xf63   :  { %v1430_v35 = vadd.f32 %v5317_v53, %v1425_v56  ;;  %v5424_v56 = vld [vmem:[%s6814_s6] sm:$0xff] }
 0xf65   :  { %4178 = vtanh.f32 %v1430_v35 }
 0xf69   :  { %v1427_v28 = vpop.f32.mrf.mxu0 }
 0xf6a   :  { %v1428_v52 = vadd.f32 %v1427_v28, %v1189_v14 }
 0xf6b   :  { %v4179_v29 = vpop.eup %4178 }
 0xf6c   :  { %v1431_v61 = vadd.f32 %v5317_v53, %v1428_v52  ;;  %1440 = vrot.lane.b32.xlu1 %v4179_v29, %s4347_s29 }
 0xf6e   :  { %4180 = vtanh.f32 %v1431_v61 }
 0xf74   :  { %v4181_v48 = vpop.eup %4180 }
 0xf75   :  { %1442 = vrot.lane.b32.xlu0 %v4181_v48, %s4347_s29 }
 0xfde   :  { %v1441_v30 = vpop.permute.xlu1 %1440 }
 0xfdf   :  { %v1446_v32 = vmul.f32 %v1441_v30, %v1436_v9 }
 0xfe1   :  { %v5328_v39 = vadd.f32 %v1446_v32, %v1434_v31 }
 0xfe3   :  { %1496 = vrot.lane.b32.xlu0 %v5328_v39, %s4350_s4 }
 0xfe7   :  { %v1443_v57 = vpop.permute.xlu0 %1442 }
 0xfe8   :  { %v1447_v44 = vmul.f32 %v1443_v57, %v1437_v46 }
 0xfea   :  { %v5335_v6 = vadd.f32 %v1447_v44, %v1435_v45 }
 0xfec   :  { %1498 = vrot.lane.b32.xlu2 %v5335_v6, %s4350_s4 }
0x1046   :  { %v5339_v27 = vpop.permute.xlu2 %1498 }
0x1047   :  { %1516 = vmatpush.msrb.mxu1 %v5339_v27  ;;  %1539 = vmatpush.msra.mxu2 %v5339_v27 }
0x1055   :  { %v5343_v25 = vpop.permute.xlu0 %1496 }
0x1056   :  { %1517 = vmatpush.msrb.mxu1 %v5343_v25  ;;  %1540 = vmatpush.msra.mxu2 %v5343_v25 }
0x1057   :  { %3969 = vmatmul.msk.f32.vlgmr.msrb.gmra.mxu1 %vm164_vm0, %v5042_v40  ;;  %3971 = vmatmul.msk.f32.vlgmr.msra.gmra.mxu2 %vm164_vm0, %v5049_v7 }
0x1058   :  { %1715 = vmatpush.msrb.mxu2 %v5354_v21 }
0x105a   :  { %1716 = vmatpush.msrb.mxu2 %v5360_v16 }
0x105c   :  { %1717 = vmatpush.msrb.mxu2 %v5366_v17 }
0x105e   :  { %1718 = vmatpush.msrb.mxu2 %v5372_v38 }
0x105f   :  { %3970 = vmatmul.msk.f32.gmra.mxu1 %vm164_vm0, %v5080_v2  ;;  %3972 = vmatmul.msk.f32.gmra.mxu2 %vm164_vm0, %v5087_v3 }
0x1060   :  { %1719 = vmatpush.msrb.mxu2 %v5382_v55 }
0x1062   :  { %1720 = vmatpush.msrb.mxu2 %v5388_v58 }
0x1064   :  { %1721 = vmatpush.msrb.mxu2 %v5394_v43 }
0x1066   :  { %1722 = vmatpush.msrb.mxu2 %v5400_v41 }
0x1068   :  { %1723 = vmatpush.msrb.mxu2 %v5406_v0 }
0x106a   :  { %1724 = vmatpush.msrb.mxu2 %v5412_v34 }
0x106c   :  { %1725 = vmatpush.msrb.mxu2 %v5418_v49 }
0x106e   :  { %1726 = vmatpush.msrb.mxu2 %v5424_v56 }
0x10d4   :  { %v1519_v35 = vpop.f32.mrf.mxu1 }
0x10d5   :  { %1550 = vrot.lane.b32.xlu1 %v1519_v35, %s4347_s29 }
0x10da   :  { %v1542_v60 = vpop.f32.mrf.mxu2 }
0x10db   :  { %1558 = vrot.lane.b32.xlu2 %v1542_v60, %s4348_s1 }
0x10dc   :  { %v1522_v47 = vpop.f32.mrf.mxu1 }
0x10dd   :  { %1552 = vrot.lane.b32.xlu0 %v1522_v47, %s4347_s29 }
0x10e2   :  { %v1545_v14 = vpop.f32.mrf.mxu2 }
0x10e3   :  { %1455 = vperm.xlu2 %4116, %v5212_v15   ;;  %1560 = vrot.lane.b32.xlu1 %v1545_v14, %s4348_s1 }
0x10e5   :  { %1465 = vperm.xlu0 %4117, %v4610_v26  }
0x10eb   :  { %1461 = vperm.xlu2 %4116, %v6879_v11   ;;  %1451 = vperm.xlu1 %4118, %v5221_v23  }
0x10f3   :  { %1473 = vperm.xlu2 %4116, %v6877_v37   ;;  %1477 = vperm.xlu1 %4118, %v6880_v12  }
0x1135   :  { %v1559_v28 = vpop.permute.xlu2 %1558 }
0x113d   :  { %v5441_v48 = vpop.permute.xlu2 %1455 }
0x1145   :  { %v1462_v46 = vpop.permute.xlu2 %1461 }
0x1146   :  { %v1486_v45 = vmul.f32 %v1462_v46, %v4780_v51  ;;  %v1468_v60 = vmul.f32 %v1462_v46, %v6882_v36 }
0x1147   :  { %v1551_v52 = vpop.permute.xlu1 %1550 }
0x1148   :  { %v1564_v29 = vsel %vm341_vm1, %v5343_v25, %v1551_v52 }
0x1149   :  { %v1566_v61 = vsel %vm344_vm2, %v1564_v29, %v1559_v28 }
0x114a   :  { %3973 = vmatmul.msk.f32.vlgmr.msrb.gmra.mxu3 %vm347_vm3, %v1566_v61 }
0x114d   :  { %v5453_v47 = vpop.permute.xlu2 %1473 }
0x114e   :  { %v1480_v28 = vmul.f32 %v5453_v47, %v6883_v24 }
0x114f   :  { %v1553_v9 = vpop.permute.xlu0 %1552 }
0x1150   :  { %v1565_v30 = vsel %vm341_vm1, %v5339_v27, %v1553_v9 }
0x1155   :  { %v1561_v31 = vpop.permute.xlu1 %1560 }
0x1156   :  { %v1567_v32 = vsel %vm344_vm2, %v1565_v30, %v1561_v31 }
0x1157   :  { %3974 = vmatmul.msk.f32.gmra.mxu3 %vm347_vm3, %v1567_v32  ;;  %v5457_v9 = vpop.permute.xlu0 %1465 }
0x1158   :  { %v1469_v46 = vmul.f32 %v5457_v9, %v6882_v36 }
0x115d   :  { %v1452_v57 = vpop.permute.xlu1 %1451 }
0x115e   :  { %v1484_v44 = vmul.f32 %v1452_v57, %v4778_v50  ;;  %v1458_v35 = vmul.f32 %v1452_v57, %v6881_v63  ;;  %v1459_v57 = vmul.f32 %v5441_v48, %v6881_v63 }
0x1160   :  { %v5449_v59 = vadd.f32 %v1486_v45, %v1484_v44  ;;  %v1470_v14 = vadd.f32 %v1468_v60, %v1458_v35  ;;  %v1471_v44 = vadd.f32 %v1469_v46, %v1459_v57 }
0x1162   :  { %v1482_v52 = vadd.f32 %v1480_v28, %v1470_v14 }
0x1165   :  { %v5460_v31 = vpop.permute.xlu1 %1477 }
0x1166   :  { %v1481_v45 = vmul.f32 %v5460_v31, %v6883_v24 }
0x1168   :  { %v1483_v35 = vadd.f32 %v1481_v45, %v1471_v44 }
0x11cd   :  { %v1591_v29 = vpop.f32.mrf.mxu3 }
0x11ce   :  { %v1592_v61 = vadd.f32 %v1591_v29, %v1482_v52 }
0x11d0   :  { %v1597_v30 = vadd.f32 %v5260_v22, %v1592_v61 }
0x11d2   :  { %v3975_v32 = vmul.f32 -1.442695, %v1597_v30 }
0x11d4   :  { %4182 = vpow2.f32 %v3975_v32 }
0x11da   :  { %v4183_v60 = vpop.eup %4182  ;;  %v1594_v14 = vpop.f32.mrf.mxu3 }
0x11db   :  { %v1605_v28 = vadd.f32 1.0, %v4183_v60  ;;  %v1595_v52 = vadd.f32 %v1594_v14, %v1483_v35 }
0x11dd   :  { %v1598_v29 = vadd.f32 %v5260_v22, %v1595_v52  ;;  %4184 = vrcp.f32 %v1605_v28  ;;  %vm1612_vm13 = vweird.f32 %v1605_v28  ;;  %v1618_v44 = vand.u32 2147483648, %v1605_v28 }
0x11de   :  { %v1616_v14 = vand.u32 2147483647, %v1605_v28 }
0x11df   :  { %v3976_v61 = vmul.f32 -1.442695, %v1598_v29 }
0x11e0   :  { %vm1617_vm7 = vcmp.eq.f32.partialorder %v1616_v14, 8.507059e+37 }
0x11e1   :  { %4186 = vpow2.f32 %v3976_v61 }
0x11e3   :  { %v4185_v30 = vpop.eup %4184 }
0x11e4   :  { %v1608_v11 = vmul.f32 %v4185_v30, %v1605_v28  ;;  %vm1613_vm12 = vweird.f32 %v4185_v30 }
0x11e5   :  { %vm1614_vm15 = vmor %vm1612_vm13, %vm1613_vm12 }
0x11e6   :  { %v1609_v32 = vsub.f32 1.0, %v1608_v11  ;;  %v1619_v11 = vor.u32 1.1754944e-38, %v1618_v44 }
0x11e7   :  { %v4187_v63 = vpop.eup %4186 }
0x11e8   :  { %v1606_v12 = vadd.f32 1.0, %v4187_v63  ;;  %v1610_v36 = vmul.f32 %v4185_v30, %v1609_v32 }
0x11ea   :  { %4188 = vrcp.f32 %v1606_v12  ;;  %v1611_v46 = vadd.f32 %v4185_v30, %v1610_v36  ;;  %v1633_v45 = vand.u32 2147483648, %v1606_v12  ;;  %v1631_v60 = vand.u32 2147483647, %v1606_v12 }
0x11eb   :  { %vm1627_vm4 = vweird.f32 %v1606_v12 }
0x11ec   :  { %v1615_v29 = vsel %vm1614_vm15, %v4185_v30, %v1611_v46  ;;  %v1634_v63 = vor.u32 1.1754944e-38, %v1633_v45  ;;  %vm1632_vm6 = vcmp.eq.f32.partialorder %v1631_v60, 8.507059e+37  ;;  %v1487_v30 = vmul.f32 %v5457_v9, %v4780_v51 }
0x11ed   :  { %v5471_v36 = vsel %vm1617_vm7, %v1619_v11, %v1615_v29  ;;  %v1491_v46 = vmul.f32 %v5460_v31, %v4786_v62 }
0x11ee   :  { %v1637_v28 = vmul.f32 %v5471_v36, %v5343_v25  ;;  %v1485_v25 = vmul.f32 %v5441_v48, %v4778_v50  ;;  %v1740_v9 = vsub.f32 1.0, %v5471_v36  ;;  %v1738_v31 = vmul.f32 %v5471_v36, %v5328_v39  ;;  %v6885_v36 = vld [vmem:[#allocation7_spill] sm:$0xff] }
0x11f0   :  { %v4189_v26 = vpop.eup %4188  ;;  %v1489_v44 = vadd.f32 %v1487_v30, %v1485_v25  ;;  %v6887_v30 = vld [vmem:[#allocation8_spill] sm:$0xff] }
0x11f1   :  { %v1623_v24 = vmul.f32 %v4189_v26, %v1606_v12  ;;  %vm1628_vm14 = vweird.f32 %v4189_v26 }
0x11f2   :  { %vm1629_vm5 = vmor %vm1627_vm4, %vm1628_vm14 }
0x11f3   :  { %v1624_v57 = vsub.f32 1.0, %v1623_v24 }
0x11f5   :  { %v1625_v35 = vmul.f32 %v4189_v26, %v1624_v57 }
0x11f7   :  { %v1626_v52 = vadd.f32 %v4189_v26, %v1625_v35  ;;  %v1493_v35 = vadd.f32 %v1491_v46, %v1489_v44  ;;  %v6888_v46 = vld [vmem:[#allocation9_spill] sm:$0xff] }
0x11f9   :  { %v1630_v61 = vsel %vm1629_vm5, %v4189_v26, %v1626_v52 }
0x11fa   :  { %v5469_v24 = vsel %vm1632_vm6, %v1634_v63, %v1630_v61 }
0x11fb   :  { %v1638_v32 = vmul.f32 %v5469_v24, %v5339_v27  ;;  %v1741_v11 = vsub.f32 1.0, %v5469_v24 }
0x11fd   :  { %1653 = vmatpush.msrb.mxu0 %v1638_v32  ;;  %1676 = vmatpush.msra.mxu1 %v1638_v32 }
0x11ff   :  { %1654 = vmatpush.msrb.mxu0 %v1637_v28  ;;  %1677 = vmatpush.msra.mxu1 %v1637_v28 }
0x1200   :  { %3977 = vmatmul.msk.f32.vlgmr.msrb.gmra.mxu0 %vm164_vm0, %v5042_v40  ;;  %3979 = vmatmul.msk.f32.vlgmr.msra.gmra.mxu1 %vm164_vm0, %v5049_v7 }
0x1201   :  { %1882 = vmatpush.msrb.mxu1 %v5056_v10 }
0x1203   :  { %1883 = vmatpush.msrb.mxu1 %v5062_v33 }
0x1205   :  { %1884 = vmatpush.msrb.mxu1 %v5068_v8 }
0x1207   :  { %1885 = vmatpush.msrb.mxu1 %v5074_v1 }
0x1208   :  { %3978 = vmatmul.msk.f32.gmra.mxu0 %vm164_vm0, %v5080_v2  ;;  %3980 = vmatmul.msk.f32.gmra.mxu1 %vm164_vm0, %v5087_v3 }
0x1209   :  { %1886 = vmatpush.msrb.mxu1 %v5094_v4 }
0x120b   :  { %1887 = vmatpush.msrb.mxu1 %v5100_v42 }
0x120d   :  { %1888 = vmatpush.msrb.mxu1 %v5106_v54 }
0x120f   :  { %1889 = vmatpush.msrb.mxu1 %v5112_v13 }
0x1211   :  { %1890 = vmatpush.msrb.mxu1 %v5118_v18 }
0x1213   :  { %1891 = vmatpush.msrb.mxu1 %v5124_v19 }
0x1215   :  { %1892 = vmatpush.msrb.mxu1 %v5130_v20  ;;  %v1490_v20 = vmul.f32 %v5453_v47, %v4786_v62 }
0x1217   :  { %1893 = vmatpush.msrb.mxu1 %v5136_v5  ;;  %v1492_v5 = vadd.f32 %v1490_v20, %v5449_v59 }
0x127d   :  { %v1656_v26 = vpop.f32.mrf.mxu0  ;;  %v1679_v12 = vpop.f32.mrf.mxu1 }
0x127e   :  { %1687 = vrot.lane.b32.xlu0 %v1656_v26, %s4347_s29  ;;  %1695 = vrot.lane.b32.xlu1 %v1679_v12, %s4348_s1 }
0x1285   :  { %v1659_v10 = vpop.f32.mrf.mxu0  ;;  %v1682_v33 = vpop.f32.mrf.mxu1 }
0x1286   :  { %1697 = vrot.lane.b32.xlu0 %v1682_v33, %s4348_s1  ;;  %1689 = vrot.lane.b32.xlu2 %v1659_v10, %s4347_s29  ;;  %v6886_v10 = vld [vmem:[#allocation4_spill] sm:$0xff] }
0x12e0   :  { %v1690_v54 = vpop.permute.xlu2 %1689 }
0x12e1   :  { %v1702_v13 = vsel %vm341_vm1, %v1638_v32, %v1690_v54  ;;  %v1739_v32 = vmul.f32 %v5469_v24, %v5335_v6  ;;  %v6884_v24 = vld [vmem:[#allocation6_spill] sm:$0xff] }
0x12f0   :  { %v1688_v8 = vpop.permute.xlu0 %1687  ;;  %v1696_v1 = vpop.permute.xlu1 %1695 }
0x12f1   :  { %v1701_v4 = vsel %vm341_vm1, %v1637_v28, %v1688_v8 }
0x12f2   :  { %v1703_v42 = vsel %vm344_vm2, %v1701_v4, %v1696_v1 }
0x12f3   :  { %3981 = vmatmul.msk.f32.vlgmr.msrb.gmra.mxu2 %vm347_vm3, %v1703_v42 }
0x12f8   :  { %v1698_v18 = vpop.permute.xlu0 %1697 }
0x12f9   :  { %v1704_v19 = vsel %vm344_vm2, %v1702_v13, %v1698_v18 }
0x12fb   :  { %3982 = vmatmul.msk.f32.gmra.mxu2 %vm347_vm3, %v1704_v19 }
0x1376   :  { %v1728_v27 = vpop.f32.mrf.mxu2 }
0x1377   :  { %v1729_v57 = vadd.f32 %v1728_v27, %v1492_v5 }
0x1379   :  { %v1734_v45 = vadd.f32 %v5317_v53, %v1729_v57 }
0x137b   :  { %4190 = vtanh.f32 %v1734_v45 }
0x137e   :  { %v1731_v60 = vpop.f32.mrf.mxu2 }
0x137f   :  { %v1732_v47 = vadd.f32 %v1731_v60, %v1493_v35  ;;  %v6889_v60 = vld [vmem:[#allocation10_spill] sm:$0xff] }
0x1381   :  { %v4191_v14 = vpop.eup %4190  ;;  %v1735_v59 = vadd.f32 %v5317_v53, %v1732_v47 }
0x1382   :  { %1744 = vrot.lane.b32.xlu2 %v4191_v14, %s4347_s29 }
0x1383   :  { %4192 = vtanh.f32 %v1735_v59 }
0x1389   :  { %v4193_v48 = vpop.eup %4192 }
0x138a   :  { %1746 = vrot.lane.b32.xlu1 %v4193_v48, %s4347_s29 }
0x13dc   :  { %v1745_v52 = vpop.permute.xlu2 %1744 }
0x13dd   :  { %v1750_v29 = vmul.f32 %v1745_v52, %v1740_v9 }
0x13df   :  { %v5523_v63 = vadd.f32 %v1750_v29, %v1738_v31 }
0x13e1   :  { %1800 = vrot.lane.b32.xlu1 %v5523_v63, %s4350_s4 }
0x13fc   :  { %v1747_v61 = vpop.permute.xlu1 %1746 }
0x13fd   :  { %v1751_v28 = vmul.f32 %v1747_v61, %v1741_v11 }
0x13ff   :  { %v5530_v26 = vadd.f32 %v1751_v28, %v1739_v32 }
0x1401   :  { %1802 = vrot.lane.b32.xlu0 %v5530_v26, %s4350_s4 }
0x1453   :  { %v5538_v39 = vpop.permute.xlu1 %1800 }
0x1473   :  { %v5534_v12 = vpop.permute.xlu0 %1802 }
0x1474   :  { %1820 = vmatpush.msra.mxu3 %v5534_v12  ;;  %1843 = vmatpush.msra.mxu0 %v5534_v12 }
0x1476   :  { %1821 = vmatpush.msra.mxu3 %v5538_v39  ;;  %1844 = vmatpush.msra.mxu0 %v5538_v39 }
0x1477   :  { %3983 = vmatmul.msk.f32.vlgmr.msra.gmra.mxu3 %vm164_vm0, %v5042_v40  ;;  %3985 = vmatmul.msk.f32.vlgmr.msra.gmra.mxu0 %vm164_vm0, %v5049_v7  ;;  %v4355_v40 = vmov 5  }
0x1478   :  { %2019 = vmatpush.msrb.mxu0 %v5354_v21  ;;  %4119 = vset.pattern.permute.xlu0 %v4355_v40 }
0x1479   :  { %4121 = vset.pattern.permute.xlu2 %v4355_v40  ;;  %4120 = vset.pattern.permute.xlu1 %v4355_v40 }
0x147a   :  { %2020 = vmatpush.msrb.mxu0 %v5360_v16 }
0x147c   :  { %2021 = vmatpush.msrb.mxu0 %v5366_v17 }
0x147e   :  { %2022 = vmatpush.msrb.mxu0 %v5372_v38 }
0x147f   :  { %3984 = vmatmul.msk.f32.gmra.mxu3 %vm164_vm0, %v5080_v2  ;;  %3986 = vmatmul.msk.f32.gmra.mxu0 %vm164_vm0, %v5087_v3 }
0x1480   :  { %2023 = vmatpush.msrb.mxu0 %v5382_v55 }
0x1482   :  { %2024 = vmatpush.msrb.mxu0 %v5388_v58 }
0x1484   :  { %2025 = vmatpush.msrb.mxu0 %v5394_v43 }
0x1486   :  { %2026 = vmatpush.msrb.mxu0 %v5400_v41 }
0x1488   :  { %2027 = vmatpush.msrb.mxu0 %v5406_v0 }
0x148a   :  { %2028 = vmatpush.msrb.mxu0 %v5412_v34 }
0x148c   :  { %2029 = vmatpush.msrb.mxu0 %v5418_v49 }
0x148e   :  { %2030 = vmatpush.msrb.mxu0 %v5424_v56 }
0x14f4   :  { %v1846_v7 = vpop.f32.mrf.mxu0 }
0x14f5   :  { %1862 = vrot.lane.b32.xlu0 %v1846_v7, %s4348_s1 }
0x14fa   :  { %v1823_v2 = vpop.f32.mrf.mxu3 }
0x14fb   :  { %1854 = vrot.lane.b32.xlu2 %v1823_v2, %s4347_s29 }
0x14fc   :  { %v1849_v3 = vpop.f32.mrf.mxu0 }
0x14fd   :  { %1759 = vperm.xlu0 %4119, %v5212_v15  }
0x1502   :  { %v1826_v6 = vpop.f32.mrf.mxu3 }
0x1503   :  { %1864 = vrot.lane.b32.xlu2 %v1849_v3, %s4348_s1  ;;  %1856 = vrot.lane.b32.xlu1 %v1826_v6, %s4347_s29 }
0x1505   :  { %1777 = vperm.xlu0 %4119, %v6877_v37  }
0x150b   :  { %1755 = vperm.xlu2 %4121, %v5221_v23   ;;  %1769 = vperm.xlu1 %4120, %v6884_v24  }
0x1513   :  { %1781 = vperm.xlu2 %4121, %v6885_v36   ;;  %1765 = vperm.xlu1 %4120, %v6886_v10  }
0x1555   :  { %v1855_v33 = vpop.permute.xlu2 %1854 }
0x1556   :  { %v1868_v15 = vsel %vm341_vm1, %v5538_v39, %v1855_v33 }
0x155d   :  { %v1865_v42 = vpop.permute.xlu2 %1864 }
0x1565   :  { %v5586_v25 = vpop.permute.xlu2 %1755 }
0x1566   :  { %v1762_v57 = vmul.f32 %v5586_v25, %v6887_v30 }
0x1567   :  { %v1863_v8 = vpop.permute.xlu0 %1862 }
0x1568   :  { %v1870_v1 = vsel %vm344_vm2, %v1868_v15, %v1863_v8 }
0x1569   :  { %3987 = vmatmul.msk.f32.vlgmr.msrb.gmra.mxu1 %vm347_vm3, %v1870_v1 }
0x156d   :  { %v5599_v11 = vpop.permute.xlu2 %1781 }
0x156e   :  { %v1785_v32 = vmul.f32 %v5599_v11, %v6889_v60 }
0x156f   :  { %v1760_v13 = vpop.permute.xlu0 %1759 }
0x1570   :  { %v1789_v18 = vmul.f32 %v1760_v13, %v4778_v50  ;;  %v1763_v31 = vmul.f32 %v1760_v13, %v6887_v30 }
0x1575   :  { %v1857_v4 = vpop.permute.xlu1 %1856 }
0x1576   :  { %v1869_v23 = vsel %vm341_vm1, %v5534_v12, %v1857_v4 }
0x1577   :  { %v1871_v54 = vsel %vm344_vm2, %v1869_v23, %v1865_v42  ;;  %v5592_v44 = vpop.permute.xlu0 %1777 }
0x1578   :  { %3988 = vmatmul.msk.f32.gmra.mxu1 %vm347_vm3, %v1871_v54  ;;  %v1784_v47 = vmul.f32 %v5592_v44, %v6889_v60 }
0x157d   :  { %v1770_v19 = vpop.permute.xlu1 %1769 }
0x157e   :  { %v1791_v20 = vmul.f32 %v1770_v19, %v4780_v51  ;;  %v1773_v29 = vmul.f32 %v1770_v19, %v6888_v46 }
0x1580   :  { %v5582_v5 = vadd.f32 %v1791_v20, %v1789_v18  ;;  %v1775_v61 = vadd.f32 %v1773_v29, %v1763_v31 }
0x1582   :  { %v1787_v40 = vadd.f32 %v1785_v32, %v1775_v61  ;;  %v5615_v32 = vld [vmem:[%s6863_s26] sm:$0xff] }
0x1585   :  { %v5584_v27 = vpop.permute.xlu1 %1765 }
0x1586   :  { %v1772_v45 = vmul.f32 %v5584_v27, %v6888_v46 }
0x1588   :  { %v1774_v35 = vadd.f32 %v1772_v45, %v1762_v57 }
0x158a   :  { %v1786_v14 = vadd.f32 %v1784_v47, %v1774_v35 }
0x15e6   :  { %v1895_v59 = vpop.f32.mrf.mxu1 }
0x15e7   :  { %v1896_v48 = vadd.f32 %v1895_v59, %v1786_v14 }
0x15e9   :  { %v1901_v9 = vadd.f32 %v5260_v22, %v1896_v48 }
0x15eb   :  { %v3989_v52 = vmul.f32 -1.442695, %v1901_v9 }
0x15ed   :  { %4194 = vpow2.f32 %v3989_v52 }
0x15f3   :  { %v4195_v28 = vpop.eup %4194 }
0x15f4   :  { %v1909_v7 = vadd.f32 1.0, %v4195_v28  ;;  %v5622_v28 = vld [vmem:[%s6864_s28] sm:$0xff] }
0x15f5   :  { %v1898_v2 = vpop.f32.mrf.mxu1 }
0x15f6   :  { %v1899_v3 = vadd.f32 %v1898_v2, %v1787_v40  ;;  %4196 = vrcp.f32 %v1909_v7  ;;  %vm1916_vm9 = vweird.f32 %v1909_v7  ;;  %v1922_v57 = vand.u32 2147483648, %v1909_v7  ;;  %v5641_v40 = vld [vmem:[%s6867_s27 + $0x48] sm:$0xff] }
0x15f7   :  { %v1920_v35 = vand.u32 2147483647, %v1909_v7  ;;  %v5653_v2 = vld [vmem:[%s6863_s26 + $0x8] sm:$0xff] }
0x15f8   :  { %v1902_v6 = vadd.f32 %v5260_v22, %v1899_v3  ;;  %v1923_v48 = vor.u32 1.1754944e-38, %v1922_v57  ;;  %v5660_v3 = vld [vmem:[%s6864_s28 + $0x8] sm:$0xff] }
0x15f9   :  { %vm1921_vm15 = vcmp.eq.f32.partialorder %v1920_v35, 8.507059e+37 }
0x15fa   :  { %v3990_v33 = vmul.f32 -1.442695, %v1902_v6  ;;  %v5667_v6 = vld [vmem:[%s6867_s27 + $0x38] sm:$0xff] }
0x15fc   :  { %4198 = vpow2.f32 %v3990_v33  ;;  %v4197_v15 = vpop.eup %4196  ;;  %v5673_v33 = vld [vmem:[%s6867_s27 + $0x30] sm:$0xff] }
0x15fd   :  { %v1912_v1 = vmul.f32 %v4197_v15, %v1909_v7  ;;  %vm1917_vm8 = vweird.f32 %v4197_v15  ;;  %v5647_v7 = vld [vmem:[%s6867_s27 + $0x40] sm:$0xff] }
0x15fe   :  { %vm1918_vm11 = vmor %vm1916_vm9, %vm1917_vm8 }
0x15ff   :  { %v1913_v42 = vsub.f32 1.0, %v1912_v1  ;;  %v5691_v1 = vld [vmem:[%s6867_s27 + $0x18] sm:$0xff] }
0x1601   :  { %v1914_v23 = vmul.f32 %v4197_v15, %v1913_v42  ;;  %v5703_v42 = vld [vmem:[%s6867_s27 + $0x8] sm:$0xff] }
0x1602   :  { %v4199_v8 = vpop.eup %4198 }
0x1603   :  { %v1910_v4 = vadd.f32 1.0, %v4199_v8  ;;  %v1915_v19 = vadd.f32 %v4197_v15, %v1914_v23  ;;  %v5685_v8 = vld [vmem:[%s6867_s27 + $0x20] sm:$0xff] }
0x1604   :  { %v5709_v23 = vld [vmem:[%s6867_s27] sm:$0xff] }
0x1605   :  { %4200 = vrcp.f32 %v1910_v4  ;;  %v1937_v20 = vand.u32 2147483648, %v1910_v4  ;;  %v1935_v22 = vand.u32 2147483647, %v1910_v4  ;;  %vm1931_vm12 = vweird.f32 %v1910_v4 }
0x1606   :  { %v1919_v14 = vsel %vm1918_vm11, %v4197_v15, %v1915_v19  ;;  %v5679_v15 = vld [vmem:[%s6867_s27 + $0x28] sm:$0xff] }
0x1607   :  { %v1938_v59 = vor.u32 1.1754944e-38, %v1937_v20  ;;  %vm1936_vm14 = vcmp.eq.f32.partialorder %v1935_v22, 8.507059e+37  ;;  %v5606_v31 = vsel %vm1921_vm15, %v1923_v48, %v1919_v14  ;;  %v1788_v48 = vmul.f32 %v5586_v25, %v4778_v50 }
0x1608   :  { %v1941_v61 = vmul.f32 %v5606_v31, %v5538_v39  ;;  %v5635_v39 = vld [vmem:[%s6867_s27 + $0x50] sm:$0xff] }
0x160b   :  { %v4201_v54 = vpop.eup %4200 }
0x160c   :  { %v1927_v13 = vmul.f32 %v4201_v54, %v1910_v4  ;;  %vm1932_vm10 = vweird.f32 %v4201_v54  ;;  %v5697_v4 = vld [vmem:[%s6867_s27 + $0x10] sm:$0xff] }
0x160d   :  { %vm1933_vm13 = vmor %vm1931_vm12, %vm1932_vm10 }
0x160e   :  { %v1928_v18 = vsub.f32 1.0, %v1927_v13 }
0x1610   :  { %v1929_v45 = vmul.f32 %v4201_v54, %v1928_v18 }
0x1612   :  { %v1930_v47 = vadd.f32 %v4201_v54, %v1929_v45 }
0x1614   :  { %v1934_v9 = vsel %vm1933_vm13, %v4201_v54, %v1930_v47 }
0x1615   :  { %v5604_v52 = vsel %vm1936_vm14, %v1938_v59, %v1934_v9  ;;  %v1790_v9 = vmul.f32 %v5584_v27, %v4780_v51 }
0x1616   :  { %v1942_v29 = vmul.f32 %v5604_v52, %v5534_v12  ;;  %v5629_v12 = vld [vmem:[%s6867_s27 + $0x58] sm:$0xff] }
0x1618   :  { %1957 = vmatpush.msra.mxu2 %v1942_v29  ;;  %1980 = vmatpush.msrb.mxu3 %v1942_v29 }
0x161a   :  { %1958 = vmatpush.msra.mxu2 %v1941_v61  ;;  %1981 = vmatpush.msrb.mxu3 %v1941_v61 }
0x161b   :  { %3991 = vmatmul.msk.f32.vlgmr.msra.gmra.mxu2 %vm164_vm0, %v5615_v32  ;;  %3993 = vmatmul.msk.f32.vlgmr.msrb.gmra.mxu3 %vm164_vm0, %v5622_v28 }
0x161c   :  { %2186 = vmatpush.msra.mxu3 %v5629_v12 }
0x161e   :  { %2187 = vmatpush.msra.mxu3 %v5635_v39 }
0x1620   :  { %2188 = vmatpush.msra.mxu3 %v5641_v40 }
0x1622   :  { %2189 = vmatpush.msra.mxu3 %v5647_v7 }
0x1623   :  { %3992 = vmatmul.msk.f32.gmra.mxu2 %vm164_vm0, %v5653_v2  ;;  %3994 = vmatmul.msk.f32.gmra.mxu3 %vm164_vm0, %v5660_v3 }
0x1624   :  { %2190 = vmatpush.msra.mxu3 %v5667_v6 }
0x1626   :  { %2191 = vmatpush.msra.mxu3 %v5673_v33 }
0x1628   :  { %2192 = vmatpush.msra.mxu3 %v5679_v15 }
0x162a   :  { %2193 = vmatpush.msra.mxu3 %v5685_v8 }
0x162c   :  { %2194 = vmatpush.msra.mxu3 %v5691_v1 }
0x162e   :  { %2195 = vmatpush.msra.mxu3 %v5697_v4 }
0x1630   :  { %2196 = vmatpush.msra.mxu3 %v5703_v42 }
0x1632   :  { %2197 = vmatpush.msra.mxu3 %v5709_v23 }
0x169e   :  { %v1960_v54 = vpop.f32.mrf.mxu2  ;;  %v1983_v13 = vpop.f32.mrf.mxu3 }
0x169f   :  { %1991 = vrot.lane.b32.xlu1 %v1960_v54, %s4347_s29  ;;  %1999 = vrot.lane.b32.xlu2 %v1983_v13, %s4348_s1  ;;  %v1792_v54 = vadd.f32 %v1790_v9, %v1788_v48  ;;  %v2042_v48 = vmul.f32 %v5606_v31, %v5523_v63 }
0x16a6   :  { %v1963_v18 = vpop.f32.mrf.mxu2  ;;  %v1986_v19 = vpop.f32.mrf.mxu3 }
0x16a7   :  { %1993 = vrot.lane.b32.xlu0 %v1963_v18, %s4347_s29  ;;  %2001 = vrot.lane.b32.xlu1 %v1986_v19, %s4348_s1 }
0x16f9   :  { %v2000_v57 = vpop.permute.xlu2 %1999 }
0x1711   :  { %v1992_v20 = vpop.permute.xlu1 %1991 }
0x1712   :  { %v2005_v45 = vsel %vm341_vm1, %v1941_v61, %v1992_v20  ;;  %v1794_v61 = vmul.f32 %v5592_v44, %v4786_v62 }
0x1713   :  { %v2007_v22 = vsel %vm344_vm2, %v2005_v45, %v2000_v57 }
0x1714   :  { %3995 = vmatmul.msk.f32.vlgmr.msrb.gmra.mxu0 %vm347_vm3, %v2007_v22  ;;  %v1796_v13 = vadd.f32 %v1794_v61, %v1792_v54 }
0x1719   :  { %v1994_v35 = vpop.permute.xlu0 %1993  ;;  %v2002_v47 = vpop.permute.xlu1 %2001 }
0x171a   :  { %v2006_v14 = vsel %vm341_vm1, %v1942_v29, %v1994_v35  ;;  %v1795_v29 = vmul.f32 %v5599_v11, %v4786_v62  ;;  %v2045_v35 = vsub.f32 1.0, %v5604_v52  ;;  %v2043_v11 = vmul.f32 %v5604_v52, %v5530_v26 }
0x171b   :  { %v2008_v59 = vsel %vm344_vm2, %v2006_v14, %v2002_v47 }
0x171c   :  { %3996 = vmatmul.msk.f32.gmra.mxu0 %vm347_vm3, %v2008_v59  ;;  %v1797_v57 = vadd.f32 %v1795_v29, %v5582_v5 }
0x1791   :  { %v2032_v18 = vpop.f32.mrf.mxu0 }
0x1792   :  { %v2033_v19 = vadd.f32 %v2032_v18, %v1796_v13 }
0x1794   :  { %v2038_v20 = vadd.f32 %v5317_v53, %v2033_v19 }
0x1796   :  { %4202 = vtanh.f32 %v2038_v20 }
0x1799   :  { %v2035_v45 = vpop.f32.mrf.mxu0 }
0x179a   :  { %v2036_v25 = vadd.f32 %v2035_v45, %v1797_v57 }
0x179c   :  { %v4203_v22 = vpop.eup %4202  ;;  %v2039_v27 = vadd.f32 %v5317_v53, %v2036_v25  ;;  %v2044_v53 = vsub.f32 1.0, %v5606_v31 }
0x179d   :  { %2048 = vrot.lane.b32.xlu0 %v4203_v22, %s4347_s29 }
0x179e   :  { %4204 = vtanh.f32 %v2039_v27 }
0x17a4   :  { %v4205_v44 = vpop.eup %4204 }
0x17a5   :  { %2050 = vrot.lane.b32.xlu2 %v4205_v44, %s4347_s29 }
0x17ff   :  { %v2051_v47 = vpop.permute.xlu2 %2050 }
0x1800   :  { %v2055_v14 = vmul.f32 %v2051_v47, %v2045_v35 }
0x1802   :  { %v5738_v59 = vadd.f32 %v2055_v14, %v2043_v11 }
0x1804   :  { %2106 = vrot.lane.b32.xlu1 %v5738_v59, %s4350_s4 }
0x180f   :  { %v2049_v5 = vpop.permute.xlu0 %2048 }
0x1810   :  { %v2054_v9 = vmul.f32 %v2049_v5, %v2044_v53 }
0x1812   :  { %v5745_v54 = vadd.f32 %v2054_v9, %v2042_v48 }
0x1814   :  { %2104 = vrot.lane.b32.xlu2 %v5745_v54, %s4350_s4 }
0x186e   :  { %v5753_v26 = vpop.permute.xlu2 %2104 }
0x1876   :  { %v5749_v61 = vpop.permute.xlu1 %2106 }
0x1877   :  { %2124 = vmatpush.msra.mxu1 %v5749_v61  ;;  %2147 = vmatpush.msrb.mxu2 %v5749_v61 }
0x1879   :  { %2125 = vmatpush.msra.mxu1 %v5753_v26  ;;  %2148 = vmatpush.msrb.mxu2 %v5753_v26 }
0x187a   :  { %3997 = vmatmul.msk.f32.vlgmr.msra.gmra.mxu1 %vm164_vm0, %v5615_v32  ;;  %3999 = vmatmul.msk.f32.vlgmr.msrb.gmra.mxu2 %vm164_vm0, %v5622_v28 }
0x187b   :  { %2323 = vmatpush.msra.mxu2 %v5354_v21  ;;  %v4356_v21 = vmov 6  }
0x187c   :  { %4122 = vset.pattern.permute.xlu1 %v4356_v21  ;;  %4123 = vset.pattern.permute.xlu2 %v4356_v21 }
0x187d   :  { %2324 = vmatpush.msra.mxu2 %v5360_v16  ;;  %4124 = vset.pattern.permute.xlu0 %v4356_v21  ;;  %v5828_v21 = vld [vmem:[%s6876_s0] ss:$0 sm:$0xff] }
0x187f   :  { %2325 = vmatpush.msra.mxu2 %v5366_v17 }
0x1881   :  { %2326 = vmatpush.msra.mxu2 %v5372_v38 }
0x1882   :  { %3998 = vmatmul.msk.f32.gmra.mxu1 %vm164_vm0, %v5653_v2  ;;  %4000 = vmatmul.msk.f32.gmra.mxu2 %vm164_vm0, %v5660_v3 }
0x1883   :  { %2327 = vmatpush.msra.mxu2 %v5382_v55 }
0x1885   :  { %2328 = vmatpush.msra.mxu2 %v5388_v58  ;;  %v5783_v58 = vld [vmem:[%s6865_s23 + $0x8] sm:$0xff] }
0x1887   :  { %2329 = vmatpush.msra.mxu2 %v5394_v43  ;;  %v5792_v43 = vld [vmem:[%s6865_s23] sm:$0xff] }
0x1889   :  { %2330 = vmatpush.msra.mxu2 %v5400_v41 }
0x188b   :  { %2331 = vmatpush.msra.mxu2 %v5406_v0 }
0x188d   :  { %2332 = vmatpush.msra.mxu2 %v5412_v34 }
0x188f   :  { %2333 = vmatpush.msra.mxu2 %v5418_v49 }
0x1891   :  { %2334 = vmatpush.msra.mxu2 %v5424_v56 }
0x18f7   :  { %v2127_v16 = vpop.f32.mrf.mxu1 }
0x18f8   :  { %2158 = vrot.lane.b32.xlu0 %v2127_v16, %s4347_s29 }
0x18fd   :  { %v2150_v17 = vpop.f32.mrf.mxu2 }
0x18fe   :  { %2166 = vrot.lane.b32.xlu1 %v2150_v17, %s4348_s1 }
0x18ff   :  { %v2130_v38 = vpop.f32.mrf.mxu1 }
0x1900   :  { %2160 = vrot.lane.b32.xlu2 %v2130_v38, %s4347_s29 }
0x1905   :  { %v2153_v55 = vpop.f32.mrf.mxu2 }
0x1906   :  { %2063 = vperm.xlu1 %4122, %v5783_v58   ;;  %2168 = vrot.lane.b32.xlu0 %v2153_v55, %s4348_s1 }
0x1908   :  { %2073 = vperm.xlu2 %4123, %v6884_v24  }
0x190e   :  { %2069 = vperm.xlu1 %4122, %v6886_v10   ;;  %2059 = vperm.xlu0 %4124, %v5792_v43  }
0x1910   :  { %2085 = vperm.xlu2 %4123, %v6885_v36  }
0x1916   :  { %2081 = vperm.xlu1 %4122, %v6877_v37  }
0x195a   :  { %v2161_v41 = vpop.permute.xlu2 %2160 }
0x195b   :  { %v2173_v52 = vsel %vm341_vm1, %v5749_v61, %v2161_v41 }
0x1962   :  { %v2074_v63 = vpop.permute.xlu2 %2073 }
0x1963   :  { %v2095_v18 = vmul.f32 %v2074_v63, %v4780_v51  ;;  %v2077_v53 = vmul.f32 %v2074_v63, %v6888_v46 }
0x196a   :  { %v2159_v0 = vpop.permute.xlu0 %2158  ;;  %v5823_v48 = vpop.permute.xlu2 %2085 }
0x196b   :  { %v2172_v34 = vsel %vm341_vm1, %v5753_v26, %v2159_v0  ;;  %v2089_v17 = vmul.f32 %v5823_v48, %v6889_v60 }
0x1970   :  { %v2167_v49 = vpop.permute.xlu1 %2166 }
0x1971   :  { %v2174_v56 = vsel %vm344_vm2, %v2172_v34, %v2167_v49 }
0x1972   :  { %4001 = vmatmul.msk.f32.vlgmr.msra.gmra.mxu3 %vm347_vm3, %v2174_v56 }
0x1978   :  { %v2064_v31 = vpop.permute.xlu1 %2063  ;;  %v2169_v13 = vpop.permute.xlu0 %2168 }
0x1979   :  { %v2093_v19 = vmul.f32 %v2064_v31, %v4778_v50  ;;  %v2175_v20 = vsel %vm344_vm2, %v2173_v52, %v2169_v13  ;;  %v2067_v47 = vmul.f32 %v2064_v31, %v6887_v30 }
0x197a   :  { %4002 = vmatmul.msk.f32.gmra.mxu3 %vm347_vm3, %v2175_v20 }
0x197b   :  { %v5807_v29 = vadd.f32 %v2095_v18, %v2093_v19  ;;  %v2079_v9 = vadd.f32 %v2077_v53, %v2067_v47 }
0x197d   :  { %v2091_v55 = vadd.f32 %v2089_v17, %v2079_v9 }
0x1980   :  { %v5809_v57 = vpop.permute.xlu1 %2069  ;;  %v5811_v45 = vpop.permute.xlu0 %2059 }
0x1981   :  { %v2076_v22 = vmul.f32 %v5809_v57, %v6888_v46  ;;  %v2066_v27 = vmul.f32 %v5811_v45, %v6887_v30 }
0x1983   :  { %v2078_v35 = vadd.f32 %v2076_v22, %v2066_v27 }
0x1988   :  { %v5813_v25 = vpop.permute.xlu1 %2081 }
0x1989   :  { %v2088_v44 = vmul.f32 %v5813_v25, %v6889_v60 }
0x198b   :  { %v2090_v11 = vadd.f32 %v2088_v44, %v2078_v35 }
0x19f5   :  { %v2199_v14 = vpop.f32.mrf.mxu3 }
0x19f6   :  { %v2200_v5 = vadd.f32 %v2199_v14, %v2090_v11 }
0x19f8   :  { %v2205_v16 = vadd.f32 %v5828_v21, %v2200_v5 }
0x19fa   :  { %v4003_v38 = vmul.f32 -1.442695, %v2205_v16 }
0x19fc   :  { %4206 = vpow2.f32 %v4003_v38 }
0x19fd   :  { %v2202_v41 = vpop.f32.mrf.mxu3 }
0x19fe   :  { %v2203_v0 = vadd.f32 %v2202_v41, %v2091_v55 }
0x1a00   :  { %v2206_v34 = vadd.f32 %v5828_v21, %v2203_v0 }
0x1a02   :  { %v4207_v49 = vpop.eup %4206  ;;  %v4004_v56 = vmul.f32 -1.442695, %v2206_v34 }
0x1a03   :  { %v2213_v63 = vadd.f32 1.0, %v4207_v49 }
0x1a04   :  { %4208 = vpow2.f32 %v4004_v56  ;;  %v2098_v56 = vmul.f32 %v5813_v25, %v4786_v62 }
0x1a05   :  { %4210 = vrcp.f32 %v2213_v63  ;;  %vm2220_vm5 = vweird.f32 %v2213_v63  ;;  %v2226_v11 = vand.u32 2147483648, %v2213_v63  ;;  %v2224_v5 = vand.u32 2147483647, %v2213_v63 }
0x1a07   :  { %v2227_v38 = vor.u32 1.1754944e-38, %v2226_v11  ;;  %vm2225_vm11 = vcmp.eq.f32.partialorder %v2224_v5, 8.507059e+37 }
0x1a0a   :  { %v4209_v52 = vpop.eup %4208 }
0x1a0b   :  { %v4211_v31 = vpop.eup %4210  ;;  %v2214_v13 = vadd.f32 1.0, %v4209_v52 }
0x1a0c   :  { %v2216_v18 = vmul.f32 %v4211_v31, %v2213_v63  ;;  %vm2221_vm4 = vweird.f32 %v4211_v31 }
0x1a0d   :  { %4212 = vrcp.f32 %v2214_v13  ;;  %v2241_v47 = vand.u32 2147483648, %v2214_v13  ;;  %v2239_v53 = vand.u32 2147483647, %v2214_v13  ;;  %vm2222_vm7 = vmor %vm2220_vm5, %vm2221_vm4  ;;  %vm2235_vm8 = vweird.f32 %v2214_v13 }
0x1a0e   :  { %v2217_v19 = vsub.f32 1.0, %v2216_v18  ;;  %v5881_v18 = vld [vmem:[%s6815_s8] ss:$0 sm:$0xff] }
0x1a0f   :  { %v2242_v17 = vor.u32 1.1754944e-38, %v2241_v47  ;;  %vm2240_vm10 = vcmp.eq.f32.partialorder %v2239_v53, 8.507059e+37 }
0x1a10   :  { %v2218_v20 = vmul.f32 %v4211_v31, %v2217_v19 }
0x1a12   :  { %v2219_v35 = vadd.f32 %v4211_v31, %v2218_v20 }
0x1a13   :  { %v4213_v22 = vpop.eup %4212 }
0x1a14   :  { %v2231_v27 = vmul.f32 %v4213_v22, %v2214_v13  ;;  %vm2236_vm6 = vweird.f32 %v4213_v22  ;;  %v2223_v16 = vsel %vm2222_vm7, %v4211_v31, %v2219_v35 }
0x1a15   :  { %vm2237_vm9 = vmor %vm2235_vm8, %vm2236_vm6  ;;  %v5836_v0 = vsel %vm2225_vm11, %v2227_v38, %v2223_v16  ;;  %v4331_v38 = vld [vmem:[%s6814_s6 + $0x50] sm:$0xff] }
0x1a16   :  { %v2232_v44 = vsub.f32 1.0, %v2231_v27  ;;  %v2245_v49 = vmul.f32 %v5836_v0, %v5753_v26  ;;  %v2092_v26 = vmul.f32 %v5811_v45, %v4778_v50  ;;  %v2348_v35 = vsub.f32 1.0, %v5836_v0 }
0x1a17   :  { %v2346_v11 = vmul.f32 %v5836_v0, %v5745_v54  ;;  %v4334_v0 = vld [vmem:[%s6814_s6 + $0x38] sm:$0xff] }
0x1a18   :  { %v2233_v14 = vmul.f32 %v4213_v22, %v2232_v44 }
0x1a1a   :  { %v2234_v9 = vadd.f32 %v4213_v22, %v2233_v14 }
0x1a1c   :  { %v2238_v55 = vsel %vm2237_vm9, %v4213_v22, %v2234_v9 }
0x1a1d   :  { %v5834_v41 = vsel %vm2240_vm10, %v2242_v17, %v2238_v55  ;;  %v4332_v55 = vld [vmem:[%s6814_s6 + $0x48] sm:$0xff] }
0x1a1e   :  { %v2246_v34 = vmul.f32 %v5834_v41, %v5749_v61  ;;  %v2094_v61 = vmul.f32 %v5809_v57, %v4780_v51  ;;  %v2099_v57 = vmul.f32 %v5823_v48, %v4786_v62  ;;  %v2347_v5 = vmul.f32 %v5834_v41, %v5738_v59  ;;  %v4330_v59 = vld [vmem:[%s6814_s6 + $0x58] sm:$0xff] }
0x1a20   :  { %2261 = vmatpush.msra.mxu0 %v2246_v34  ;;  %2284 = vmatpush.msrb.mxu1 %v2246_v34  ;;  %v2096_v63 = vadd.f32 %v2094_v61, %v2092_v26  ;;  %v2101_v45 = vadd.f32 %v2099_v57, %v5807_v29  ;;  %v2349_v29 = vsub.f32 1.0, %v5834_v41  ;;  %v4333_v41 = vld [vmem:[%s6814_s6 + $0x40] sm:$0xff] }
0x1a22   :  { %2262 = vmatpush.msra.mxu0 %v2245_v49  ;;  %2285 = vmatpush.msrb.mxu1 %v2245_v49  ;;  %v2100_v52 = vadd.f32 %v2098_v56, %v2096_v63 }
0x1a23   :  { %4005 = vmatmul.msk.f32.vlgmr.msra.gmra.mxu0 %vm164_vm0, %v5615_v32  ;;  %4007 = vmatmul.msk.f32.vlgmr.msrb.gmra.mxu1 %vm164_vm0, %v5622_v28 }
0x1a24   :  { %2490 = vmatpush.msra.mxu1 %v5629_v12 }
0x1a26   :  { %2491 = vmatpush.msra.mxu1 %v5635_v39 }
0x1a28   :  { %2492 = vmatpush.msra.mxu1 %v5641_v40 }
0x1a2a   :  { %2493 = vmatpush.msra.mxu1 %v5647_v7 }
0x1a2b   :  { %4006 = vmatmul.msk.f32.gmra.mxu0 %vm164_vm0, %v5653_v2  ;;  %4008 = vmatmul.msk.f32.gmra.mxu1 %vm164_vm0, %v5660_v3 }
0x1a2c   :  { %2494 = vmatpush.msra.mxu1 %v5667_v6 }
0x1a2e   :  { %2495 = vmatpush.msra.mxu1 %v5673_v33 }
0x1a30   :  { %2496 = vmatpush.msra.mxu1 %v5679_v15 }
0x1a32   :  { %2497 = vmatpush.msra.mxu1 %v5685_v8 }
0x1a34   :  { %2498 = vmatpush.msra.mxu1 %v5691_v1 }
0x1a36   :  { %2499 = vmatpush.msra.mxu1 %v5697_v4 }
0x1a38   :  { %2500 = vmatpush.msra.mxu1 %v5703_v42 }
0x1a3a   :  { %2501 = vmatpush.msra.mxu1 %v5709_v23 }
0x1aa0   :  { %v2264_v12 = vpop.f32.mrf.mxu0  ;;  %v2287_v39 = vpop.f32.mrf.mxu1 }
0x1aa1   :  { %2303 = vrot.lane.b32.xlu0 %v2287_v39, %s4348_s1  ;;  %2295 = vrot.lane.b32.xlu2 %v2264_v12, %s4347_s29  ;;  %v4337_v12 = vld [vmem:[%s6814_s6 + $0x20] sm:$0xff]  ;;  %v4338_v39 = vld [vmem:[%s6814_s6 + $0x18] sm:$0xff] }
0x1aa8   :  { %v2267_v40 = vpop.f32.mrf.mxu0  ;;  %v2290_v7 = vpop.f32.mrf.mxu1 }
0x1aa9   :  { %2297 = vrot.lane.b32.xlu1 %v2267_v40, %s4347_s29  ;;  %2305 = vrot.lane.b32.xlu2 %v2290_v7, %s4348_s1  ;;  %v4339_v40 = vld [vmem:[%s6814_s6 + $0x10] sm:$0xff]  ;;  %v4340_v7 = vld [vmem:[%s6814_s6 + $0x8] sm:$0xff] }
0x1afb   :  { %v2296_v6 = vpop.permute.xlu2 %2295 }
0x1afc   :  { %v2309_v33 = vsel %vm341_vm1, %v2245_v49, %v2296_v6  ;;  %v4336_v49 = vld [vmem:[%s6814_s6 + $0x28] sm:$0xff]  ;;  %v4341_v6 = vld [vmem:[%s6814_s6] sm:$0xff] }
0x1b03   :  { %v2306_v1 = vpop.permute.xlu2 %2305 }
0x1b13   :  { %v2304_v15 = vpop.permute.xlu0 %2303 }
0x1b14   :  { %v2311_v8 = vsel %vm344_vm2, %v2309_v33, %v2304_v15  ;;  %v4357_v33 = vmov 7  }
0x1b15   :  { %4009 = vmatmul.msk.f32.vlgmr.msra.gmra.mxu2 %vm347_vm3, %v2311_v8  ;;  %4125 = vset.pattern.permute.xlu2 %v4357_v33 }
0x1b16   :  { %4127 = vset.pattern.permute.xlu1 %v4357_v33  ;;  %4126 = vset.pattern.permute.xlu0 %v4357_v33 }
0x1b1b   :  { %v2298_v4 = vpop.permute.xlu1 %2297 }
0x1b1c   :  { %v2310_v42 = vsel %vm341_vm1, %v2246_v34, %v2298_v4  ;;  %v4335_v34 = vld [vmem:[%s6814_s6 + $0x30] sm:$0xff] }
0x1b1d   :  { %v2312_v23 = vsel %vm344_vm2, %v2310_v42, %v2306_v1 }
0x1b1e   :  { %4010 = vmatmul.msk.f32.gmra.mxu2 %vm347_vm3, %v2312_v23 }
0x1b98   :  { %v2336_v31 = vpop.f32.mrf.mxu2 }
0x1b99   :  { %v2337_v13 = vadd.f32 %v2336_v31, %v2100_v52 }
0x1b9b   :  { %v2342_v19 = vadd.f32 %v5881_v18, %v2337_v13 }
0x1b9d   :  { %4214 = vtanh.f32 %v2342_v19 }
0x1ba1   :  { %v2339_v20 = vpop.f32.mrf.mxu2 }
0x1ba2   :  { %v2340_v22 = vadd.f32 %v2339_v20, %v2101_v45 }
0x1ba3   :  { %v4215_v25 = vpop.eup %4214 }
0x1ba4   :  { %v2343_v27 = vadd.f32 %v5881_v18, %v2340_v22  ;;  %2352 = vrot.lane.b32.xlu1 %v4215_v25, %s4347_s29 }
0x1ba6   :  { %4216 = vtanh.f32 %v2343_v27 }
0x1bac   :  { %v4217_v44 = vpop.eup %4216 }
0x1bad   :  { %2354 = vrot.lane.b32.xlu0 %v4217_v44, %s4347_s29 }
0x1c16   :  { %v2353_v47 = vpop.permute.xlu1 %2352 }
0x1c17   :  { %v2358_v48 = vmul.f32 %v2353_v47, %v2348_v35 }
0x1c19   :  { %v5893_v14 = vadd.f32 %v2358_v48, %v2346_v11 }
0x1c1b   :  { %2408 = vrot.lane.b32.xlu0 %v5893_v14, %s4350_s4 }
0x1c1f   :  { %v2355_v53 = vpop.permute.xlu0 %2354 }
0x1c20   :  { %v2359_v9 = vmul.f32 %v2355_v53, %v2349_v29 }
0x1c22   :  { %v5900_v16 = vadd.f32 %v2359_v9, %v2347_v5 }
0x1c24   :  { %2410 = vrot.lane.b32.xlu2 %v5900_v16, %s4350_s4 }
0x1c7e   :  { %v5904_v17 = vpop.permute.xlu2 %2410 }
0x1c7f   :  { %2428 = vmatpush.msrb.mxu3 %v5904_v17  ;;  %2451 = vmatpush.msrb.mxu0 %v5904_v17 }
0x1c8d   :  { %v5908_v54 = vpop.permute.xlu0 %2408 }
0x1c8e   :  { %2429 = vmatpush.msrb.mxu3 %v5908_v54  ;;  %2452 = vmatpush.msrb.mxu0 %v5908_v54 }
0x1c8f   :  { %4011 = vmatmul.msk.f32.vlgmr.msrb.gmra.mxu3 %vm164_vm0, %v5615_v32  ;;  %4013 = vmatmul.msk.f32.vlgmr.msrb.gmra.mxu0 %vm164_vm0, %v5622_v28 }
0x1c90   :  { %2627 = vmatpush.msra.mxu0 %v4330_v59 }
0x1c92   :  { %2628 = vmatpush.msra.mxu0 %v4331_v38 }
0x1c94   :  { %2629 = vmatpush.msra.mxu0 %v4332_v55 }
0x1c96   :  { %2630 = vmatpush.msra.mxu0 %v4333_v41 }
0x1c97   :  { %4012 = vmatmul.msk.f32.gmra.mxu3 %vm164_vm0, %v5653_v2  ;;  %4014 = vmatmul.msk.f32.gmra.mxu0 %vm164_vm0, %v5660_v3 }
0x1c98   :  { %2631 = vmatpush.msra.mxu0 %v4334_v0 }
0x1c9a   :  { %2632 = vmatpush.msra.mxu0 %v4335_v34 }
0x1c9c   :  { %2633 = vmatpush.msra.mxu0 %v4336_v49 }
0x1c9e   :  { %2634 = vmatpush.msra.mxu0 %v4337_v12 }
0x1ca0   :  { %2635 = vmatpush.msra.mxu0 %v4338_v39 }
0x1ca2   :  { %2636 = vmatpush.msra.mxu0 %v4339_v40 }
0x1ca4   :  { %2637 = vmatpush.msra.mxu0 %v4340_v7 }
0x1ca6   :  { %2638 = vmatpush.msra.mxu0 %v4341_v6 }
0x1d0c   :  { %v2454_v15 = vpop.f32.mrf.mxu0 }
0x1d0d   :  { %2470 = vrot.lane.b32.xlu2 %v2454_v15, %s4348_s1 }
0x1d12   :  { %v2431_v8 = vpop.f32.mrf.mxu3 }
0x1d13   :  { %2462 = vrot.lane.b32.xlu1 %v2431_v8, %s4347_s29 }
0x1d14   :  { %v2457_v1 = vpop.f32.mrf.mxu0 }
0x1d15   :  { %2367 = vperm.xlu2 %4125, %v5783_v58  }
0x1d1a   :  { %v2434_v4 = vpop.f32.mrf.mxu3 }
0x1d1b   :  { %2472 = vrot.lane.b32.xlu1 %v2457_v1, %s4348_s1  ;;  %2464 = vrot.lane.b32.xlu0 %v2434_v4, %s4347_s29 }
0x1d1d   :  { %2373 = vperm.xlu2 %4125, %v6886_v10  }
0x1d23   :  { %2363 = vperm.xlu1 %4127, %v5792_v43   ;;  %2377 = vperm.xlu0 %4126, %v6884_v24  }
0x1d25   :  { %2385 = vperm.xlu2 %4125, %v6877_v37  }
0x1d2b   :  { %2389 = vperm.xlu1 %4127, %v6885_v36  }
0x1d67   :  { %v2471_v42 = vpop.permute.xlu2 %2470 }
0x1d6f   :  { %v5970_v26 = vpop.permute.xlu2 %2367 }
0x1d70   :  { %v2371_v35 = vmul.f32 %v5970_v26, %v6887_v30 }
0x1d77   :  { %v2374_v36 = vpop.permute.xlu2 %2373 }
0x1d78   :  { %v2398_v63 = vmul.f32 %v2374_v36, %v4780_v51  ;;  %v2380_v19 = vmul.f32 %v2374_v36, %v6888_v46 }
0x1d7f   :  { %v5982_v57 = vpop.permute.xlu2 %2385 }
0x1d80   :  { %v2392_v20 = vmul.f32 %v5982_v57, %v6889_v60 }
0x1d85   :  { %v2463_v23 = vpop.permute.xlu1 %2462 }
0x1d86   :  { %v2476_v58 = vsel %vm341_vm1, %v5908_v54, %v2463_v23 }
0x1d87   :  { %v2478_v61 = vsel %vm344_vm2, %v2476_v58, %v2471_v42 }
0x1d88   :  { %4015 = vmatmul.msk.f32.vlgmr.msra.gmra.mxu1 %vm347_vm3, %v2478_v61 }
0x1d8d   :  { %v2473_v10 = vpop.permute.xlu1 %2472  ;;  %v2465_v56 = vpop.permute.xlu0 %2464 }
0x1d8e   :  { %v2477_v24 = vsel %vm341_vm1, %v5904_v17, %v2465_v56 }
0x1d8f   :  { %v2479_v37 = vsel %vm344_vm2, %v2477_v24, %v2473_v10 }
0x1d90   :  { %4016 = vmatmul.msk.f32.gmra.mxu1 %vm347_vm3, %v2479_v37 }
0x1d95   :  { %v2364_v43 = vpop.permute.xlu1 %2363  ;;  %v5986_v22 = vpop.permute.xlu0 %2377 }
0x1d96   :  { %v2396_v52 = vmul.f32 %v2364_v43, %v4778_v50  ;;  %v2370_v13 = vmul.f32 %v2364_v43, %v6887_v30  ;;  %v2381_v47 = vmul.f32 %v5986_v22, %v6888_v46 }
0x1d98   :  { %v5978_v31 = vadd.f32 %v2398_v63, %v2396_v52  ;;  %v2382_v45 = vadd.f32 %v2380_v19, %v2370_v13  ;;  %v2383_v53 = vadd.f32 %v2381_v47, %v2371_v35  ;;  %v2397_v35 = vmul.f32 %v5970_v26, %v4778_v50 }
0x1d99   :  { %v2399_v47 = vmul.f32 %v5986_v22, %v4780_v51 }
0x1d9a   :  { %v2394_v25 = vadd.f32 %v2392_v20, %v2382_v45  ;;  %v2402_v20 = vmul.f32 %v5982_v57, %v4786_v62 }
0x1d9d   :  { %v5988_v27 = vpop.permute.xlu1 %2389 }
0x1d9e   :  { %v2393_v48 = vmul.f32 %v5988_v27, %v6889_v60 }
0x1da0   :  { %v2395_v9 = vadd.f32 %v2393_v48, %v2383_v53  ;;  %v2403_v48 = vmul.f32 %v5988_v27, %v4786_v62  ;;  %v2401_v53 = vadd.f32 %v2399_v47, %v2397_v35 }
0x1e05   :  { %v2503_v44 = vpop.f32.mrf.mxu1 }
0x1e06   :  { %v2504_v11 = vadd.f32 %v2503_v44, %v2394_v25  ;;  %v2404_v25 = vadd.f32 %v2402_v20, %v5978_v31 }
0x1e08   :  { %v2509_v29 = vadd.f32 %v5828_v21, %v2504_v11 }
0x1e0a   :  { %v4017_v5 = vmul.f32 -1.442695, %v2509_v29 }
0x1e0c   :  { %4218 = vpow2.f32 %v4017_v5  ;;  %v2405_v5 = vadd.f32 %v2403_v48, %v2401_v53 }
0x1e0d   :  { %v2506_v59 = vpop.f32.mrf.mxu1 }
0x1e0e   :  { %v2507_v38 = vadd.f32 %v2506_v59, %v2395_v9 }
0x1e10   :  { %v2510_v55 = vadd.f32 %v5828_v21, %v2507_v38 }
0x1e12   :  { %v4219_v41 = vpop.eup %4218  ;;  %v4018_v0 = vmul.f32 -1.442695, %v2510_v55 }
0x1e13   :  { %v2517_v30 = vadd.f32 1.0, %v4219_v41 }
0x1e14   :  { %4220 = vpow2.f32 %v4018_v0 }
0x1e15   :  { %4222 = vrcp.f32 %v2517_v30  ;;  %vm2524_vm13 = vweird.f32 %v2517_v30  ;;  %v2530_v21 = vand.u32 2147483648, %v2517_v30  ;;  %v2528_v4 = vand.u32 2147483647, %v2517_v30 }
0x1e17   :  { %v2531_v61 = vor.u32 1.1754944e-38, %v2530_v21  ;;  %vm2529_vm7 = vcmp.eq.f32.partialorder %v2528_v4, 8.507059e+37  ;;  %v6107_v21 = vld [vmem:[%s6820_s11 + $0x38] sm:$0xff]  ;;  %v6125_v4 = vld [vmem:[%s6820_s11 + $0x20] sm:$0xff] }
0x1e1a   :  { %v4221_v46 = vpop.eup %4220 }
0x1e1b   :  { %v4223_v34 = vpop.eup %4222  ;;  %v2518_v49 = vadd.f32 1.0, %v4221_v46 }
0x1e1c   :  { %v2520_v12 = vmul.f32 %v4223_v34, %v2517_v30  ;;  %vm2525_vm12 = vweird.f32 %v4223_v34 }
0x1e1d   :  { %4224 = vrcp.f32 %v2518_v49  ;;  %v2545_v15 = vand.u32 2147483648, %v2518_v49  ;;  %v2543_v1 = vand.u32 2147483647, %v2518_v49  ;;  %vm2526_vm15 = vmor %vm2524_vm13, %vm2525_vm12  ;;  %vm2539_vm4 = vweird.f32 %v2518_v49 }
0x1e1e   :  { %v2521_v60 = vsub.f32 1.0, %v2520_v12 }
0x1e1f   :  { %v2546_v58 = vor.u32 1.1754944e-38, %v2545_v15  ;;  %vm2544_vm6 = vcmp.eq.f32.partialorder %v2543_v1, 8.507059e+37  ;;  %v6101_v15 = vld [vmem:[%s6820_s11 + $0x40] sm:$0xff]  ;;  %v6119_v1 = vld [vmem:[%s6820_s11 + $0x28] sm:$0xff] }
0x1e20   :  { %v2522_v39 = vmul.f32 %v4223_v34, %v2521_v60 }
0x1e22   :  { %v2523_v33 = vadd.f32 %v4223_v34, %v2522_v39 }
0x1e23   :  { %v4225_v40 = vpop.eup %4224 }
0x1e24   :  { %v2535_v7 = vmul.f32 %v4225_v40, %v2518_v49  ;;  %vm2540_vm14 = vweird.f32 %v4225_v40  ;;  %v2527_v23 = vsel %vm2526_vm15, %v4223_v34, %v2523_v33  ;;  %v6066_v34 = vld [vmem:[%s6817_s9 + $0x8] sm:$0xff] }
0x1e25   :  { %vm2541_vm5 = vmor %vm2539_vm4, %vm2540_vm14  ;;  %v2532_v24 = vsel %vm2529_vm7, %v2531_v61, %v2527_v23  ;;  %v6071_v49 = vld [vmem:[%s6818_s10 + $0x8] sm:$0xff]  ;;  %v6137_v23 = vld [vmem:[%s6820_s11 + $0x10] sm:$0xff] }
0x1e26   :  { %v2536_v6 = vsub.f32 1.0, %v2535_v7  ;;  %v2549_v36 = vmul.f32 %v2532_v24, %v5908_v54  ;;  %v2652_v51 = vsub.f32 1.0, %v2532_v24  ;;  %v2650_v62 = vmul.f32 %v2532_v24, %v5893_v14  ;;  %v6048_v14 = vld [vmem:[%s6817_s9] sm:$0xff]  ;;  %v6084_v7 = vld [vmem:[%s6820_s11 + $0x58] sm:$0xff]  ;;  %v6095_v33 = vld [vmem:[%s6820_s11 + $0x48] sm:$0xff] }
0x1e27   :  { %v6150_v61 = vld [vmem:[%s6820_s11] sm:$0xff] }
0x1e28   :  { %v2537_v8 = vmul.f32 %v4225_v40, %v2536_v6  ;;  %v6089_v6 = vld [vmem:[%s6820_s11 + $0x50] sm:$0xff] }
0x1e2a   :  { %v2538_v42 = vadd.f32 %v4225_v40, %v2537_v8  ;;  %v6113_v8 = vld [vmem:[%s6820_s11 + $0x30] sm:$0xff] }
0x1e2c   :  { %v2542_v10 = vsel %vm2541_vm5, %v4225_v40, %v2538_v42  ;;  %v6131_v42 = vld [vmem:[%s6820_s11 + $0x18] sm:$0xff] }
0x1e2d   :  { %v2547_v56 = vsel %vm2544_vm6, %v2546_v58, %v2542_v10  ;;  %v6143_v58 = vld [vmem:[%s6820_s11 + $0x8] sm:$0xff] }
0x1e2e   :  { %v2550_v37 = vmul.f32 %v2547_v56, %v5904_v17  ;;  %v2653_v38 = vsub.f32 1.0, %v2547_v56 }
0x1e30   :  { %2565 = vmatpush.msrb.mxu2 %v2550_v37  ;;  %2588 = vmatpush.msra.mxu3 %v2550_v37 }
0x1e32   :  { %2566 = vmatpush.msrb.mxu2 %v2549_v36  ;;  %2589 = vmatpush.msra.mxu3 %v2549_v36 }
0x1e33   :  { %4019 = vmatmul.msk.f32.vlgmr.msrb.gmra.mxu2 %vm164_vm0, %v5615_v32  ;;  %4021 = vmatmul.msk.f32.vlgmr.msra.gmra.mxu3 %vm164_vm0, %v5622_v28 }
0x1e34   :  { %2777 = vmatpush.msrb.mxu3 %v6084_v7 }
0x1e36   :  { %2778 = vmatpush.msrb.mxu3 %v6089_v6 }
0x1e38   :  { %2779 = vmatpush.msrb.mxu3 %v6095_v33 }
0x1e3a   :  { %2780 = vmatpush.msrb.mxu3 %v6101_v15 }
0x1e3b   :  { %4020 = vmatmul.msk.f32.gmra.mxu2 %vm164_vm0, %v5653_v2  ;;  %4022 = vmatmul.msk.f32.gmra.mxu3 %vm164_vm0, %v5660_v3 }
0x1e3c   :  { %2781 = vmatpush.msrb.mxu3 %v6107_v21 }
0x1e3e   :  { %2782 = vmatpush.msrb.mxu3 %v6113_v8 }
0x1e40   :  { %2783 = vmatpush.msrb.mxu3 %v6119_v1 }
0x1e42   :  { %2784 = vmatpush.msrb.mxu3 %v6125_v4 }
0x1e44   :  { %2785 = vmatpush.msrb.mxu3 %v6131_v42 }
0x1e46   :  { %2786 = vmatpush.msrb.mxu3 %v6137_v23 }
0x1e48   :  { %2787 = vmatpush.msrb.mxu3 %v6143_v58 }
0x1e4a   :  { %2788 = vmatpush.msrb.mxu3 %v6150_v61 }
0x1eb6   :  { %v2568_v43 = vpop.f32.mrf.mxu2  ;;  %v2591_v17 = vpop.f32.mrf.mxu3 }
0x1eb7   :  { %2599 = vrot.lane.b32.xlu0 %v2568_v43, %s4347_s29  ;;  %2607 = vrot.lane.b32.xlu1 %v2591_v17, %s4348_s1 }
0x1ebe   :  { %v2571_v54 = vpop.f32.mrf.mxu2  ;;  %v2594_v63 = vpop.f32.mrf.mxu3 }
0x1ebf   :  { %2609 = vrot.lane.b32.xlu0 %v2594_v63, %s4348_s1  ;;  %2601 = vrot.lane.b32.xlu2 %v2571_v54, %s4347_s29  ;;  %v4130_v63 = vld [vmem:[%s6819_s17] ss:$0 sm:$0xff] }
0x1f19   :  { %v2602_v3 = vpop.permute.xlu2 %2601 }
0x1f1a   :  { %v2614_v13 = vsel %vm341_vm1, %v2550_v37, %v2602_v3 }
0x1f29   :  { %v2600_v32 = vpop.permute.xlu0 %2599  ;;  %v2608_v28 = vpop.permute.xlu1 %2607 }
0x1f2a   :  { %v2613_v52 = vsel %vm341_vm1, %v2549_v36, %v2600_v32 }
0x1f2b   :  { %v2615_v2 = vsel %vm344_vm2, %v2613_v52, %v2608_v28 }
0x1f2c   :  { %4023 = vmatmul.msk.f32.vlgmr.msra.gmra.mxu0 %vm347_vm3, %v2615_v2 }
0x1f31   :  { %v2610_v19 = vpop.permute.xlu0 %2609 }
0x1f32   :  { %v2616_v45 = vsel %vm344_vm2, %v2614_v13, %v2610_v19 }
0x1f34   :  { %4024 = vmatmul.msk.f32.gmra.mxu0 %vm347_vm3, %v2616_v45 }
0x1fa9   :  { %v2640_v44 = vpop.f32.mrf.mxu0 }
0x1faa   :  { %v2641_v11 = vadd.f32 %v2640_v44, %v2404_v25 }
0x1fac   :  { %v2646_v29 = vadd.f32 %v5881_v18, %v2641_v11 }
0x1fae   :  { %4226 = vtanh.f32 %v2646_v29 }
0x1fb1   :  { %v2643_v9 = vpop.f32.mrf.mxu0 }
0x1fb2   :  { %v2644_v57 = vadd.f32 %v2643_v9, %v2405_v5 }
0x1fb4   :  { %v4227_v59 = vpop.eup %4226  ;;  %v2647_v31 = vadd.f32 %v5881_v18, %v2644_v57  ;;  %v2651_v18 = vmul.f32 %v2547_v56, %v5900_v16  ;;  %v6053_v16 = vld [vmem:[%s6818_s10] sm:$0xff] }
0x1fb5   :  { %2656 = vrot.lane.b32.xlu2 %v4227_v59, %s4347_s29 }
0x1fb6   :  { %4228 = vtanh.f32 %v2647_v31 }
0x1fbc   :  { %v4229_v50 = vpop.eup %4228 }
0x1fbd   :  { %2658 = vrot.lane.b32.xlu1 %v4229_v50, %s4347_s29 }
0x200f   :  { %v2657_v26 = vpop.permute.xlu2 %2656 }
0x2010   :  { %v2662_v22 = vmul.f32 %v2657_v26, %v2652_v51 }
0x2012   :  { %v6032_v27 = vadd.f32 %v2662_v22, %v2650_v62 }
0x2014   :  { %2680 = vrot.lane.b32.xlu1 %v6032_v27, %s4350_s4 }
0x202f   :  { %v2659_v55 = vpop.permute.xlu1 %2658 }
0x2030   :  { %v2663_v41 = vmul.f32 %v2659_v55, %v2653_v38  ;;  %v143_v55 = vld [vmem:[%s6821_s13 + $0x58] sm:$0xff] }
0x2032   :  { %v6037_v0 = vadd.f32 %v2663_v41, %v2651_v18 }
0x2034   :  { %2682 = vrot.lane.b32.xlu0 %v6037_v0, %s4350_s4 }
0x2086   :  { %v6055_v46 = vpop.permute.xlu1 %2680 }
0x20a6   :  { %v6041_v30 = vpop.permute.xlu0 %2682 }
0x20a7   :  { %2706 = vmatpush.msrb.mxu1 %v6041_v30  ;;  %2735 = vmatpush.msra.mxu2 %v6041_v30 }
0x20a9   :  { %2707 = vmatpush.msrb.mxu1 %v6055_v46  ;;  %2736 = vmatpush.msra.mxu2 %v6055_v46 }
0x20aa   :  { %4025 = vmatmul.msk.f32.vlgmr.msrb.gmra.mxu1 %vm164_vm0, %v6048_v14  ;;  %4027 = vmatmul.msk.f32.vlgmr.msra.gmra.mxu2 %vm164_vm0, %v6053_v16 }
0x20b2   :  { %4026 = vmatmul.msk.f32.gmra.mxu1 %vm164_vm0, %v6066_v34  ;;  %4028 = vmatmul.msk.f32.gmra.mxu2 %vm164_vm0, %v6071_v49 }
0x2127   :  { %v2709_v12 = vpop.f32.mrf.mxu1 }
0x2128   :  { %2746 = vrot.lane.b32.xlu2 %v2709_v12, %s4347_s29 }
0x212d   :  { %v2738_v60 = vpop.f32.mrf.mxu2 }
0x212e   :  { %2754 = vrot.lane.b32.xlu0 %v2738_v60, %s4348_s1  ;;  %v142_v60 = vld [vmem:[%s6821_s13 + $0x50] sm:$0xff] }
0x212f   :  { %v2712_v39 = vpop.f32.mrf.mxu1 }
0x2130   :  { %2748 = vrot.lane.b32.xlu1 %v2712_v39, %s4347_s29  ;;  %v6179_v39 = vadd.f32 %v143_v55, %v6084_v7  ;;  %v140_v7 = vld [vmem:[%s6821_s13 + $0x40] sm:$0xff] }
0x2135   :  { %v2741_v40 = vpop.f32.mrf.mxu2 }
0x2136   :  { %2756 = vrot.lane.b32.xlu2 %v2741_v40, %s4348_s1 }
0x2182   :  { %v2747_v10 = vpop.permute.xlu2 %2746 }
0x2183   :  { %v2760_v56 = vsel %vm341_vm1, %v6055_v46, %v2747_v10  ;;  %v6191_v10 = vadd.f32 %v142_v60, %v6089_v6  ;;  %v139_v6 = vld [vmem:[%s6821_s13 + $0x38] sm:$0xff] }
0x2190   :  { %v2757_v17 = vpop.permute.xlu2 %2756 }
0x21a0   :  { %v2755_v24 = vpop.permute.xlu0 %2754 }
0x21a1   :  { %v2762_v37 = vsel %vm344_vm2, %v2760_v56, %v2755_v24  ;;  %v6210_v56 = vadd.f32 %v140_v7, %v6101_v15  ;;  %v138_v24 = vld [vmem:[%s6821_s13 + $0x30] sm:$0xff]  ;;  %v136_v15 = vld [vmem:[%s6821_s13 + $0x20] sm:$0xff] }
0x21a2   :  { %4029 = vmatmul.msk.f32.vlgmr.msrb.gmra.mxu3 %vm347_vm3, %v2762_v37  ;;  %v2749_v36 = vpop.permute.xlu1 %2748  ;;  %v6217_v37 = vadd.f32 %v139_v6, %v6107_v21 }
0x21a3   :  { %v2761_v43 = vsel %vm341_vm1, %v6041_v30, %v2749_v36  ;;  %v6224_v36 = vadd.f32 %v138_v24, %v6113_v8  ;;  %v135_v8 = vld [vmem:[%s6821_s13 + $0x18] sm:$0xff] }
0x21a4   :  { %v2763_v54 = vsel %vm344_vm2, %v2761_v43, %v2757_v17  ;;  %v6242_v43 = vadd.f32 %v136_v15, %v6125_v4  ;;  %v134_v17 = vld [vmem:[%s6821_s13 + $0x10] sm:$0xff]  ;;  %v132_v4 = vld [vmem:[%s6821_s13] sm:$0xff] }
0x21aa   :  { %4030 = vmatmul.msk.f32.gmra.mxu3 %vm347_vm3, %v2763_v54  ;;  %v6249_v54 = vadd.f32 %v135_v8, %v6131_v42  ;;  %v6267_v42 = vadd.f32 %v132_v4, %v6150_v61  ;;  %v6287_v61 = vld [vmem:[%s6822_s12 + $0x48] sm:$0xff] }
0x2225   :  { %v2790_v32 = vpop.f32.mrf.mxu3 }
0x2226   :  { %v2791_v28 = vadd.f32 %v4130_v63, %v2790_v32 }
0x2228   :  { %v4031_v52 = vmul.f32 -1.442695, %v2791_v28 }
0x222a   :  { %4230 = vpow2.f32 %v4031_v52 }
0x222d   :  { %v2793_v2 = vpop.f32.mrf.mxu3 }
0x222e   :  { %v2794_v3 = vadd.f32 %v4130_v63, %v2793_v2  ;;  %v6256_v63 = vadd.f32 %v134_v17, %v6137_v23  ;;  %v6275_v23 = vld [vmem:[%s6822_s12 + $0x58] sm:$0xff] }
0x222f   :  { %2915 = vmatpush.msrb.mxu2 %v6275_v23 }
0x2230   :  { %v4231_v13 = vpop.eup %4230  ;;  %v4032_v19 = vmul.f32 -1.442695, %v2794_v3 }
0x2231   :  { %v2802_v45 = vadd.f32 1.0, %v4231_v13  ;;  %v6300_v13 = vld [vmem:[%s6822_s12 + $0x40] sm:$0xff] }
0x2232   :  { %4232 = vpow2.f32 %v4032_v19  ;;  %v6305_v19 = vld [vmem:[%s6822_s12 + $0x38] sm:$0xff] }
0x2233   :  { %4234 = vrcp.f32 %v2802_v45  ;;  %vm2809_vm9 = vweird.f32 %v2802_v45  ;;  %v2815_v57 = vand.u32 2147483648, %v2802_v45  ;;  %v2813_v50 = vand.u32 2147483647, %v2802_v45 }
0x2235   :  { %v2816_v22 = vor.u32 1.1754944e-38, %v2815_v57  ;;  %vm2814_vm15 = vcmp.eq.f32.partialorder %v2813_v50, 8.507059e+37  ;;  %v4131_v50 = vld [vmem:[%s6823_s18] ss:$0 sm:$0xff] }
0x2238   :  { %v4233_v20 = vpop.eup %4232 }
0x2239   :  { %v4235_v25 = vpop.eup %4234  ;;  %v2803_v44 = vadd.f32 1.0, %v4233_v20  ;;  %v6319_v20 = vld [vmem:[%s6822_s12 + $0x28] sm:$0xff] }
0x223a   :  { %v2805_v35 = vmul.f32 %v4235_v25, %v2802_v45  ;;  %vm2810_vm8 = vweird.f32 %v4235_v25  ;;  %v6312_v45 = vld [vmem:[%s6822_s12 + $0x30] sm:$0xff] }
0x223b   :  { %4236 = vrcp.f32 %v2803_v44  ;;  %v2830_v9 = vand.u32 2147483648, %v2803_v44  ;;  %v2828_v31 = vand.u32 2147483647, %v2803_v44  ;;  %vm2811_vm11 = vmor %vm2809_vm9, %vm2810_vm8  ;;  %vm2824_vm12 = vweird.f32 %v2803_v44 }
0x223c   :  { %v2806_v47 = vsub.f32 1.0, %v2805_v35  ;;  %v6340_v35 = vld [vmem:[%s6822_s12 + $0x10] sm:$0xff] }
0x223d   :  { %v2831_v62 = vor.u32 1.1754944e-38, %v2830_v9  ;;  %vm2829_vm14 = vcmp.eq.f32.partialorder %v2828_v31, 8.507059e+37 }
0x223e   :  { %v2807_v11 = vmul.f32 %v4235_v25, %v2806_v47  ;;  %v6347_v47 = vld [vmem:[%s6822_s12 + $0x8] sm:$0xff] }
0x2240   :  { %v2808_v5 = vadd.f32 %v4235_v25, %v2807_v11  ;;  %v6356_v11 = vld [vmem:[%s6822_s12] sm:$0xff] }
0x2241   :  { %v4237_v48 = vpop.eup %4236 }
0x2242   :  { %v2820_v29 = vmul.f32 %v4237_v48, %v2803_v44  ;;  %vm2825_vm10 = vweird.f32 %v4237_v48  ;;  %v2812_v26 = vsel %vm2811_vm11, %v4235_v25, %v2808_v5  ;;  %v6326_v25 = vld [vmem:[%s6822_s12 + $0x20] sm:$0xff]  ;;  %v6333_v44 = vld [vmem:[%s6822_s12 + $0x18] sm:$0xff] }
0x2243   :  { %vm2826_vm13 = vmor %vm2824_vm12, %vm2825_vm10  ;;  %v6169_v41 = vsel %vm2814_vm15, %v2816_v22, %v2812_v26 }
0x2244   :  { %v2821_v53 = vsub.f32 1.0, %v2820_v29  ;;  %v6185_v40 = vmul.f32 %v6169_v41, %v6055_v46 }
0x2246   :  { %v2822_v59 = vmul.f32 %v4237_v48, %v2821_v53 }
0x2248   :  { %v2823_v51 = vadd.f32 %v4237_v48, %v2822_v59 }
0x224a   :  { %v2827_v38 = vsel %vm2826_vm13, %v4237_v48, %v2823_v51 }
0x224b   :  { %v6167_v18 = vsel %vm2829_vm14, %v2831_v62, %v2827_v38 }
0x224c   :  { %v6173_v12 = vmul.f32 %v6167_v18, %v6041_v30  ;;  %v141_v30 = vld [vmem:[%s6821_s13 + $0x48] sm:$0xff]  ;;  %v2939_v6 = vsub.f32 1.0, %v6167_v18 }
0x224d   :  { %v6203_v46 = vadd.f32 %v141_v30, %v6095_v33  ;;  %v137_v33 = vld [vmem:[%s6821_s13 + $0x28] sm:$0xff] }
0x224e   :  { %2850 = vmatpush.msrb.mxu0 %v6173_v12  ;;  %2873 = vmatpush.msra.mxu1 %v6173_v12  ;;  %v6235_v21 = vadd.f32 %v137_v33, %v6119_v1  ;;  %v133_v1 = vld [vmem:[%s6821_s13 + $0x8] sm:$0xff]  ;;  %v2937_v33 = vmul.f32 %v6167_v18, %v6037_v0  ;;  %v6406_v0 = vld [vmem:[%s6824_s14 + $0x58] sm:$0xff]  ;;  %v6411_v18 = vld [vmem:[%s6824_s14 + $0x50] sm:$0xff] }
0x224f   :  { %v6263_v32 = vadd.f32 %v133_v1, %v6143_v58  ;;  %v6280_v58 = vld [vmem:[%s6822_s12 + $0x50] sm:$0xff] }
0x2250   :  { %2851 = vmatpush.msrb.mxu0 %v6185_v40  ;;  %2874 = vmatpush.msra.mxu1 %v6185_v40 }
0x2251   :  { %4033 = vmatmul.msk.f32.vlgmr.msrb.gmra.mxu0 %vm164_vm0, %v6048_v14  ;;  %4035 = vmatmul.msk.f32.vlgmr.msra.gmra.mxu1 %vm164_vm0, %v6053_v16 }
0x2252   :  { %3062 = vmatpush.msrb.mxu1 %v6179_v39  ;;  %2916 = vmatpush.msrb.mxu2 %v6280_v58 }
0x2254   :  { %3063 = vmatpush.msrb.mxu1 %v6191_v10  ;;  %2917 = vmatpush.msrb.mxu2 %v6287_v61 }
0x2256   :  { %3064 = vmatpush.msrb.mxu1 %v6203_v46  ;;  %2918 = vmatpush.msrb.mxu2 %v6300_v13 }
0x2258   :  { %3065 = vmatpush.msrb.mxu1 %v6210_v56  ;;  %2919 = vmatpush.msrb.mxu2 %v6305_v19 }
0x2259   :  { %4034 = vmatmul.msk.f32.gmra.mxu0 %vm164_vm0, %v6066_v34  ;;  %4036 = vmatmul.msk.f32.gmra.mxu1 %vm164_vm0, %v6071_v49 }
0x225a   :  { %3066 = vmatpush.msrb.mxu1 %v6217_v37  ;;  %2920 = vmatpush.msrb.mxu2 %v6312_v45 }
0x225c   :  { %3067 = vmatpush.msrb.mxu1 %v6224_v36  ;;  %2921 = vmatpush.msrb.mxu2 %v6319_v20 }
0x225e   :  { %3068 = vmatpush.msrb.mxu1 %v6235_v21  ;;  %2922 = vmatpush.msrb.mxu2 %v6326_v25 }
0x2260   :  { %3069 = vmatpush.msrb.mxu1 %v6242_v43  ;;  %2923 = vmatpush.msrb.mxu2 %v6333_v44 }
0x2262   :  { %3070 = vmatpush.msrb.mxu1 %v6249_v54  ;;  %2924 = vmatpush.msrb.mxu2 %v6340_v35 }
0x2264   :  { %3071 = vmatpush.msrb.mxu1 %v6256_v63  ;;  %2925 = vmatpush.msrb.mxu2 %v6347_v47 }
0x2266   :  { %3072 = vmatpush.msrb.mxu1 %v6263_v32  ;;  %2926 = vmatpush.msrb.mxu2 %v6356_v11 }
0x2268   :  { %3073 = vmatpush.msrb.mxu1 %v6267_v42  ;;  %3085 = vmatpush.msra.mxu2 %v6406_v0 }
0x226a   :  { %3220 = vmatpush.msra.mxu1 %v6275_v23  ;;  %3086 = vmatpush.msra.mxu2 %v6411_v18 }
0x226c   :  { %3221 = vmatpush.msra.mxu1 %v6280_v58 }
0x226e   :  { %3222 = vmatpush.msra.mxu1 %v6287_v61 }
0x2270   :  { %3223 = vmatpush.msra.mxu1 %v6300_v13 }
0x2272   :  { %3224 = vmatpush.msra.mxu1 %v6305_v19 }
0x2274   :  { %3225 = vmatpush.msra.mxu1 %v6312_v45 }
0x2276   :  { %3226 = vmatpush.msra.mxu1 %v6319_v20 }
0x2278   :  { %3227 = vmatpush.msra.mxu1 %v6326_v25 }
0x227a   :  { %3228 = vmatpush.msra.mxu1 %v6333_v44 }
0x227c   :  { %3229 = vmatpush.msra.mxu1 %v6340_v35 }
0x227e   :  { %3230 = vmatpush.msra.mxu1 %v6347_v47 }
0x2280   :  { %3231 = vmatpush.msra.mxu1 %v6356_v11 }
0x22ce   :  { %v2853_v28 = vpop.f32.mrf.mxu0  ;;  %v2876_v52 = vpop.f32.mrf.mxu1 }
0x22cf   :  { %2884 = vrot.lane.b32.xlu0 %v2853_v28, %s4347_s29  ;;  %2892 = vrot.lane.b32.xlu1 %v2876_v52, %s4348_s1  ;;  %v6422_v52 = vld [vmem:[%s6824_s14 + $0x48] sm:$0xff] }
0x22d0   :  { %3087 = vmatpush.msra.mxu2 %v6422_v52 }
0x22d6   :  { %v2856_v2 = vpop.f32.mrf.mxu0  ;;  %v2879_v3 = vpop.f32.mrf.mxu1 }
0x22d7   :  { %2894 = vrot.lane.b32.xlu0 %v2879_v3, %s4348_s1  ;;  %2886 = vrot.lane.b32.xlu2 %v2856_v2, %s4347_s29  ;;  %v6427_v2 = vld [vmem:[%s6824_s14 + $0x40] sm:$0xff]  ;;  %v6433_v3 = vld [vmem:[%s6824_s14 + $0x38] sm:$0xff] }
0x22d8   :  { %3088 = vmatpush.msra.mxu2 %v6427_v2 }
0x22da   :  { %3089 = vmatpush.msra.mxu2 %v6433_v3 }
0x2331   :  { %v2887_v9 = vpop.permute.xlu2 %2886 }
0x2332   :  { %v2899_v57 = vsel %vm341_vm1, %v6173_v12, %v2887_v9  ;;  %v2938_v12 = vsub.f32 1.0, %v6169_v41  ;;  %v6463_v9 = vld [vmem:[%s6824_s14 + $0x10] sm:$0xff] }
0x2341   :  { %v2885_v48 = vpop.permute.xlu0 %2884  ;;  %v2893_v29 = vpop.permute.xlu1 %2892 }
0x2342   :  { %v2898_v53 = vsel %vm341_vm1, %v6185_v40, %v2885_v48  ;;  %v2936_v40 = vmul.f32 %v6169_v41, %v6032_v27  ;;  %v6439_v48 = vld [vmem:[%s6824_s14 + $0x30] sm:$0xff] }
0x2343   :  { %v2900_v5 = vsel %vm344_vm2, %v2898_v53, %v2893_v29  ;;  %v6445_v29 = vld [vmem:[%s6824_s14 + $0x28] sm:$0xff]  ;;  %3090 = vmatpush.msra.mxu2 %v6439_v48  ;;  %v6451_v53 = vld [vmem:[%s6824_s14 + $0x20] sm:$0xff] }
0x2344   :  { %4037 = vmatmul.msk.f32.vlgmr.msrb.gmra.mxu2 %vm347_vm3, %v2900_v5  ;;  %v6457_v5 = vld [vmem:[%s6824_s14 + $0x18] sm:$0xff] }
0x2345   :  { %3091 = vmatpush.msra.mxu2 %v6445_v29 }
0x2347   :  { %3092 = vmatpush.msra.mxu2 %v6451_v53 }
0x2349   :  { %v2895_v59 = vpop.permute.xlu0 %2894  ;;  %3093 = vmatpush.msra.mxu2 %v6457_v5 }
0x234a   :  { %v2901_v31 = vsel %vm344_vm2, %v2899_v57, %v2895_v59  ;;  %v6469_v57 = vld [vmem:[%s6824_s14 + $0x8] sm:$0xff]  ;;  %v6476_v59 = vld [vmem:[%s6824_s14] sm:$0xff] }
0x234b   :  { %3094 = vmatpush.msra.mxu2 %v6463_v9 }
0x234c   :  { %4038 = vmatmul.msk.f32.gmra.mxu2 %vm347_vm3, %v2901_v31 }
0x234d   :  { %3095 = vmatpush.msra.mxu2 %v6469_v57 }
0x234f   :  { %3096 = vmatpush.msra.mxu2 %v6476_v59 }
0x2351   :  { %3359 = vmatpush.msrb.mxu2 %v6179_v39 }
0x2353   :  { %3360 = vmatpush.msrb.mxu2 %v6191_v10 }
0x2355   :  { %3361 = vmatpush.msrb.mxu2 %v6203_v46 }
0x2357   :  { %3362 = vmatpush.msrb.mxu2 %v6210_v56 }
0x2359   :  { %3363 = vmatpush.msrb.mxu2 %v6217_v37 }
0x235b   :  { %3364 = vmatpush.msrb.mxu2 %v6224_v36 }
0x235d   :  { %3365 = vmatpush.msrb.mxu2 %v6235_v21 }
0x235f   :  { %3366 = vmatpush.msrb.mxu2 %v6242_v43 }
0x2361   :  { %3367 = vmatpush.msrb.mxu2 %v6249_v54 }
0x2363   :  { %3368 = vmatpush.msrb.mxu2 %v6256_v63 }
0x2365   :  { %3369 = vmatpush.msrb.mxu2 %v6263_v32 }
0x2367   :  { %3370 = vmatpush.msrb.mxu2 %v6267_v42 }
0x23c7   :  { %v2928_v51 = vpop.f32.mrf.mxu2 }
0x23c8   :  { %v2929_v26 = vadd.f32 %v4131_v50, %v2928_v51 }
0x23ca   :  { %4238 = vtanh.f32 %v2929_v26 }
0x23cf   :  { %v2931_v62 = vpop.f32.mrf.mxu2 }
0x23d0   :  { %v4239_v22 = vpop.eup %4238  ;;  %v2932_v38 = vadd.f32 %v4131_v50, %v2931_v62 }
0x23d1   :  { %2942 = vrot.lane.b32.xlu2 %v4239_v22, %s4347_s29 }
0x23d2   :  { %4240 = vtanh.f32 %v2932_v38 }
0x23d8   :  { %v4241_v55 = vpop.eup %4240 }
0x23d9   :  { %2944 = vrot.lane.b32.xlu1 %v4241_v55, %s4347_s29 }
0x242b   :  { %v2943_v60 = vpop.permute.xlu2 %2942 }
0x242c   :  { %v2948_v30 = vmul.f32 %v2943_v60, %v2938_v12  ;;  %v6516_v12 = vld [vmem:[%s6825_s15] sm:$0xff] }
0x242e   :  { %v6376_v7 = vadd.f32 %v2948_v30, %v2936_v40 }
0x2430   :  { %2980 = vrot.lane.b32.xlu1 %v6376_v7, %s4350_s4 }
0x244b   :  { %v2945_v24 = vpop.permute.xlu1 %2944 }
0x244c   :  { %v2949_v15 = vmul.f32 %v2945_v24, %v2939_v6 }
0x244e   :  { %v6383_v8 = vadd.f32 %v2949_v15, %v2937_v33  ;;  %v6522_v33 = vld [vmem:[%s6825_s15 + $0x8] sm:$0xff] }
0x244f   :  { %6890 = vst [vmem:[#allocation5_spill] sm:$0xff] %v6522_v33 }
0x2450   :  { %2982 = vrot.lane.b32.xlu0 %v6383_v8, %s4350_s4 }
0x24a2   :  { %v6391_v27 = vpop.permute.xlu1 %2980 }
0x24c2   :  { %v6387_v17 = vpop.permute.xlu0 %2982 }
0x24c3   :  { %3000 = vmatpush.msra.mxu3 %v6387_v17  ;;  %3023 = vmatpush.msra.mxu0 %v6387_v17 }
0x24c5   :  { %3001 = vmatpush.msra.mxu3 %v6391_v27  ;;  %3024 = vmatpush.msra.mxu0 %v6391_v27 }
0x24c6   :  { %4039 = vmatmul.msk.f32.vlgmr.msra.gmra.mxu3 %vm164_vm0, %v6048_v14  ;;  %4041 = vmatmul.msk.f32.vlgmr.msra.gmra.mxu0 %vm164_vm0, %v6053_v16 }
0x24ce   :  { %4040 = vmatmul.msk.f32.gmra.mxu3 %vm164_vm0, %v6066_v34  ;;  %4042 = vmatmul.msk.f32.gmra.mxu0 %vm164_vm0, %v6071_v49 }
0x2543   :  { %v3026_v41 = vpop.f32.mrf.mxu0 }
0x2544   :  { %3042 = vrot.lane.b32.xlu0 %v3026_v41, %s4348_s1 }
0x2549   :  { %v3003_v1 = vpop.f32.mrf.mxu3 }
0x254a   :  { %3034 = vrot.lane.b32.xlu2 %v3003_v1, %s4347_s29 }
0x254b   :  { %v3029_v4 = vpop.f32.mrf.mxu0 }
0x2551   :  { %v3006_v28 = vpop.f32.mrf.mxu3 }
0x2552   :  { %3036 = vrot.lane.b32.xlu1 %v3006_v28, %s4347_s29  ;;  %3044 = vrot.lane.b32.xlu2 %v3029_v4, %s4348_s1 }
0x25a4   :  { %v3035_v31 = vpop.permute.xlu2 %3034 }
0x25a5   :  { %v3048_v50 = vsel %vm341_vm1, %v6391_v27, %v3035_v31 }
0x25ac   :  { %v3045_v62 = vpop.permute.xlu2 %3044 }
0x25b6   :  { %v3043_v51 = vpop.permute.xlu0 %3042 }
0x25b7   :  { %v3050_v26 = vsel %vm344_vm2, %v3048_v50, %v3043_v51 }
0x25b8   :  { %4043 = vmatmul.msk.f32.vlgmr.msrb.gmra.mxu1 %vm347_vm3, %v3050_v26  ;;  %4045 = vmatmul.msk.f32.vlgmr.msra.gmra.mxu2 %vm347_vm3, %v3050_v26 }
0x25b9   :  { %3517 = vmatpush.msra.mxu2 %v6275_v23 }
0x25bb   :  { %3518 = vmatpush.msra.mxu2 %v6280_v58 }
0x25bd   :  { %3519 = vmatpush.msra.mxu2 %v6287_v61 }
0x25bf   :  { %3520 = vmatpush.msra.mxu2 %v6300_v13 }
0x25c1   :  { %3521 = vmatpush.msra.mxu2 %v6305_v19 }
0x25c3   :  { %3522 = vmatpush.msra.mxu2 %v6312_v45 }
0x25c4   :  { %v3037_v22 = vpop.permute.xlu1 %3036 }
0x25c5   :  { %v3049_v38 = vsel %vm341_vm1, %v6387_v17, %v3037_v22  ;;  %3523 = vmatpush.msra.mxu2 %v6319_v20 }
0x25c6   :  { %v3051_v55 = vsel %vm344_vm2, %v3049_v38, %v3045_v62 }
0x25c7   :  { %4044 = vmatmul.msk.f32.gmra.mxu1 %vm347_vm3, %v3051_v55  ;;  %4046 = vmatmul.msk.f32.gmra.mxu2 %vm347_vm3, %v3051_v55 }
0x25c8   :  { %3524 = vmatpush.msra.mxu2 %v6326_v25 }
0x25ca   :  { %3525 = vmatpush.msra.mxu2 %v6333_v44 }
0x25cc   :  { %3526 = vmatpush.msra.mxu2 %v6340_v35 }
0x25ce   :  { %3527 = vmatpush.msra.mxu2 %v6347_v47 }
0x25d0   :  { %3528 = vmatpush.msra.mxu2 %v6356_v11 }
0x2635   :  { %v3075_v60 = vpop.f32.mrf.mxu1 }
0x2636   :  { %v3076_v40 = vadd.f32 %v3075_v60, %v6516_v12 }
0x2638   :  { %v4047_v30 = vmul.f32 -1.442695, %v3076_v40 }
0x263a   :  { %4242 = vpow2.f32 %v4047_v30 }
0x2640   :  { %v4243_v6 = vpop.eup %4242 }
0x2641   :  { %v3110_v24 = vadd.f32 1.0, %v4243_v6 }
0x2643   :  { %4244 = vrcp.f32 %v3110_v24  ;;  %vm3117_vm5 = vweird.f32 %v3110_v24  ;;  %v3123_v40 = vand.u32 2147483648, %v3110_v24 }
0x2644   :  { %v3078_v15 = vpop.f32.mrf.mxu1 }
0x2645   :  { %v3079_v41 = vadd.f32 %v3078_v15, %v6522_v33  ;;  %v3121_v15 = vand.u32 2147483647, %v3110_v24 }
0x2647   :  { %v4048_v1 = vmul.f32 -1.442695, %v3079_v41  ;;  %vm3122_vm11 = vcmp.eq.f32.partialorder %v3121_v15, 8.507059e+37 }
0x2649   :  { %4246 = vpow2.f32 %v4048_v1  ;;  %v4245_v4 = vpop.eup %4244 }
0x264a   :  { %v3113_v31 = vmul.f32 %v4245_v4, %v3110_v24  ;;  %vm3118_vm4 = vweird.f32 %v4245_v4 }
0x264b   :  { %vm3119_vm7 = vmor %vm3117_vm5, %vm3118_vm4 }
0x264c   :  { %v3114_v51 = vsub.f32 1.0, %v3113_v31  ;;  %v3124_v31 = vor.u32 1.1754944e-38, %v3123_v40 }
0x264e   :  { %v3115_v26 = vmul.f32 %v4245_v4, %v3114_v51 }
0x264f   :  { %v4247_v28 = vpop.eup %4246 }
0x2650   :  { %v3111_v50 = vadd.f32 1.0, %v4247_v28  ;;  %v3116_v55 = vadd.f32 %v4245_v4, %v3115_v26 }
0x2652   :  { %4248 = vrcp.f32 %v3111_v50  ;;  %v3138_v60 = vand.u32 2147483648, %v3111_v50  ;;  %v3136_v6 = vand.u32 2147483647, %v3111_v50  ;;  %vm3132_vm8 = vweird.f32 %v3111_v50 }
0x2653   :  { %v3120_v1 = vsel %vm3119_vm7, %v4245_v4, %v3116_v55 }
0x2654   :  { %v3139_v28 = vor.u32 1.1754944e-38, %v3138_v60  ;;  %vm3137_vm10 = vcmp.eq.f32.partialorder %v3136_v6, 8.507059e+37  ;;  %v3125_v26 = vsel %vm3122_vm11, %v3124_v31, %v3120_v1  ;;  %v3098_v1 = vpop.f32.mrf.mxu2 }
0x2658   :  { %v4249_v62 = vpop.eup %4248 }
0x2659   :  { %v3128_v22 = vmul.f32 %v4249_v62, %v3111_v50  ;;  %vm3133_vm6 = vweird.f32 %v4249_v62 }
0x265a   :  { %vm3134_vm9 = vmor %vm3132_vm8, %vm3133_vm6 }
0x265b   :  { %v3129_v38 = vsub.f32 1.0, %v3128_v22 }
0x265d   :  { %v3130_v30 = vmul.f32 %v4249_v62, %v3129_v38  ;;  %v3142_v38 = vmul.f32 %v3125_v26, %v6391_v27 }
0x265f   :  { %v3131_v41 = vadd.f32 %v4249_v62, %v3130_v30 }
0x2661   :  { %v3135_v51 = vsel %vm3134_vm9, %v4249_v62, %v3131_v41  ;;  %v6548_v41 = vld [vmem:[%s6826_s16] sm:$0xff] }
0x2662   :  { %v3140_v22 = vsel %vm3137_vm10, %v3139_v28, %v3135_v51  ;;  %v3099_v28 = vadd.f32 %v3098_v1, %v6548_v41 }
0x2663   :  { %v3143_v33 = vmul.f32 %v3140_v22, %v6387_v17  ;;  %v3242_v1 = vmul.f32 %v3140_v22, %v6383_v8 }
0x2665   :  { %3158 = vmatpush.msrb.mxu3 %v3143_v33  ;;  %3181 = vmatpush.msrb.mxu0 %v3143_v33 }
0x2667   :  { %3159 = vmatpush.msrb.mxu3 %v3142_v38  ;;  %3182 = vmatpush.msrb.mxu0 %v3142_v38 }
0x2668   :  { %4049 = vmatmul.msk.f32.vlgmr.msrb.gmra.mxu3 %vm164_vm0, %v6048_v14  ;;  %4051 = vmatmul.msk.f32.vlgmr.msrb.gmra.mxu0 %vm164_vm0, %v6053_v16 }
0x2670   :  { %4050 = vmatmul.msk.f32.gmra.mxu3 %vm164_vm0, %v6066_v34  ;;  %4052 = vmatmul.msk.f32.gmra.mxu0 %vm164_vm0, %v6071_v49 }
0x26e5   :  { %v3184_v24 = vpop.f32.mrf.mxu0 }
0x26e6   :  { %3200 = vrot.lane.b32.xlu1 %v3184_v24, %s4348_s1 }
0x26eb   :  { %v3161_v17 = vpop.f32.mrf.mxu3 }
0x26ec   :  { %3192 = vrot.lane.b32.xlu0 %v3161_v17, %s4347_s29 }
0x26ed   :  { %v3187_v27 = vpop.f32.mrf.mxu0 }
0x26f3   :  { %v3164_v4 = vpop.f32.mrf.mxu3 }
0x26f4   :  { %3202 = vrot.lane.b32.xlu0 %v3187_v27, %s4348_s1  ;;  %3194 = vrot.lane.b32.xlu2 %v3164_v4, %s4347_s29 }
0x274e   :  { %v3195_v40 = vpop.permute.xlu2 %3194 }
0x274f   :  { %v3207_v30 = vsel %vm341_vm1, %v3143_v33, %v3195_v40  ;;  %v6554_v33 = vld [vmem:[%s6826_s16 + $0x8] sm:$0xff] }
0x2758   :  { %v3201_v50 = vpop.permute.xlu1 %3200 }
0x275e   :  { %v3193_v62 = vpop.permute.xlu0 %3192 }
0x275f   :  { %v3206_v55 = vsel %vm341_vm1, %v3142_v38, %v3193_v62  ;;  %v3101_v38 = vpop.f32.mrf.mxu2  ;;  %v3243_v62 = vsub.f32 1.0, %v3125_v26 }
0x2760   :  { %v3208_v60 = vsel %vm344_vm2, %v3206_v55, %v3201_v50  ;;  %v3102_v24 = vadd.f32 %v3101_v38, %v6554_v33 }
0x2761   :  { %4053 = vmatmul.msk.f32.vlgmr.msra.gmra.mxu1 %vm347_vm3, %v3208_v60  ;;  %v3241_v60 = vmul.f32 %v3125_v26, %v6376_v7 }
0x2766   :  { %v3203_v6 = vpop.permute.xlu0 %3202 }
0x2767   :  { %v3209_v15 = vsel %vm344_vm2, %v3207_v30, %v3203_v6  ;;  %v3244_v6 = vsub.f32 1.0, %v3140_v22 }
0x2769   :  { %4054 = vmatmul.msk.f32.gmra.mxu1 %vm347_vm3, %v3209_v15 }
0x27de   :  { %v3233_v31 = vpop.f32.mrf.mxu1 }
0x27df   :  { %v3234_v51 = vadd.f32 %v3233_v31, %v3099_v28 }
0x27e1   :  { %4250 = vtanh.f32 %v3234_v51 }
0x27e6   :  { %v3236_v17 = vpop.f32.mrf.mxu1 }
0x27e7   :  { %v4251_v27 = vpop.eup %4250  ;;  %v3237_v4 = vadd.f32 %v3236_v17, %v3102_v24 }
0x27e8   :  { %3247 = vrot.lane.b32.xlu2 %v4251_v27, %s4347_s29 }
0x27e9   :  { %4252 = vtanh.f32 %v3237_v4 }
0x27ef   :  { %v4253_v50 = vpop.eup %4252 }
0x27f0   :  { %3249 = vrot.lane.b32.xlu1 %v4253_v50, %s4347_s29 }
0x2842   :  { %v3248_v55 = vpop.permute.xlu2 %3247 }
0x2843   :  { %v3253_v40 = vmul.f32 %v3248_v55, %v3243_v62 }
0x2845   :  { %v6560_v30 = vadd.f32 %v3253_v40, %v3241_v60 }
0x2847   :  { %3277 = vrot.lane.b32.xlu1 %v6560_v30, %s4350_s4 }
0x2862   :  { %v3250_v15 = vpop.permute.xlu1 %3249 }
0x2863   :  { %v3254_v28 = vmul.f32 %v3250_v15, %v3244_v6 }
0x2865   :  { %v6565_v31 = vadd.f32 %v3254_v28, %v3242_v1 }
0x2867   :  { %3279 = vrot.lane.b32.xlu0 %v6565_v31, %s4350_s4 }
0x28b9   :  { %v6573_v26 = vpop.permute.xlu1 %3277 }
0x28d9   :  { %v6569_v51 = vpop.permute.xlu0 %3279 }
0x28da   :  { %3297 = vmatpush.msra.mxu3 %v6569_v51  ;;  %3320 = vmatpush.msra.mxu0 %v6569_v51 }
0x28dc   :  { %3298 = vmatpush.msra.mxu3 %v6573_v26  ;;  %3321 = vmatpush.msra.mxu0 %v6573_v26 }
0x28dd   :  { %4055 = vmatmul.msk.f32.vlgmr.msra.gmra.mxu3 %vm164_vm0, %v6048_v14  ;;  %4057 = vmatmul.msk.f32.vlgmr.msra.gmra.mxu0 %vm164_vm0, %v6053_v16 }
0x28de   :  { %3382 = vmatpush.msrb.mxu3 %v6406_v0 }
0x28e0   :  { %3383 = vmatpush.msrb.mxu3 %v6411_v18 }
0x28e2   :  { %3384 = vmatpush.msrb.mxu3 %v6422_v52 }
0x28e4   :  { %3385 = vmatpush.msrb.mxu3 %v6427_v2 }
0x28e5   :  { %4056 = vmatmul.msk.f32.gmra.mxu3 %vm164_vm0, %v6066_v34  ;;  %4058 = vmatmul.msk.f32.gmra.mxu0 %vm164_vm0, %v6071_v49 }
0x28e6   :  { %3386 = vmatpush.msrb.mxu3 %v6433_v3 }
0x28e8   :  { %3387 = vmatpush.msrb.mxu3 %v6439_v48 }
0x28ea   :  { %3388 = vmatpush.msrb.mxu3 %v6445_v29 }
0x28ec   :  { %3389 = vmatpush.msrb.mxu3 %v6451_v53 }
0x28ee   :  { %3390 = vmatpush.msrb.mxu3 %v6457_v5 }
0x28f0   :  { %3391 = vmatpush.msrb.mxu3 %v6463_v9 }
0x28f2   :  { %3392 = vmatpush.msrb.mxu3 %v6469_v57 }
0x28f4   :  { %3393 = vmatpush.msrb.mxu3 %v6476_v59 }
0x28f6   :  { %3656 = vmatpush.msra.mxu3 %v6179_v39 }
0x28f8   :  { %3657 = vmatpush.msra.mxu3 %v6191_v10 }
0x28fa   :  { %3658 = vmatpush.msra.mxu3 %v6203_v46 }
0x28fc   :  { %3659 = vmatpush.msra.mxu3 %v6210_v56 }
0x28fe   :  { %3660 = vmatpush.msra.mxu3 %v6217_v37 }
0x2900   :  { %3661 = vmatpush.msra.mxu3 %v6224_v36 }
0x2902   :  { %3662 = vmatpush.msra.mxu3 %v6235_v21 }
0x2904   :  { %3663 = vmatpush.msra.mxu3 %v6242_v43 }
0x2906   :  { %3664 = vmatpush.msra.mxu3 %v6249_v54 }
0x2908   :  { %3665 = vmatpush.msra.mxu3 %v6256_v63 }
0x290a   :  { %3666 = vmatpush.msra.mxu3 %v6263_v32 }
0x290c   :  { %3667 = vmatpush.msra.mxu3 %v6267_v42 }
0x295a   :  { %v3323_v14 = vpop.f32.mrf.mxu0 }
0x295b   :  { %3339 = vrot.lane.b32.xlu0 %v3323_v14, %s4348_s1 }
0x2960   :  { %v3300_v16 = vpop.f32.mrf.mxu3 }
0x2961   :  { %3331 = vrot.lane.b32.xlu2 %v3300_v16, %s4347_s29 }
0x2962   :  { %v3326_v34 = vpop.f32.mrf.mxu0 }
0x2968   :  { %v3303_v49 = vpop.f32.mrf.mxu3 }
0x2969   :  { %3333 = vrot.lane.b32.xlu1 %v3303_v49, %s4347_s29  ;;  %3341 = vrot.lane.b32.xlu2 %v3326_v34, %s4348_s1  ;;  %v6642_v34 = vld [vmem:[%s6817_s9] sm:$0xff] }
0x296a   :  { %v6649_v49 = vld [vmem:[%s6818_s10] sm:$0xff] }
0x29bb   :  { %v3332_v39 = vpop.permute.xlu2 %3331 }
0x29bc   :  { %v3345_v10 = vsel %vm341_vm1, %v6573_v26, %v3332_v39 }
0x29c3   :  { %v3342_v37 = vpop.permute.xlu2 %3341 }
0x29cd   :  { %v3340_v46 = vpop.permute.xlu0 %3339 }
0x29ce   :  { %v3347_v56 = vsel %vm344_vm2, %v3345_v10, %v3340_v46 }
0x29cf   :  { %4059 = vmatmul.msk.f32.vlgmr.msrb.gmra.mxu2 %vm347_vm3, %v3347_v56  ;;  %4061 = vmatmul.msk.f32.vlgmr.msrb.gmra.mxu3 %vm347_vm3, %v3347_v56 }
0x29d0   :  { %3814 = vmatpush.msrb.mxu3 %v6275_v23 }
0x29d2   :  { %3815 = vmatpush.msrb.mxu3 %v6280_v58 }
0x29d4   :  { %3816 = vmatpush.msrb.mxu3 %v6287_v61  ;;  %v6891_v61 = vld [vmem:[#allocation5_spill] sm:$0xff] }
0x29d6   :  { %3817 = vmatpush.msrb.mxu3 %v6300_v13 }
0x29d8   :  { %3818 = vmatpush.msrb.mxu3 %v6305_v19 }
0x29da   :  { %3819 = vmatpush.msrb.mxu3 %v6312_v45 }
0x29db   :  { %v3334_v36 = vpop.permute.xlu1 %3333 }
0x29dc   :  { %v3346_v21 = vsel %vm341_vm1, %v6569_v51, %v3334_v36  ;;  %3820 = vmatpush.msrb.mxu3 %v6319_v20 }
0x29dd   :  { %v3348_v43 = vsel %vm344_vm2, %v3346_v21, %v3342_v37 }
0x29de   :  { %4060 = vmatmul.msk.f32.gmra.mxu2 %vm347_vm3, %v3348_v43  ;;  %4062 = vmatmul.msk.f32.gmra.mxu3 %vm347_vm3, %v3348_v43 }
0x29df   :  { %3821 = vmatpush.msrb.mxu3 %v6326_v25 }
0x29e1   :  { %3822 = vmatpush.msrb.mxu3 %v6333_v44 }
0x29e3   :  { %3823 = vmatpush.msrb.mxu3 %v6340_v35 }
0x29e5   :  { %3824 = vmatpush.msrb.mxu3 %v6347_v47 }
0x29e7   :  { %3825 = vmatpush.msrb.mxu3 %v6356_v11 }
0x2a52   :  { %v3372_v54 = vpop.f32.mrf.mxu2 }
0x2a53   :  { %v3373_v63 = vadd.f32 %v3372_v54, %v6516_v12 }
0x2a55   :  { %v4063_v32 = vmul.f32 -1.442695, %v3373_v63 }
0x2a57   :  { %4254 = vpow2.f32 %v4063_v32 }
0x2a5d   :  { %v4255_v42 = vpop.eup %4254 }
0x2a5e   :  { %v3407_v23 = vadd.f32 1.0, %v4255_v42 }
0x2a60   :  { %4256 = vrcp.f32 %v3407_v23  ;;  %vm3414_vm13 = vweird.f32 %v3407_v23  ;;  %v3420_v27 = vand.u32 2147483648, %v3407_v23  ;;  %v3418_v62 = vand.u32 2147483647, %v3407_v23 }
0x2a61   :  { %v3375_v58 = vpop.f32.mrf.mxu2 }
0x2a62   :  { %v3376_v13 = vadd.f32 %v3375_v58, %v6891_v61  ;;  %v3421_v6 = vor.u32 1.1754944e-38, %v3420_v27  ;;  %vm3419_vm7 = vcmp.eq.f32.partialorder %v3418_v62, 8.507059e+37 }
0x2a64   :  { %v4064_v19 = vmul.f32 -1.442695, %v3376_v13 }
0x2a66   :  { %4258 = vpow2.f32 %v4064_v19  ;;  %v4257_v45 = vpop.eup %4256 }
0x2a67   :  { %v3410_v25 = vmul.f32 %v4257_v45, %v3407_v23  ;;  %vm3415_vm12 = vweird.f32 %v4257_v45  ;;  %v3395_v23 = vpop.f32.mrf.mxu3 }
0x2a68   :  { %vm3416_vm15 = vmor %vm3414_vm13, %vm3415_vm12  ;;  %v3396_v58 = vadd.f32 %v3395_v23, %v6548_v41 }
0x2a69   :  { %v3411_v35 = vsub.f32 1.0, %v3410_v25 }
0x2a6b   :  { %v3412_v47 = vmul.f32 %v4257_v45, %v3411_v35 }
0x2a6c   :  { %v4259_v20 = vpop.eup %4258 }
0x2a6d   :  { %v3408_v44 = vadd.f32 1.0, %v4259_v20  ;;  %v3413_v24 = vadd.f32 %v4257_v45, %v3412_v47 }
0x2a6f   :  { %4260 = vrcp.f32 %v3408_v44  ;;  %v3435_v17 = vand.u32 2147483648, %v3408_v44  ;;  %v3433_v50 = vand.u32 2147483647, %v3408_v44  ;;  %vm3429_vm4 = vweird.f32 %v3408_v44 }
0x2a70   :  { %v3417_v60 = vsel %vm3416_vm15, %v4257_v45, %v3413_v24  ;;  %v3398_v45 = vpop.f32.mrf.mxu3 }
0x2a71   :  { %v3436_v40 = vor.u32 1.1754944e-38, %v3435_v17  ;;  %vm3434_vm6 = vcmp.eq.f32.partialorder %v3433_v50, 8.507059e+37  ;;  %v3422_v28 = vsel %vm3419_vm7, %v3421_v6, %v3417_v60  ;;  %v3399_v20 = vadd.f32 %v3398_v45, %v6554_v33 }
0x2a72   :  { %v3439_v16 = vmul.f32 %v3422_v28, %v6573_v26  ;;  %v6663_v26 = vld [vmem:[%s6818_s10 + $0x8] sm:$0xff] }
0x2a75   :  { %v4261_v11 = vpop.eup %4260 }
0x2a76   :  { %v3425_v22 = vmul.f32 %v4261_v11, %v3408_v44  ;;  %vm3430_vm14 = vweird.f32 %v4261_v11 }
0x2a77   :  { %vm3431_vm5 = vmor %vm3429_vm4, %vm3430_vm14 }
0x2a78   :  { %v3426_v38 = vsub.f32 1.0, %v3425_v22 }
0x2a7a   :  { %v3427_v4 = vmul.f32 %v4261_v11, %v3426_v38  ;;  %v3538_v38 = vmul.f32 %v3422_v28, %v6560_v30 }
0x2a7c   :  { %v3428_v55 = vadd.f32 %v4261_v11, %v3427_v4 }
0x2a7e   :  { %v3432_v15 = vsel %vm3431_vm5, %v4261_v11, %v3428_v55  ;;  %v3540_v11 = vsub.f32 1.0, %v3422_v28 }
0x2a7f   :  { %v3437_v1 = vsel %vm3434_vm6, %v3436_v40, %v3432_v15 }
0x2a80   :  { %v3440_v14 = vmul.f32 %v3437_v1, %v6569_v51  ;;  %v6656_v51 = vld [vmem:[%s6817_s9 + $0x8] sm:$0xff]  ;;  %v3541_v27 = vsub.f32 1.0, %v3437_v1  ;;  %v3539_v50 = vmul.f32 %v3437_v1, %v6565_v31 }
0x2a82   :  { %3455 = vmatpush.msrb.mxu0 %v3440_v14  ;;  %3478 = vmatpush.msrb.mxu1 %v3440_v14 }
0x2a84   :  { %3456 = vmatpush.msrb.mxu0 %v3439_v16  ;;  %3479 = vmatpush.msrb.mxu1 %v3439_v16 }
0x2a85   :  { %4065 = vmatmul.msk.f32.vlgmr.msrb.gmra.mxu0 %vm164_vm0, %v6642_v34  ;;  %4067 = vmatmul.msk.f32.vlgmr.msrb.gmra.mxu1 %vm164_vm0, %v6649_v49 }
0x2a8d   :  { %4066 = vmatmul.msk.f32.gmra.mxu0 %vm164_vm0, %v6656_v51  ;;  %4068 = vmatmul.msk.f32.gmra.mxu1 %vm164_vm0, %v6663_v26 }
0x2b02   :  { %v3458_v39 = vpop.f32.mrf.mxu0  ;;  %v3481_v10 = vpop.f32.mrf.mxu1 }
0x2b03   :  { %3489 = vrot.lane.b32.xlu0 %v3458_v39, %s4347_s29  ;;  %3497 = vrot.lane.b32.xlu1 %v3481_v10, %s4348_s1 }
0x2b0a   :  { %v3461_v46 = vpop.f32.mrf.mxu0  ;;  %v3484_v56 = vpop.f32.mrf.mxu1 }
0x2b0b   :  { %3499 = vrot.lane.b32.xlu0 %v3484_v56, %s4348_s1  ;;  %3491 = vrot.lane.b32.xlu2 %v3461_v46, %s4347_s29 }
0x2b65   :  { %v3492_v54 = vpop.permute.xlu2 %3491 }
0x2b66   :  { %v3504_v63 = vsel %vm341_vm1, %v3440_v14, %v3492_v54 }
0x2b75   :  { %v3490_v37 = vpop.permute.xlu0 %3489  ;;  %v3498_v36 = vpop.permute.xlu1 %3497 }
0x2b76   :  { %v3503_v21 = vsel %vm341_vm1, %v3439_v16, %v3490_v37 }
0x2b77   :  { %v3505_v43 = vsel %vm344_vm2, %v3503_v21, %v3498_v36 }
0x2b78   :  { %4069 = vmatmul.msk.f32.vlgmr.msra.gmra.mxu2 %vm347_vm3, %v3505_v43 }
0x2b7d   :  { %v3500_v32 = vpop.permute.xlu0 %3499 }
0x2b7e   :  { %v3506_v42 = vsel %vm344_vm2, %v3504_v63, %v3500_v32 }
0x2b80   :  { %4070 = vmatmul.msk.f32.gmra.mxu2 %vm347_vm3, %v3506_v42 }
0x2bfb   :  { %v3530_v13 = vpop.f32.mrf.mxu2 }
0x2bfc   :  { %v3531_v19 = vadd.f32 %v3530_v13, %v3396_v58 }
0x2bfe   :  { %4262 = vtanh.f32 %v3531_v19 }
0x2c03   :  { %v3533_v25 = vpop.f32.mrf.mxu2 }
0x2c04   :  { %v4263_v44 = vpop.eup %4262  ;;  %v3534_v35 = vadd.f32 %v3533_v25, %v3399_v20 }
0x2c05   :  { %3544 = vrot.lane.b32.xlu2 %v4263_v44, %s4347_s29 }
0x2c06   :  { %4264 = vtanh.f32 %v3534_v35 }
0x2c0c   :  { %v4265_v47 = vpop.eup %4264 }
0x2c0d   :  { %3546 = vrot.lane.b32.xlu1 %v4265_v47, %s4347_s29 }
0x2c5f   :  { %v3545_v22 = vpop.permute.xlu2 %3544 }
0x2c60   :  { %v3550_v24 = vmul.f32 %v3545_v22, %v3540_v11 }
0x2c62   :  { %v6682_v17 = vadd.f32 %v3550_v24, %v3538_v38 }
0x2c64   :  { %3574 = vrot.lane.b32.xlu1 %v6682_v17, %s4350_s4 }
0x2c7f   :  { %v3547_v4 = vpop.permute.xlu1 %3546 }
0x2c80   :  { %v3551_v62 = vmul.f32 %v3547_v4, %v3541_v27 }
0x2c82   :  { %v6687_v55 = vadd.f32 %v3551_v62, %v3539_v50 }
0x2c84   :  { %3576 = vrot.lane.b32.xlu0 %v6687_v55, %s4350_s4 }
0x2cd6   :  { %v6695_v40 = vpop.permute.xlu1 %3574 }
0x2cf6   :  { %v6691_v60 = vpop.permute.xlu0 %3576 }
0x2cf7   :  { %3594 = vmatpush.msra.mxu0 %v6691_v60  ;;  %3617 = vmatpush.msra.mxu1 %v6691_v60 }
0x2cf9   :  { %3595 = vmatpush.msra.mxu0 %v6695_v40  ;;  %3618 = vmatpush.msra.mxu1 %v6695_v40 }
0x2cfa   :  { %4071 = vmatmul.msk.f32.vlgmr.msra.gmra.mxu0 %vm164_vm0, %v6642_v34  ;;  %4073 = vmatmul.msk.f32.vlgmr.msra.gmra.mxu1 %vm164_vm0, %v6649_v49 }
0x2cfb   :  { %3679 = vmatpush.msrb.mxu0 %v6406_v0 }
0x2cfd   :  { %3680 = vmatpush.msrb.mxu0 %v6411_v18 }
0x2cff   :  { %3681 = vmatpush.msrb.mxu0 %v6422_v52 }
0x2d01   :  { %3682 = vmatpush.msrb.mxu0 %v6427_v2 }
0x2d02   :  { %4072 = vmatmul.msk.f32.gmra.mxu0 %vm164_vm0, %v6656_v51  ;;  %4074 = vmatmul.msk.f32.gmra.mxu1 %vm164_vm0, %v6663_v26 }
0x2d03   :  { %3683 = vmatpush.msrb.mxu0 %v6433_v3 }
0x2d05   :  { %3684 = vmatpush.msrb.mxu0 %v6439_v48 }
0x2d07   :  { %3685 = vmatpush.msrb.mxu0 %v6445_v29 }
0x2d09   :  { %3686 = vmatpush.msrb.mxu0 %v6451_v53 }
0x2d0b   :  { %3687 = vmatpush.msrb.mxu0 %v6457_v5 }
0x2d0d   :  { %3688 = vmatpush.msrb.mxu0 %v6463_v9 }
0x2d0f   :  { %3689 = vmatpush.msrb.mxu0 %v6469_v57 }
0x2d11   :  { %3690 = vmatpush.msrb.mxu0 %v6476_v59 }
0x2d77   :  { %v3597_v0 = vpop.f32.mrf.mxu0  ;;  %v3620_v18 = vpop.f32.mrf.mxu1 }
0x2d78   :  { %3636 = vrot.lane.b32.xlu0 %v3620_v18, %s4348_s1  ;;  %3628 = vrot.lane.b32.xlu2 %v3597_v0, %s4347_s29 }
0x2d7f   :  { %v3600_v52 = vpop.f32.mrf.mxu0  ;;  %v3623_v2 = vpop.f32.mrf.mxu1 }
0x2d80   :  { %3630 = vrot.lane.b32.xlu1 %v3600_v52, %s4347_s29  ;;  %3638 = vrot.lane.b32.xlu2 %v3623_v2, %s4348_s1 }
0x2dd2   :  { %v3629_v3 = vpop.permute.xlu2 %3628 }
0x2dd3   :  { %v3642_v48 = vsel %vm341_vm1, %v6695_v40, %v3629_v3 }
0x2dda   :  { %v3639_v5 = vpop.permute.xlu2 %3638 }
0x2dea   :  { %v3637_v29 = vpop.permute.xlu0 %3636 }
0x2deb   :  { %v3644_v53 = vsel %vm344_vm2, %v3642_v48, %v3637_v29 }
0x2dec   :  { %4075 = vmatmul.msk.f32.vlgmr.msra.gmra.mxu3 %vm347_vm3, %v3644_v53  ;;  %4077 = vmatmul.msk.f32.vlgmr.msrb.gmra.mxu0 %vm347_vm3, %v3644_v53 }
0x2df2   :  { %v3631_v9 = vpop.permute.xlu1 %3630 }
0x2df3   :  { %v3643_v57 = vsel %vm341_vm1, %v6691_v60, %v3631_v9 }
0x2df4   :  { %v3645_v59 = vsel %vm344_vm2, %v3643_v57, %v3639_v5 }
0x2df5   :  { %4076 = vmatmul.msk.f32.gmra.mxu3 %vm347_vm3, %v3645_v59  ;;  %4078 = vmatmul.msk.f32.gmra.mxu0 %vm347_vm3, %v3645_v59 }
0x2e69   :  { %v3692_v2 = vpop.f32.mrf.mxu0 }
0x2e6a   :  { %v3693_v3 = vadd.f32 %v3692_v2, %v6548_v41 }
0x2e6f   :  { %v3669_v6 = vpop.f32.mrf.mxu3 }
0x2e70   :  { %v3670_v15 = vadd.f32 %v3669_v6, %v6516_v12 }
0x2e72   :  { %v4079_v1 = vmul.f32 -1.442695, %v3670_v15  ;;  %v3695_v53 = vpop.f32.mrf.mxu0 }
0x2e73   :  { %v3696_v5 = vadd.f32 %v3695_v53, %v6554_v33 }
0x2e74   :  { %4266 = vpow2.f32 %v4079_v1 }
0x2e78   :  { %v3672_v28 = vpop.f32.mrf.mxu3 }
0x2e79   :  { %v3673_v14 = vadd.f32 %v3672_v28, %v6891_v61 }
0x2e7a   :  { %v4267_v16 = vpop.eup %4266 }
0x2e7b   :  { %v3704_v39 = vadd.f32 1.0, %v4267_v16  ;;  %v4080_v10 = vmul.f32 -1.442695, %v3673_v14 }
0x2e7d   :  { %4268 = vrcp.f32 %v3704_v39  ;;  %vm3711_vm9 = vweird.f32 %v3704_v39  ;;  %v3717_v61 = vand.u32 2147483648, %v3704_v39  ;;  %v3715_v13 = vand.u32 2147483647, %v3704_v39 }
0x2e7e   :  { %4270 = vpow2.f32 %v4080_v10 }
0x2e7f   :  { %v3718_v25 = vor.u32 1.1754944e-38, %v3717_v61  ;;  %vm3716_vm15 = vcmp.eq.f32.partialorder %v3715_v13, 8.507059e+37 }
0x2e83   :  { %v4269_v46 = vpop.eup %4268 }
0x2e84   :  { %v4271_v56 = vpop.eup %4270  ;;  %v3707_v37 = vmul.f32 %v4269_v46, %v3704_v39  ;;  %vm3712_vm8 = vweird.f32 %v4269_v46 }
0x2e85   :  { %v3705_v36 = vadd.f32 1.0, %v4271_v56  ;;  %vm3713_vm11 = vmor %vm3711_vm9, %vm3712_vm8 }
0x2e86   :  { %v3708_v21 = vsub.f32 1.0, %v3707_v37 }
0x2e87   :  { %4272 = vrcp.f32 %v3705_v36  ;;  %v3732_v42 = vand.u32 2147483648, %v3705_v36  ;;  %v3730_v58 = vand.u32 2147483647, %v3705_v36  ;;  %vm3726_vm12 = vweird.f32 %v3705_v36 }
0x2e88   :  { %v3709_v43 = vmul.f32 %v4269_v46, %v3708_v21 }
0x2e89   :  { %v3733_v20 = vor.u32 1.1754944e-38, %v3732_v42  ;;  %vm3731_vm14 = vcmp.eq.f32.partialorder %v3730_v58, 8.507059e+37  ;;  %v26_v58 = vstv %s6828_s20  ;;  %s4359_s20 = smov 2  }
0x2e8a   :  { %v3710_v32 = vadd.f32 %v4269_v46, %v3709_v43  ;;  %27 = vst [vmem:[#allocation2] sm:$0x1] %v26_v58 }
0x2e8c   :  { %v3714_v45 = vsel %vm3713_vm11, %v4269_v46, %v3710_v32 }
0x2e8d   :  { %v4273_v54 = vpop.eup %4272  ;;  %v6737_v47 = vsel %vm3716_vm15, %v3718_v25, %v3714_v45 }
0x2e8e   :  { %v3722_v63 = vmul.f32 %v4273_v54, %v3705_v36  ;;  %vm3727_vm10 = vweird.f32 %v4273_v54  ;;  %v3736_v22 = vmul.f32 %v6737_v47, %v6695_v40  ;;  %v3837_v16 = vsub.f32 1.0, %v6737_v47 }
0x2e8f   :  { %vm3728_vm13 = vmor %vm3726_vm12, %vm3727_vm10  ;;  %v3835_v46 = vmul.f32 %v6737_v47, %v6682_v17 }
0x2e90   :  { %v3723_v12 = vsub.f32 1.0, %v3722_v63 }
0x2e91   :  { %v4133_v25 = vld [vmem:[#allocation2] ss:$0 sm:$0xff] }
0x2e92   :  { %v3724_v23 = vmul.f32 %v4273_v54, %v3723_v12 }
0x2e94   :  { %v3725_v19 = vadd.f32 %v4273_v54, %v3724_v23 }
0x2e96   :  { %v3729_v44 = vsel %vm3728_vm13, %v4273_v54, %v3725_v19 }
0x2e97   :  { %v6735_v35 = vsel %vm3731_vm14, %v3733_v20, %v3729_v44 }
0x2e98   :  { %v3737_v11 = vmul.f32 %v6735_v35, %v6691_v60  ;;  %v3838_v63 = vsub.f32 1.0, %v6735_v35 }
0x2e9a   :  { %3752 = vmatpush.msrb.mxu1 %v3737_v11  ;;  %3775 = vmatpush.msrb.mxu2 %v3737_v11 }
0x2e9c   :  { %3753 = vmatpush.msrb.mxu1 %v3736_v22  ;;  %3776 = vmatpush.msrb.mxu2 %v3736_v22 }
0x2e9d   :  { %4081 = vmatmul.msk.f32.vlgmr.msrb.gmra.mxu1 %vm164_vm0, %v6642_v34  ;;  %4083 = vmatmul.msk.f32.vlgmr.msrb.gmra.mxu2 %vm164_vm0, %v6649_v49  ;;  %v4132_v34 = vld [vmem:[%s6827_s19] ss:$0 sm:$0xff] }
0x2ea5   :  { %4082 = vmatmul.msk.f32.gmra.mxu1 %vm164_vm0, %v6656_v51  ;;  %4084 = vmatmul.msk.f32.gmra.mxu2 %vm164_vm0, %v6663_v26  ;;  %vm3893_vm0 = vcmask 7168  }
0x2f1a   :  { %v3755_v38 = vpop.f32.mrf.mxu1 }
0x2f1b   :  { %3786 = vrot.lane.b32.xlu0 %v3755_v38, %s4347_s29 }
0x2f20   :  { %v3778_v24 = vpop.f32.mrf.mxu2 }
0x2f21   :  { %3794 = vrot.lane.b32.xlu1 %v3778_v24, %s4348_s1 }
0x2f22   :  { %v3758_v27 = vpop.f32.mrf.mxu1 }
0x2f23   :  { %3788 = vrot.lane.b32.xlu2 %v3758_v27, %s4347_s29 }
0x2f28   :  { %v3781_v4 = vpop.f32.mrf.mxu2 }
0x2f29   :  { %3796 = vrot.lane.b32.xlu0 %v3781_v4, %s4348_s1  ;;  %s4358_s1 = smov 1  }
0x2f31   :  { %2954 = vrot.lane.b32.xlu0 %v4132_v34, %s4347_s29 }
0x2f7d   :  { %v3789_v62 = vpop.permute.xlu2 %3788 }
0x2f7e   :  { %v3801_v60 = vsel %vm341_vm1, %v3737_v11, %v3789_v62 }
0x2f8d   :  { %v3787_v49 = vpop.permute.xlu0 %3786 }
0x2f8e   :  { %v3800_v51 = vsel %vm341_vm1, %v3736_v22, %v3787_v49 }
0x2f93   :  { %v3795_v26 = vpop.permute.xlu1 %3794 }
0x2f94   :  { %v3802_v50 = vsel %vm344_vm2, %v3800_v51, %v3795_v26 }
0x2f95   :  { %4085 = vmatmul.msk.f32.vlgmr.msrb.gmra.mxu3 %vm347_vm3, %v3802_v50 }
0x2f9b   :  { %v3797_v40 = vpop.permute.xlu0 %3796 }
0x2f9c   :  { %v3803_v0 = vsel %vm344_vm2, %v3801_v60, %v3797_v40  ;;  %vm3896_vm2 = vcmask 15360  }
0x2f9d   :  { %4086 = vmatmul.msk.f32.gmra.mxu3 %vm347_vm3, %v3803_v0  ;;  %vm3902_vm3 = vcmask 31744  }
0x2fa3   :  { %v2955_v18 = vpop.permute.xlu0 %2954 }
0x2fa4   :  { %v3554_v52 = vmul.f32 %v6682_v17, %v2955_v18  ;;  %v3257_v6 = vmul.f32 %v6560_v30, %v2955_v18  ;;  %v3258_v41 = vmul.f32 %v6565_v31, %v2955_v18  ;;  %v3555_v1 = vmul.f32 %v6687_v55, %v2955_v18 }
0x2fa5   :  { %v2958_v33 = vmul.f32 %v2955_v18, %v6383_v8  ;;  %v2957_v28 = vmul.f32 %v2955_v18, %v6376_v7  ;;  %v3836_v17 = vmul.f32 %v6735_v35, %v6687_v55 }
0x2fa6   :  { %3558 = vrot.lane.b32.xlu0 %v3554_v52, %s4350_s4 }
0x3018   :  { %v3827_v48 = vpop.f32.mrf.mxu3  ;;  %v3559_v13 = vpop.permute.xlu0 %3558 }
0x3019   :  { %v3828_v29 = vadd.f32 %v3827_v48, %v3693_v3  ;;  %v3564_v19 = vsel %vm341_vm1, %v3559_v13, 0.0 }
0x301b   :  { %4274 = vtanh.f32 %v3828_v29 }
0x3020   :  { %v3830_v9 = vpop.f32.mrf.mxu3 }
0x3021   :  { %v4275_v57 = vpop.eup %4274  ;;  %v3831_v59 = vadd.f32 %v3830_v9, %v3696_v5 }
0x3022   :  { %3841 = vrot.lane.b32.xlu1 %v4275_v57, %s4347_s29 }
0x3023   :  { %4276 = vtanh.f32 %v3831_v59 }
0x3029   :  { %v4277_v15 = vpop.eup %4276 }
0x302a   :  { %3843 = vrot.lane.b32.xlu2 %v4277_v15, %s4347_s29  ;;  %3261 = vrot.lane.b32.xlu1 %v3257_v6, %s4350_s4 }
0x3032   :  { %3263 = vrot.lane.b32.xlu2 %v3258_v41, %s4350_s4  ;;  %3560 = vrot.lane.b32.xlu1 %v3555_v1, %s4350_s4 }
0x303a   :  { %2963 = vrot.lane.b32.xlu2 %v2958_v33, %s4350_s4  ;;  %2961 = vrot.lane.b32.xlu1 %v2957_v28, %s4350_s4 }
0x3084   :  { %v3844_v30 = vpop.permute.xlu2 %3843 }
0x3085   :  { %v3848_v12 = vmul.f32 %v3844_v30, %v3838_v63 }
0x3087   :  { %v3850_v32 = vadd.f32 %v3848_v12, %v3836_v17 }
0x3089   :  { %v3852_v42 = vmul.f32 %v3850_v32, %v2955_v18 }
0x308c   :  { %v3264_v14 = vpop.permute.xlu2 %3263 }
0x308d   :  { %v3270_v23 = vsel %vm341_vm1, %v3264_v14, 0.0 }
0x3094   :  { %v2964_v39 = vpop.permute.xlu2 %2963  ;;  %v3842_v31 = vpop.permute.xlu1 %3841 }
0x3095   :  { %v2970_v10 = vsel %vm341_vm1, %v2964_v39, 0.0  ;;  %v3847_v56 = vmul.f32 %v3842_v31, %v3837_v16 }
0x3096   :  { %2971 = vadd.xlane.f32.xlu1 %v2970_v10 }
0x3097   :  { %v3849_v8 = vadd.f32 %v3847_v56, %v3835_v46 }
0x3099   :  { %v3851_v37 = vmul.f32 %v3849_v8, %v2955_v18 }
0x309b   :  { %3855 = vrot.lane.b32.xlu2 %v3851_v37, %s4350_s4 }
0x309c   :  { %v3262_v7 = vpop.permute.xlu1 %3261 }
0x309d   :  { %v3267_v61 = vsel %vm341_vm1, %v3262_v7, 0.0 }
0x30a4   :  { %v3561_v36 = vpop.permute.xlu1 %3560 }
0x30a5   :  { %v3567_v21 = vsel %vm341_vm1, %v3561_v36, 0.0 }
0x30a6   :  { %3568 = vadd.xlane.f32.xlu1 %v3567_v21 }
0x30ac   :  { %v2962_v43 = vpop.permute.xlu1 %2961 }
0x30ad   :  { %v2967_v54 = vsel %vm341_vm1, %v2962_v43, 0.0 }
0x30ae   :  { %2968 = vadd.xlane.f32.xlu0 %v2967_v54 }
0x30c2   :  { %3857 = vrot.lane.b32.xlu0 %v3852_v42, %s4350_s4  ;;  %s4360_s4 = smov 3  }
0x30c4   :  { %3268 = vadd.xlane.f32.xlu2 %v3267_v61 }
0x30cc   :  { %3271 = vadd.xlane.f32.xlu2 %v3270_v23 }
0x30ec   :  { %3565 = vadd.xlane.f32.xlu0 %v3564_v19 }
0x30f5   :  { %v3856_v55 = vpop.permute.xlu2 %3855 }
0x30f6   :  { %v3861_v45 = vsel %vm341_vm1, %v3856_v55, 0.0 }
0x30f7   :  { %3862 = vadd.xlane.f32.xlu2 %v3861_v45 }
0x3109   :  { %v2972_v20 = vpop.xlane.xlu1 %2971 }
0x310a   :  { %v2977_v26 = vadd.f32 %v4133_v25, %v2972_v20 }
0x3119   :  { %v3569_v47 = vpop.xlane.xlu1 %3568 }
0x311a   :  { %v3571_v22 = vadd.f32 %v4133_v25, %v3569_v47 }
0x3121   :  { %v2969_v24 = vpop.xlane.xlu0 %2968 }
0x3122   :  { %v2976_v48 = vadd.f32 %v4133_v25, %v2969_v24 }
0x3134   :  { %v3858_v27 = vpop.permute.xlu0 %3857 }
0x3135   :  { %v3864_v49 = vsel %vm341_vm1, %v3858_v27, 0.0  ;;  %vm3899_vm1 = vcmask 23552  }
0x3137   :  { %v3269_v44 = vpop.xlane.xlu2 %3268 }
0x3138   :  { %v3273_v35 = vadd.f32 %v4133_v25, %v3269_v44 }
0x313a   :  { %3871 = vrot.lane.b32.xlu1 %v3273_v35, %s4358_s1 }
0x313f   :  { %v3272_v11 = vpop.xlane.xlu2 %3271 }
0x3140   :  { %v3274_v38 = vadd.f32 %v4133_v25, %v3272_v11 }
0x3142   :  { %3873 = vrot.lane.b32.xlu2 %v3274_v38, %s4358_s1  ;;  %3881 = vrot.lane.b32.xlu1 %v3571_v22, %s4359_s20 }
0x315f   :  { %v3566_v4 = vpop.xlane.xlu0 %3565 }
0x3160   :  { %v3570_v34 = vadd.f32 %v4133_v25, %v3566_v4 }
0x3162   :  { %3879 = vrot.lane.b32.xlu0 %v3570_v34, %s4359_s20 }
0x316a   :  { %v3863_v51 = vpop.xlane.xlu2 %3862 }
0x316b   :  { %v3867_v60 = vadd.f32 %v4133_v25, %v3863_v51 }
0x318c   :  { %3865 = vadd.xlane.f32.xlu0 %v3864_v49 }
0x319c   :  { %v3874_v50 = vpop.permute.xlu2 %3873 }
0x319d   :  { %v3895_v62 = vsel %vm3893_vm0, %v2977_v26, %v3874_v50 }
0x31a0   :  { %3887 = vrot.lane.b32.xlu0 %v3867_v60, %s4360_s4 }
0x31ac   :  { %v3872_v40 = vpop.permute.xlu1 %3871 }
0x31ad   :  { %v3894_v29 = vsel %vm3893_vm0, %v2976_v48, %v3872_v40 }
0x31b4   :  { %v3882_v0 = vpop.permute.xlu1 %3881 }
0x31b5   :  { %v3898_v18 = vsel %vm3896_vm2, %v3895_v62, %v3882_v0 }
0x31d4   :  { %v3880_v52 = vpop.permute.xlu0 %3879 }
0x31d5   :  { %v3897_v53 = vsel %vm3896_vm2, %v3894_v29, %v3880_v52 }
0x31ff   :  { %v3866_v2 = vpop.xlane.xlu0 %3865 }
0x3200   :  { %v3868_v3 = vadd.f32 %v4133_v25, %v3866_v2 }
0x3202   :  { %3889 = vrot.lane.b32.xlu2 %v3868_v3, %s4360_s4 }
0x3212   :  { %v3888_v5 = vpop.permute.xlu0 %3887 }
0x3213   :  { %v3900_v9 = vsel %vm3899_vm1, %v3897_v53, %v3888_v5 }
0x3214   :  { %3903 = vst.msk [vmem:[%s6829_s21] sm:$0xff] %vm3902_vm3, %v3900_v9 }
0x325c   :  { %v3890_v57 = vpop.permute.xlu2 %3889 }
0x325d   :  { %v3901_v59 = vsel %vm3899_vm1, %v3898_v18, %v3890_v57 }
0x325e   :  { %3904 = vst.msk [vmem:[%s6829_s21 + $0x8] sm:$0xff] %vm3902_vm3, %v3901_v59 }

</bundles_post_ra>
